<compile_context>
chip_gen: v7x
topology: tpu7x:2x2x1
jax: 0.10.0
libtpu: 0.0.40
codegen_flags: <defaults>
</compile_context>

<pallas_src>
import functools

import jax
import jax.numpy as jnp
from jax.experimental import pallas as pl
from jax.experimental.pallas import tpu as pltpu

# Model dimensions implied by the module (fc1 = 64*7*7 -> 'same' convs keep 7x7).
H = 7
W = 7
HP = H + 2                      # zero-padded spatial rows
CIN = 3
C1, C2, C3 = 32, 64, 64
NFC1, NFC2, NFC3 = 120, 84, 4

BT = 16                         # batch tile (multiple of 16 -> bf16 sublane tile aligned)
KX = 128                        # input-slab lane width (W*CIN = 21, padded to 128)
K1 = W * C1                     # 224: s1 lane width / conv2 GEMM K
K2 = W * C2                     # 448: s2 lane width / conv3 GEMM K
OUT_LANES = 128                 # fc3 output padded to a lane-dense width


# ----------------------------------------------------------------------------
# The fused kernel: conv1 -> conv2 -> conv3 -> fc1 -> fc2 -> fc3
# ----------------------------------------------------------------------------
def _net_kernel(x_ref, m1, bt1, m2, bt2, m3, bt3,
                w4, b4, w5, b5, w6, b6,
                o_ref, s1, s2, *, bt):
    f32 = jnp.float32

    # 'same' padding in h: zero only the top/bottom padded row blocks of the
    # activation slabs (padding in w is encoded in the banded weight matrices,
    # so no lane strips need zeroing and no other scratch region is ever read
    # before being written).
    s1[pl.ds(0, bt), :] = jnp.zeros((bt, K1), s1.dtype)
    s1[pl.ds((HP - 1) * bt, bt), :] = jnp.zeros((bt, K1), s1.dtype)
    s2[pl.ds(0, bt), :] = jnp.zeros((bt, K2), s2.dtype)
    s2[pl.ds((HP - 1) * bt, bt), :] = jnp.zeros((bt, K2), s2.dtype)

    def banded_conv(src_ref, m_ref, bias_ref):
        """Batch-stacked 3x3 'same' conv: 3 GEMMs of (H*bt, K) x (K, W*cout).

        src_ref rows are (hp*bt + b); the result rows are (h*bt + b) and the
        minor dim is laid out (w, cout)."""
        acc = jnp.dot(src_ref[pl.ds(0, H * bt), :], m_ref[0],
                      preferred_element_type=f32)
        for di in range(1, 3):
            acc = acc + jnp.dot(src_ref[pl.ds(di * bt, H * bt), :], m_ref[di],
                                preferred_element_type=f32)
        return jnp.maximum(acc + bias_ref[...], 0.0)

    # conv1 -> s1 interior rows (single lane-dense bf16 store at row offset bt)
    y1 = banded_conv(x_ref, m1, bt1)                        # (H*bt, W*C1) f32
    s1[pl.ds(bt, H * bt), :] = y1.astype(s1.dtype)
    # conv2 -> s2 interior rows
    y2 = banded_conv(s1, m2, bt2)                           # (H*bt, W*C2) f32
    s2[pl.ds(bt, H * bt), :] = y2.astype(s2.dtype)
    # conv3 stays a register value; fc1 is a per-h accumulation (no flatten,
    # no intermediate scratch).
    y3 = banded_conv(s2, m3, bt3).astype(jnp.bfloat16)      # (H*bt, W*C3)

    acc1 = jnp.dot(y3[0:bt, :], w4[0], preferred_element_type=f32)
    for h in range(1, H):
        acc1 = acc1 + jnp.dot(y3[h * bt:(h + 1) * bt, :], w4[h],
                              preferred_element_type=f32)
    h1 = jnp.maximum(acc1 + b4[...], 0.0)
    # TODO(synk): nn.Dropout(p=0.5) treated as identity (eval / inference mode).
    h2 = jnp.maximum(
        jnp.dot(h1.astype(jnp.bfloat16), w5[...], preferred_element_type=f32)
        + b5[...], 0.0)
    out = jnp.dot(h2.astype(jnp.bfloat16), w6[...], preferred_element_type=f32)
    out = out + b6[...]
    o_ref[...] = out.astype(o_ref.dtype)


def _const_spec(shape):
    nd = len(shape)
    return pl.BlockSpec(shape, lambda i, _nd=nd: (0,) * _nd)


@jax.jit
def net_forward(kparams, x_nchw):
    batch = x_nchw.shape[0]
    nt = pl.cdiv(batch, BT)                 # number of batch tiles
    pb = nt * BT

    # Layout plumbing (tiny tensors, done once outside the kernel):
    # NCHW -> per-tile h-major / batch-minor slabs with (w, c)-ordered lanes,
    # zero row blocks for the top/bottom 'same' padding, zero batch padding.
    x = jnp.transpose(x_nchw, (0, 2, 3, 1)).astype(jnp.bfloat16)     # (B,H,W,CIN)
    x = x.reshape(batch, H, W * CIN)
    x = jnp.pad(x, ((0, pb - batch), (1, 1), (0, KX - W * CIN)))     # (pb,HP,KX)
    x = x.reshape(nt, BT, HP, KX).transpose(0, 2, 1, 3)              # (nt,HP,BT,KX)
    x_slab = x.reshape(nt * HP * BT, KX)

    weights = (kparams["m1"], kparams["bt1"], kparams["m2"], kparams["bt2"],
               kparams["m3"], kparams["bt3"], kparams["w4"], kparams["b4"],
               kparams["w5"], kparams["b5"], kparams["w6"], kparams["b6"])

    grid_spec = pltpu.PrefetchScalarGridSpec(
        num_scalar_prefetch=0,
        grid=(nt,),
        in_specs=[pl.BlockSpec((HP * BT, KX), lambda i: (i, 0))]
                 + [_const_spec(wgt.shape) for wgt in weights],
        out_specs=pl.BlockSpec((BT, OUT_LANES), lambda i: (i, 0)),
        scratch_shapes=[
            pltpu.VMEM((HP * BT, K1), jnp.bfloat16),   # conv1 output slab (padded rows)
            pltpu.VMEM((HP * BT, K2), jnp.bfloat16),   # conv2 output slab (padded rows)
        ],
    )
    out = pl.pallas_call(
        functools.partial(_net_kernel, bt=BT),
        out_shape=jax.ShapeDtypeStruct((pb, OUT_LANES), jnp.float32),
        grid_spec=grid_spec,
        compiler_params=pltpu.CompilerParams(
            dimension_semantics=("parallel",)),
    )(x_slab, *weights)
    return out[:batch, :NFC3]


# ----------------------------------------------------------------------------
# Parameter init (torch layout) and one-time transform to kernel layout
# ----------------------------------------------------------------------------
def init_params(key):
    keys = jax.random.split(key, 12)

    def conv_w(k, cout, cin):
        return jax.random.normal(k, (cout, cin, 3, 3), jnp.float32) / jnp.sqrt(cin * 9.0)

    def lin_w(k, cout, cin):
        return jax.random.normal(k, (cout, cin), jnp.float32) / jnp.sqrt(float(cin))

    return {
        "conv1_w": conv_w(keys[0], C1, CIN),
        "conv1_b": 0.01 * jax.random.normal(keys[1], (C1,), jnp.float32),
        "conv2_w": conv_w(keys[2], C2, C1),
        "conv2_b": 0.01 * jax.random.normal(keys[3], (C2,), jnp.float32),
        "conv3_w": conv_w(keys[4], C3, C2),
        "conv3_b": 0.01 * jax.random.normal(keys[5], (C3,), jnp.float32),
        "fc1_w": lin_w(keys[6], NFC1, C3 * H * W),
        "fc1_b": 0.01 * jax.random.normal(keys[7], (NFC1,), jnp.float32),
        "fc2_w": lin_w(keys[8], NFC2, NFC1),
        "fc2_b": 0.01 * jax.random.normal(keys[9], (NFC2,), jnp.float32),
        "fc3_w": lin_w(keys[10], NFC3, NFC2),
        "fc3_b": 0.01 * jax.random.normal(keys[11], (NFC3,), jnp.float32),
    }


def _banded_conv_weight(w_oihw, k_lanes):
    """(Cout, Cin, 3, 3) conv weight -> 3 banded GEMM matrices (k_lanes, W*Cout).

    m[di, wi*Cin + ci, wo*Cout + co] = w[co, ci, di, wi - wo + 1]
    for 0 <= wi - wo + 1 < 3 (wi = unpadded input column).  The spatial
    left/right 'same'-padding columns are simply absent from the band (their
    contribution is exactly zero), so no lane padding is needed in the slabs.
    """
    cout, cin = w_oihw.shape[0], w_oihw.shape[1]
    wk = jnp.transpose(w_oihw, (2, 3, 1, 0))              # (kh, kw, cin, cout)
    m = jnp.zeros((3, k_lanes, W * cout), jnp.float32)
    for di in range(3):
        for wo in range(W):
            for dj in range(3):
                wi = wo + dj - 1
                if 0 <= wi < W:
                    m = m.at[di,
                             wi * cin:(wi + 1) * cin,
                             wo * cout:(wo + 1) * cout].set(wk[di, dj])
    return m.astype(jnp.bfloat16)


def prepare_params(p):
    """One-time transform of torch-layout params into the kernel-resident layout."""
    def tile_bias(b):
        return jnp.tile(b, W).reshape(1, W * b.shape[0]).astype(jnp.float32)

    # fc1: torch flattens NCHW as (c, h, w); the kernel consumes conv3's output
    # as (h row-blocks, (w, c) lanes), so permute fc1's weight rows accordingly
    # and keep the h axis separate for the per-h accumulation.
    w4 = jnp.transpose(p["fc1_w"].reshape(NFC1, C3, H, W), (2, 3, 1, 0))
    w4 = w4.reshape(H, W * C3, NFC1)

    # fc3: pad the 4 output lanes up to a lane-dense 128 (sliced back outside).
    w6 = jnp.zeros((NFC2, OUT_LANES), jnp.float32).at[:, :NFC3].set(p["fc3_w"].T)
    b6 = jnp.zeros((1, OUT_LANES), jnp.float32).at[0, :NFC3].set(p["fc3_b"])

    return {
        "m1": _banded_conv_weight(p["conv1_w"], KX), "bt1": tile_bias(p["conv1_b"]),
        "m2": _banded_conv_weight(p["conv2_w"], K1), "bt2": tile_bias(p["conv2_b"]),
        "m3": _banded_conv_weight(p["conv3_w"], K2), "bt3": tile_bias(p["conv3_b"]),
        "w4": w4.astype(jnp.bfloat16),
        "b4": p["fc1_b"].reshape(1, NFC1).astype(jnp.float32),
        "w5": p["fc2_w"].T.astype(jnp.bfloat16),
        "b5": p["fc2_b"].reshape(1, NFC2).astype(jnp.float32),
        "w6": w6.astype(jnp.bfloat16),
        "b6": b6,
    }


# ----------------------------------------------------------------------------
# Pure-JAX reference (matches the kernel's bf16-input / f32-accumulate numerics)
# ----------------------------------------------------------------------------
def reference_forward(p, x_nchw):
    f32 = jnp.float32

    def rb(a):                                    # round to bf16 like the MXU inputs
        return a.astype(jnp.bfloat16).astype(f32)

    def conv(x, w, b):
        y = jax.lax.conv_general_dilated(
            rb(x), rb(w), window_strides=(1, 1), padding="SAME",
            dimension_numbers=("NCHW", "OIHW", "NCHW"))
        return jax.nn.relu(y + b.reshape(1, -1, 1, 1))

    x = conv(x_nchw.astype(f32), p["conv1_w"], p["conv1_b"])
    x = conv(x, p["conv2_w"], p["conv2_b"])
    x = conv(x, p["conv3_w"], p["conv3_b"])
    x = x.reshape(x.shape[0], -1)                             # (B, C3*H*W)
    x = jax.nn.relu(rb(x) @ rb(p["fc1_w"]).T + p["fc1_b"])
    x = jax.nn.relu(rb(x) @ rb(p["fc2_w"]).T + p["fc2_b"])    # dropout = identity
    return rb(x) @ rb(p["fc3_w"]).T + p["fc3_b"]


if __name__ == "__main__":
    key = jax.random.PRNGKey(0)
    pkey, xkey = jax.random.split(key)
    params = init_params(pkey)
    kparams = prepare_params(params)

    # Input implied by the module: (B, 3, 7, 7) ('same' convs keep 7x7; fc1 is 64*7*7).
    x = jax.random.normal(xkey, (2, CIN, H, W), jnp.float32)

    out = net_forward(kparams, x)
    jax.block_until_ready(out)
    assert out.shape == (2, NFC3)

    ref = reference_forward(params, x)
    assert jnp.allclose(out, ref, atol=5e-2, rtol=5e-2), (
        f"max abs diff = {jnp.max(jnp.abs(out - ref))}")
    print("KERNEL_OK")
</pallas_src>

<mosaic_0001>
module attributes {stable_mosaic.version = 11 : i64} {
  func.func @_net_kernel(%arg0: i32, %arg1: memref<144x128xbf16, #tpu.memory_space<vmem>>, %arg2: memref<3x128x224xbf16, #tpu.memory_space<vmem>>, %arg3: memref<1x224xf32, #tpu.memory_space<vmem>>, %arg4: memref<3x224x448xbf16, #tpu.memory_space<vmem>>, %arg5: memref<1x448xf32, #tpu.memory_space<vmem>>, %arg6: memref<3x448x448xbf16, #tpu.memory_space<vmem>>, %arg7: memref<1x448xf32, #tpu.memory_space<vmem>>, %arg8: memref<7x448x120xbf16, #tpu.memory_space<vmem>>, %arg9: memref<1x120xf32, #tpu.memory_space<vmem>>, %arg10: memref<120x84xbf16, #tpu.memory_space<vmem>>, %arg11: memref<1x84xf32, #tpu.memory_space<vmem>>, %arg12: memref<84x128xbf16, #tpu.memory_space<vmem>>, %arg13: memref<1x128xf32, #tpu.memory_space<vmem>>, %arg14: memref<16x128xf32, #tpu.memory_space<vmem>>, %arg15: memref<144x224xbf16, #tpu.memory_space<vmem>>, %arg16: memref<144x448xbf16, #tpu.memory_space<vmem>>) attributes {dimension_semantics = [#tpu.dimension_semantics<parallel>], iteration_bounds = array<i64: 1>, scalar_prefetch = 0 : i64, scratch_operands = 2 : i64, tpu.core_type = #tpu.core_type<tc>, window_params = [{transform_indices = @transform_0, window_bounds = array<i64: 144, 128>}, {pipeline_mode = #tpu.pipeline_mode<synchronous>, transform_indices = @transform_1, window_bounds = array<i64: 3, 128, 224>}, {pipeline_mode = #tpu.pipeline_mode<synchronous>, transform_indices = @transform_2, window_bounds = array<i64: 1, 224>}, {pipeline_mode = #tpu.pipeline_mode<synchronous>, transform_indices = @transform_3, window_bounds = array<i64: 3, 224, 448>}, {pipeline_mode = #tpu.pipeline_mode<synchronous>, transform_indices = @transform_4, window_bounds = array<i64: 1, 448>}, {pipeline_mode = #tpu.pipeline_mode<synchronous>, transform_indices = @transform_5, window_bounds = array<i64: 3, 448, 448>}, {pipeline_mode = #tpu.pipeline_mode<synchronous>, transform_indices = @transform_6, window_bounds = array<i64: 1, 448>}, {pipeline_mode = #tpu.pipeline_mode<synchronous>, transform_indices = @transform_7, window_bounds = array<i64: 7, 448, 120>}, {pipeline_mode = #tpu.pipeline_mode<synchronous>, transform_indices = @transform_8, window_bounds = array<i64: 1, 120>}, {pipeline_mode = #tpu.pipeline_mode<synchronous>, transform_indices = @transform_9, window_bounds = array<i64: 120, 84>}, {pipeline_mode = #tpu.pipeline_mode<synchronous>, transform_indices = @transform_10, window_bounds = array<i64: 1, 84>}, {pipeline_mode = #tpu.pipeline_mode<synchronous>, transform_indices = @transform_11, window_bounds = array<i64: 84, 128>}, {pipeline_mode = #tpu.pipeline_mode<synchronous>, transform_indices = @transform_12, window_bounds = array<i64: 1, 128>}, {transform_indices = @transform_13, window_bounds = array<i64: 16, 128>}]} {
    %cst = arith.constant 0.000000e+00 : bf16
    %0 = vector.broadcast %cst : bf16 to vector<16x224xbf16>
    %c0 = arith.constant 0 : index
    %c0_0 = arith.constant 0 : index
    %1 = vector.load %arg15[%c0, %c0_0] : memref<144x224xbf16, #tpu.memory_space<vmem>>, vector<16x224xbf16>
    tpu.vector_store %arg15[%c0, %c0_0], %0 {strides = array<i32>} : memref<144x224xbf16, #tpu.memory_space<vmem>>, vector<16x224xbf16>,
    %cst_1 = arith.constant 0.000000e+00 : bf16
    %2 = vector.broadcast %cst_1 : bf16 to vector<16x224xbf16>
    %c128 = arith.constant 128 : index
    %c0_2 = arith.constant 0 : index
    %3 = vector.load %arg15[%c128, %c0_2] : memref<144x224xbf16, #tpu.memory_space<vmem>>, vector<16x224xbf16>
    tpu.vector_store %arg15[%c128, %c0_2], %2 {strides = array<i32>} : memref<144x224xbf16, #tpu.memory_space<vmem>>, vector<16x224xbf16>,
    %cst_3 = arith.constant 0.000000e+00 : bf16
    %4 = vector.broadcast %cst_3 : bf16 to vector<16x448xbf16>
    %c0_4 = arith.constant 0 : index
    %c0_5 = arith.constant 0 : index
    %5 = vector.load %arg16[%c0_4, %c0_5] : memref<144x448xbf16, #tpu.memory_space<vmem>>, vector<16x448xbf16>
    tpu.vector_store %arg16[%c0_4, %c0_5], %4 {strides = array<i32>} : memref<144x448xbf16, #tpu.memory_space<vmem>>, vector<16x448xbf16>,
    %cst_6 = arith.constant 0.000000e+00 : bf16
    %6 = vector.broadcast %cst_6 : bf16 to vector<16x448xbf16>
    %c128_7 = arith.constant 128 : index
    %c0_8 = arith.constant 0 : index
    %7 = vector.load %arg16[%c128_7, %c0_8] : memref<144x448xbf16, #tpu.memory_space<vmem>>, vector<16x448xbf16>
    tpu.vector_store %arg16[%c128_7, %c0_8], %6 {strides = array<i32>} : memref<144x448xbf16, #tpu.memory_space<vmem>>, vector<16x448xbf16>,
    %c0_9 = arith.constant 0 : index
    %c0_10 = arith.constant 0 : index
    %8 = vector.load %arg1[%c0_9, %c0_10] : memref<144x128xbf16, #tpu.memory_space<vmem>>, vector<112x128xbf16>
    %c0_11 = arith.constant 0 : index
    %c0_12 = arith.constant 0 : index
    %c0_13 = arith.constant 0 : index
    %9 = vector.load %arg2[%c0_11, %c0_12, %c0_13] : memref<3x128x224xbf16, #tpu.memory_space<vmem>>, vector<1x128x224xbf16>
    %10 = vector.shape_cast %9 : vector<1x128x224xbf16> to vector<128x224xbf16>
    %cst_14 = arith.constant dense<0.000000e+00> : vector<112x224xf32>
    %11 = tpu.matmul %8, %10, %cst_14 {dimension_numbers = #tpu.dot_dimension_numbers<[1], [0], [0], [1], [0, 0, 1, 1], [], []>} : vector<112x128xbf16>, vector<128x224xbf16>, vector<112x224xf32> -> vector<112x224xf32>
    %c16 = arith.constant 16 : index
    %c0_15 = arith.constant 0 : index
    %12 = vector.load %arg1[%c16, %c0_15] : memref<144x128xbf16, #tpu.memory_space<vmem>>, vector<112x128xbf16>
    %c1 = arith.constant 1 : index
    %c0_16 = arith.constant 0 : index
    %c0_17 = arith.constant 0 : index
    %13 = vector.load %arg2[%c1, %c0_16, %c0_17] : memref<3x128x224xbf16, #tpu.memory_space<vmem>>, vector<1x128x224xbf16>
    %14 = vector.shape_cast %13 : vector<1x128x224xbf16> to vector<128x224xbf16>
    %cst_18 = arith.constant dense<0.000000e+00> : vector<112x224xf32>
    %15 = tpu.matmul %12, %14, %cst_18 {dimension_numbers = #tpu.dot_dimension_numbers<[1], [0], [0], [1], [0, 0, 1, 1], [], []>} : vector<112x128xbf16>, vector<128x224xbf16>, vector<112x224xf32> -> vector<112x224xf32>
    %16 = arith.addf %11, %15 : vector<112x224xf32>
    %c32 = arith.constant 32 : index
    %c0_19 = arith.constant 0 : index
    %17 = vector.load %arg1[%c32, %c0_19] : memref<144x128xbf16, #tpu.memory_space<vmem>>, vector<112x128xbf16>
    %c2 = arith.constant 2 : index
    %c0_20 = arith.constant 0 : index
    %c0_21 = arith.constant 0 : index
    %18 = vector.load %arg2[%c2, %c0_20, %c0_21] : memref<3x128x224xbf16, #tpu.memory_space<vmem>>, vector<1x128x224xbf16>
    %19 = vector.shape_cast %18 : vector<1x128x224xbf16> to vector<128x224xbf16>
    %cst_22 = arith.constant dense<0.000000e+00> : vector<112x224xf32>
    %20 = tpu.matmul %17, %19, %cst_22 {dimension_numbers = #tpu.dot_dimension_numbers<[1], [0], [0], [1], [0, 0, 1, 1], [], []>} : vector<112x128xbf16>, vector<128x224xbf16>, vector<112x224xf32> -> vector<112x224xf32>
    %21 = arith.addf %16, %20 : vector<112x224xf32>
    %c0_23 = arith.constant 0 : index
    %c0_24 = arith.constant 0 : index
    %22 = vector.load %arg3[%c0_23, %c0_24] : memref<1x224xf32, #tpu.memory_space<vmem>>, vector<1x224xf32>
    %23 = vector.broadcast %22 : vector<1x224xf32> to vector<112x224xf32>
    %24 = arith.addf %21, %23 : vector<112x224xf32>
    %cst_25 = arith.constant 0.000000e+00 : f32
    %25 = vector.broadcast %cst_25 : f32 to vector<112x224xf32>
    %26 = arith.maximumf %24, %25 : vector<112x224xf32>
    %27 = arith.truncf %26 : vector<112x224xf32> to vector<112x224xbf16>
    %c16_26 = arith.constant 16 : index
    %c0_27 = arith.constant 0 : index
    %28 = vector.load %arg15[%c16_26, %c0_27] : memref<144x224xbf16, #tpu.memory_space<vmem>>, vector<112x224xbf16>
    tpu.vector_store %arg15[%c16_26, %c0_27], %27 {strides = array<i32>} : memref<144x224xbf16, #tpu.memory_space<vmem>>, vector<112x224xbf16>,
    %c0_28 = arith.constant 0 : index
    %c0_29 = arith.constant 0 : index
    %29 = vector.load %arg15[%c0_28, %c0_29] : memref<144x224xbf16, #tpu.memory_space<vmem>>, vector<112x224xbf16>
    %c0_30 = arith.constant 0 : index
    %c0_31 = arith.constant 0 : index
    %c0_32 = arith.constant 0 : index
    %30 = vector.load %arg4[%c0_30, %c0_31, %c0_32] : memref<3x224x448xbf16, #tpu.memory_space<vmem>>, vector<1x224x448xbf16>
    %31 = vector.shape_cast %30 : vector<1x224x448xbf16> to vector<224x448xbf16>
    %cst_33 = arith.constant dense<0.000000e+00> : vector<112x448xf32>
    %32 = tpu.matmul %29, %31, %cst_33 {dimension_numbers = #tpu.dot_dimension_numbers<[1], [0], [0], [1], [0, 0, 1, 1], [], []>} : vector<112x224xbf16>, vector<224x448xbf16>, vector<112x448xf32> -> vector<112x448xf32>
    %c16_34 = arith.constant 16 : index
    %c0_35 = arith.constant 0 : index
    %33 = vector.load %arg15[%c16_34, %c0_35] : memref<144x224xbf16, #tpu.memory_space<vmem>>, vector<112x224xbf16>
    %c1_36 = arith.constant 1 : index
    %c0_37 = arith.constant 0 : index
    %c0_38 = arith.constant 0 : index
    %34 = vector.load %arg4[%c1_36, %c0_37, %c0_38] : memref<3x224x448xbf16, #tpu.memory_space<vmem>>, vector<1x224x448xbf16>
    %35 = vector.shape_cast %34 : vector<1x224x448xbf16> to vector<224x448xbf16>
    %cst_39 = arith.constant dense<0.000000e+00> : vector<112x448xf32>
    %36 = tpu.matmul %33, %35, %cst_39 {dimension_numbers = #tpu.dot_dimension_numbers<[1], [0], [0], [1], [0, 0, 1, 1], [], []>} : vector<112x224xbf16>, vector<224x448xbf16>, vector<112x448xf32> -> vector<112x448xf32>
    %37 = arith.addf %32, %36 : vector<112x448xf32>
    %c32_40 = arith.constant 32 : index
    %c0_41 = arith.constant 0 : index
    %38 = vector.load %arg15[%c32_40, %c0_41] : memref<144x224xbf16, #tpu.memory_space<vmem>>, vector<112x224xbf16>
    %c2_42 = arith.constant 2 : index
    %c0_43 = arith.constant 0 : index
    %c0_44 = arith.constant 0 : index
    %39 = vector.load %arg4[%c2_42, %c0_43, %c0_44] : memref<3x224x448xbf16, #tpu.memory_space<vmem>>, vector<1x224x448xbf16>
    %40 = vector.shape_cast %39 : vector<1x224x448xbf16> to vector<224x448xbf16>
    %cst_45 = arith.constant dense<0.000000e+00> : vector<112x448xf32>
    %41 = tpu.matmul %38, %40, %cst_45 {dimension_numbers = #tpu.dot_dimension_numbers<[1], [0], [0], [1], [0, 0, 1, 1], [], []>} : vector<112x224xbf16>, vector<224x448xbf16>, vector<112x448xf32> -> vector<112x448xf32>
    %42 = arith.addf %37, %41 : vector<112x448xf32>
    %c0_46 = arith.constant 0 : index
    %c0_47 = arith.constant 0 : index
    %43 = vector.load %arg5[%c0_46, %c0_47] : memref<1x448xf32, #tpu.memory_space<vmem>>, vector<1x448xf32>
    %44 = vector.broadcast %43 : vector<1x448xf32> to vector<112x448xf32>
    %45 = arith.addf %42, %44 : vector<112x448xf32>
    %cst_48 = arith.constant 0.000000e+00 : f32
    %46 = vector.broadcast %cst_48 : f32 to vector<112x448xf32>
    %47 = arith.maximumf %45, %46 : vector<112x448xf32>
    %48 = arith.truncf %47 : vector<112x448xf32> to vector<112x448xbf16>
    %c16_49 = arith.constant 16 : index
    %c0_50 = arith.constant 0 : index
    %49 = vector.load %arg16[%c16_49, %c0_50] : memref<144x448xbf16, #tpu.memory_space<vmem>>, vector<112x448xbf16>
    tpu.vector_store %arg16[%c16_49, %c0_50], %48 {strides = array<i32>} : memref<144x448xbf16, #tpu.memory_space<vmem>>, vector<112x448xbf16>,
    %c0_51 = arith.constant 0 : index
    %c0_52 = arith.constant 0 : index
    %50 = vector.load %arg16[%c0_51, %c0_52] : memref<144x448xbf16, #tpu.memory_space<vmem>>, vector<112x448xbf16>
    %c0_53 = arith.constant 0 : index
    %c0_54 = arith.constant 0 : index
    %c0_55 = arith.constant 0 : index
    %51 = vector.load %arg6[%c0_53, %c0_54, %c0_55] : memref<3x448x448xbf16, #tpu.memory_space<vmem>>, vector<1x448x448xbf16>
    %52 = vector.shape_cast %51 : vector<1x448x448xbf16> to vector<448x448xbf16>
    %cst_56 = arith.constant dense<0.000000e+00> : vector<112x448xf32>
    %53 = tpu.matmul %50, %52, %cst_56 {dimension_numbers = #tpu.dot_dimension_numbers<[1], [0], [0], [1], [0, 0, 1, 1], [], []>} : vector<112x448xbf16>, vector<448x448xbf16>, vector<112x448xf32> -> vector<112x448xf32>
    %c16_57 = arith.constant 16 : index
    %c0_58 = arith.constant 0 : index
    %54 = vector.load %arg16[%c16_57, %c0_58] : memref<144x448xbf16, #tpu.memory_space<vmem>>, vector<112x448xbf16>
    %c1_59 = arith.constant 1 : index
    %c0_60 = arith.constant 0 : index
    %c0_61 = arith.constant 0 : index
    %55 = vector.load %arg6[%c1_59, %c0_60, %c0_61] : memref<3x448x448xbf16, #tpu.memory_space<vmem>>, vector<1x448x448xbf16>
    %56 = vector.shape_cast %55 : vector<1x448x448xbf16> to vector<448x448xbf16>
    %cst_62 = arith.constant dense<0.000000e+00> : vector<112x448xf32>
    %57 = tpu.matmul %54, %56, %cst_62 {dimension_numbers = #tpu.dot_dimension_numbers<[1], [0], [0], [1], [0, 0, 1, 1], [], []>} : vector<112x448xbf16>, vector<448x448xbf16>, vector<112x448xf32> -> vector<112x448xf32>
    %58 = arith.addf %53, %57 : vector<112x448xf32>
    %c32_63 = arith.constant 32 : index
    %c0_64 = arith.constant 0 : index
    %59 = vector.load %arg16[%c32_63, %c0_64] : memref<144x448xbf16, #tpu.memory_space<vmem>>, vector<112x448xbf16>
    %c2_65 = arith.constant 2 : index
    %c0_66 = arith.constant 0 : index
    %c0_67 = arith.constant 0 : index
    %60 = vector.load %arg6[%c2_65, %c0_66, %c0_67] : memref<3x448x448xbf16, #tpu.memory_space<vmem>>, vector<1x448x448xbf16>
    %61 = vector.shape_cast %60 : vector<1x448x448xbf16> to vector<448x448xbf16>
    %cst_68 = arith.constant dense<0.000000e+00> : vector<112x448xf32>
    %62 = tpu.matmul %59, %61, %cst_68 {dimension_numbers = #tpu.dot_dimension_numbers<[1], [0], [0], [1], [0, 0, 1, 1], [], []>} : vector<112x448xbf16>, vector<448x448xbf16>, vector<112x448xf32> -> vector<112x448xf32>
    %63 = arith.addf %58, %62 : vector<112x448xf32>
    %c0_69 = arith.constant 0 : index
    %c0_70 = arith.constant 0 : index
    %64 = vector.load %arg7[%c0_69, %c0_70] : memref<1x448xf32, #tpu.memory_space<vmem>>, vector<1x448xf32>
    %65 = vector.broadcast %64 : vector<1x448xf32> to vector<112x448xf32>
    %66 = arith.addf %63, %65 : vector<112x448xf32>
    %cst_71 = arith.constant 0.000000e+00 : f32
    %67 = vector.broadcast %cst_71 : f32 to vector<112x448xf32>
    %68 = arith.maximumf %66, %67 : vector<112x448xf32>
    %69 = arith.truncf %68 : vector<112x448xf32> to vector<112x448xbf16>
    %70 = vector.extract_strided_slice %69 {offsets = [0, 0], sizes = [16, 448], strides = [1, 1]} : vector<112x448xbf16> to vector<16x448xbf16>
    %c0_72 = arith.constant 0 : index
    %c0_73 = arith.constant 0 : index
    %c0_74 = arith.constant 0 : index
    %71 = vector.load %arg8[%c0_72, %c0_73, %c0_74] : memref<7x448x120xbf16, #tpu.memory_space<vmem>>, vector<1x448x120xbf16>
    %72 = vector.shape_cast %71 : vector<1x448x120xbf16> to vector<448x120xbf16>
    %cst_75 = arith.constant dense<0.000000e+00> : vector<16x120xf32>
    %73 = tpu.matmul %70, %72, %cst_75 {dimension_numbers = #tpu.dot_dimension_numbers<[1], [0], [0], [1], [0, 0, 1, 1], [], []>} : vector<16x448xbf16>, vector<448x120xbf16>, vector<16x120xf32> -> vector<16x120xf32>
    %74 = vector.extract_strided_slice %69 {offsets = [16, 0], sizes = [16, 448], strides = [1, 1]} : vector<112x448xbf16> to vector<16x448xbf16>
    %c1_76 = arith.constant 1 : index
    %c0_77 = arith.constant 0 : index
    %c0_78 = arith.constant 0 : index
    %75 = vector.load %arg8[%c1_76, %c0_77, %c0_78] : memref<7x448x120xbf16, #tpu.memory_space<vmem>>, vector<1x448x120xbf16>
    %76 = vector.shape_cast %75 : vector<1x448x120xbf16> to vector<448x120xbf16>
    %cst_79 = arith.constant dense<0.000000e+00> : vector<16x120xf32>
    %77 = tpu.matmul %74, %76, %cst_79 {dimension_numbers = #tpu.dot_dimension_numbers<[1], [0], [0], [1], [0, 0, 1, 1], [], []>} : vector<16x448xbf16>, vector<448x120xbf16>, vector<16x120xf32> -> vector<16x120xf32>
    %78 = arith.addf %73, %77 : vector<16x120xf32>
    %79 = vector.extract_strided_slice %69 {offsets = [32, 0], sizes = [16, 448], strides = [1, 1]} : vector<112x448xbf16> to vector<16x448xbf16>
    %c2_80 = arith.constant 2 : index
    %c0_81 = arith.constant 0 : index
    %c0_82 = arith.constant 0 : index
    %80 = vector.load %arg8[%c2_80, %c0_81, %c0_82] : memref<7x448x120xbf16, #tpu.memory_space<vmem>>, vector<1x448x120xbf16>
    %81 = vector.shape_cast %80 : vector<1x448x120xbf16> to vector<448x120xbf16>
    %cst_83 = arith.constant dense<0.000000e+00> : vector<16x120xf32>
    %82 = tpu.matmul %79, %81, %cst_83 {dimension_numbers = #tpu.dot_dimension_numbers<[1], [0], [0], [1], [0, 0, 1, 1], [], []>} : vector<16x448xbf16>, vector<448x120xbf16>, vector<16x120xf32> -> vector<16x120xf32>
    %83 = arith.addf %78, %82 : vector<16x120xf32>
    %84 = vector.extract_strided_slice %69 {offsets = [48, 0], sizes = [16, 448], strides = [1, 1]} : vector<112x448xbf16> to vector<16x448xbf16>
    %c3 = arith.constant 3 : index
    %c0_84 = arith.constant 0 : index
    %c0_85 = arith.constant 0 : index
    %85 = vector.load %arg8[%c3, %c0_84, %c0_85] : memref<7x448x120xbf16, #tpu.memory_space<vmem>>, vector<1x448x120xbf16>
    %86 = vector.shape_cast %85 : vector<1x448x120xbf16> to vector<448x120xbf16>
    %cst_86 = arith.constant dense<0.000000e+00> : vector<16x120xf32>
    %87 = tpu.matmul %84, %86, %cst_86 {dimension_numbers = #tpu.dot_dimension_numbers<[1], [0], [0], [1], [0, 0, 1, 1], [], []>} : vector<16x448xbf16>, vector<448x120xbf16>, vector<16x120xf32> -> vector<16x120xf32>
    %88 = arith.addf %83, %87 : vector<16x120xf32>
    %89 = vector.extract_strided_slice %69 {offsets = [64, 0], sizes = [16, 448], strides = [1, 1]} : vector<112x448xbf16> to vector<16x448xbf16>
    %c4 = arith.constant 4 : index
    %c0_87 = arith.constant 0 : index
    %c0_88 = arith.constant 0 : index
    %90 = vector.load %arg8[%c4, %c0_87, %c0_88] : memref<7x448x120xbf16, #tpu.memory_space<vmem>>, vector<1x448x120xbf16>
    %91 = vector.shape_cast %90 : vector<1x448x120xbf16> to vector<448x120xbf16>
    %cst_89 = arith.constant dense<0.000000e+00> : vector<16x120xf32>
    %92 = tpu.matmul %89, %91, %cst_89 {dimension_numbers = #tpu.dot_dimension_numbers<[1], [0], [0], [1], [0, 0, 1, 1], [], []>} : vector<16x448xbf16>, vector<448x120xbf16>, vector<16x120xf32> -> vector<16x120xf32>
    %93 = arith.addf %88, %92 : vector<16x120xf32>
    %94 = vector.extract_strided_slice %69 {offsets = [80, 0], sizes = [16, 448], strides = [1, 1]} : vector<112x448xbf16> to vector<16x448xbf16>
    %c5 = arith.constant 5 : index
    %c0_90 = arith.constant 0 : index
    %c0_91 = arith.constant 0 : index
    %95 = vector.load %arg8[%c5, %c0_90, %c0_91] : memref<7x448x120xbf16, #tpu.memory_space<vmem>>, vector<1x448x120xbf16>
    %96 = vector.shape_cast %95 : vector<1x448x120xbf16> to vector<448x120xbf16>
    %cst_92 = arith.constant dense<0.000000e+00> : vector<16x120xf32>
    %97 = tpu.matmul %94, %96, %cst_92 {dimension_numbers = #tpu.dot_dimension_numbers<[1], [0], [0], [1], [0, 0, 1, 1], [], []>} : vector<16x448xbf16>, vector<448x120xbf16>, vector<16x120xf32> -> vector<16x120xf32>
    %98 = arith.addf %93, %97 : vector<16x120xf32>
    %99 = vector.extract_strided_slice %69 {offsets = [96, 0], sizes = [16, 448], strides = [1, 1]} : vector<112x448xbf16> to vector<16x448xbf16>
    %c6 = arith.constant 6 : index
    %c0_93 = arith.constant 0 : index
    %c0_94 = arith.constant 0 : index
    %100 = vector.load %arg8[%c6, %c0_93, %c0_94] : memref<7x448x120xbf16, #tpu.memory_space<vmem>>, vector<1x448x120xbf16>
    %101 = vector.shape_cast %100 : vector<1x448x120xbf16> to vector<448x120xbf16>
    %cst_95 = arith.constant dense<0.000000e+00> : vector<16x120xf32>
    %102 = tpu.matmul %99, %101, %cst_95 {dimension_numbers = #tpu.dot_dimension_numbers<[1], [0], [0], [1], [0, 0, 1, 1], [], []>} : vector<16x448xbf16>, vector<448x120xbf16>, vector<16x120xf32> -> vector<16x120xf32>
    %103 = arith.addf %98, %102 : vector<16x120xf32>
    %c0_96 = arith.constant 0 : index
    %c0_97 = arith.constant 0 : index
    %104 = vector.load %arg9[%c0_96, %c0_97] : memref<1x120xf32, #tpu.memory_space<vmem>>, vector<1x120xf32>
    %105 = vector.broadcast %104 : vector<1x120xf32> to vector<16x120xf32>
    %106 = arith.addf %103, %105 : vector<16x120xf32>
    %cst_98 = arith.constant 0.000000e+00 : f32
    %107 = vector.broadcast %cst_98 : f32 to vector<16x120xf32>
    %108 = arith.maximumf %106, %107 : vector<16x120xf32>
    %109 = arith.truncf %108 : vector<16x120xf32> to vector<16x120xbf16>
    %c0_99 = arith.constant 0 : index
    %c0_100 = arith.constant 0 : index
    %110 = vector.load %arg10[%c0_99, %c0_100] : memref<120x84xbf16, #tpu.memory_space<vmem>>, vector<120x84xbf16>
    %cst_101 = arith.constant dense<0.000000e+00> : vector<16x84xf32>
    %111 = tpu.matmul %109, %110, %cst_101 {dimension_numbers = #tpu.dot_dimension_numbers<[1], [0], [0], [1], [0, 0, 1, 1], [], []>} : vector<16x120xbf16>, vector<120x84xbf16>, vector<16x84xf32> -> vector<16x84xf32>
    %c0_102 = arith.constant 0 : index
    %c0_103 = arith.constant 0 : index
    %112 = vector.load %arg11[%c0_102, %c0_103] : memref<1x84xf32, #tpu.memory_space<vmem>>, vector<1x84xf32>
    %113 = vector.broadcast %112 : vector<1x84xf32> to vector<16x84xf32>
    %114 = arith.addf %111, %113 : vector<16x84xf32>
    %cst_104 = arith.constant 0.000000e+00 : f32
    %115 = vector.broadcast %cst_104 : f32 to vector<16x84xf32>
    %116 = arith.maximumf %114, %115 : vector<16x84xf32>
    %117 = arith.truncf %116 : vector<16x84xf32> to vector<16x84xbf16>
    %c0_105 = arith.constant 0 : index
    %c0_106 = arith.constant 0 : index
    %118 = vector.load %arg12[%c0_105, %c0_106] : memref<84x128xbf16, #tpu.memory_space<vmem>>, vector<84x128xbf16>
    %cst_107 = arith.constant dense<0.000000e+00> : vector<16x128xf32>
    %119 = tpu.matmul %117, %118, %cst_107 {dimension_numbers = #tpu.dot_dimension_numbers<[1], [0], [0], [1], [0, 0, 1, 1], [], []>} : vector<16x84xbf16>, vector<84x128xbf16>, vector<16x128xf32> -> vector<16x128xf32>
    %c0_108 = arith.constant 0 : index
    %c0_109 = arith.constant 0 : index
    %120 = vector.load %arg13[%c0_108, %c0_109] : memref<1x128xf32, #tpu.memory_space<vmem>>, vector<1x128xf32>
    %121 = vector.broadcast %120 : vector<1x128xf32> to vector<16x128xf32>
    %122 = arith.addf %119, %121 : vector<16x128xf32>
    %c0_110 = arith.constant 0 : index
    %c0_111 = arith.constant 0 : index
    %123 = vector.load %arg14[%c0_110, %c0_111] : memref<16x128xf32, #tpu.memory_space<vmem>>, vector<16x128xf32>
    tpu.vector_store %arg14[%c0_110, %c0_111], %122 {strides = array<i32>} : memref<16x128xf32, #tpu.memory_space<vmem>>, vector<16x128xf32>,
    return
  }
  func.func @transform_0(%arg0: i32) -> (i32, i32) {
    %c0_i32 = arith.constant 0 : i32
    %c0_i32_0 = arith.constant 0 : i32
    return %arg0, %c0_i32 : i32, i32
  }
  func.func @transform_1(%arg0: i32) -> (i32, i32, i32) {
    %c0_i32 = arith.constant 0 : i32
    %c0_i32_0 = arith.constant 0 : i32
    %c0_i32_1 = arith.constant 0 : i32
    %c0_i32_2 = arith.constant 0 : i32
    return %c0_i32, %c0_i32_0, %c0_i32_1 : i32, i32, i32
  }
  func.func @transform_2(%arg0: i32) -> (i32, i32) {
    %c0_i32 = arith.constant 0 : i32
    %c0_i32_0 = arith.constant 0 : i32
    %c0_i32_1 = arith.constant 0 : i32
    return %c0_i32, %c0_i32_0 : i32, i32
  }
  func.func @transform_3(%arg0: i32) -> (i32, i32, i32) {
    %c0_i32 = arith.constant 0 : i32
    %c0_i32_0 = arith.constant 0 : i32
    %c0_i32_1 = arith.constant 0 : i32
    %c0_i32_2 = arith.constant 0 : i32
    return %c0_i32, %c0_i32_0, %c0_i32_1 : i32, i32, i32
  }
  func.func @transform_4(%arg0: i32) -> (i32, i32) {
    %c0_i32 = arith.constant 0 : i32
    %c0_i32_0 = arith.constant 0 : i32
    %c0_i32_1 = arith.constant 0 : i32
    return %c0_i32, %c0_i32_0 : i32, i32
  }
  func.func @transform_5(%arg0: i32) -> (i32, i32, i32) {
    %c0_i32 = arith.constant 0 : i32
    %c0_i32_0 = arith.constant 0 : i32
    %c0_i32_1 = arith.constant 0 : i32
    %c0_i32_2 = arith.constant 0 : i32
    return %c0_i32, %c0_i32_0, %c0_i32_1 : i32, i32, i32
  }
  func.func @transform_6(%arg0: i32) -> (i32, i32) {
    %c0_i32 = arith.constant 0 : i32
    %c0_i32_0 = arith.constant 0 : i32
    %c0_i32_1 = arith.constant 0 : i32
    return %c0_i32, %c0_i32_0 : i32, i32
  }
  func.func @transform_7(%arg0: i32) -> (i32, i32, i32) {
    %c0_i32 = arith.constant 0 : i32
    %c0_i32_0 = arith.constant 0 : i32
    %c0_i32_1 = arith.constant 0 : i32
    %c0_i32_2 = arith.constant 0 : i32
    return %c0_i32, %c0_i32_0, %c0_i32_1 : i32, i32, i32
  }
  func.func @transform_8(%arg0: i32) -> (i32, i32) {
    %c0_i32 = arith.constant 0 : i32
    %c0_i32_0 = arith.constant 0 : i32
    %c0_i32_1 = arith.constant 0 : i32
    return %c0_i32, %c0_i32_0 : i32, i32
  }
  func.func @transform_9(%arg0: i32) -> (i32, i32) {
    %c0_i32 = arith.constant 0 : i32
    %c0_i32_0 = arith.constant 0 : i32
    %c0_i32_1 = arith.constant 0 : i32
    return %c0_i32, %c0_i32_0 : i32, i32
  }
  func.func @transform_10(%arg0: i32) -> (i32, i32) {
    %c0_i32 = arith.constant 0 : i32
    %c0_i32_0 = arith.constant 0 : i32
    %c0_i32_1 = arith.constant 0 : i32
    return %c0_i32, %c0_i32_0 : i32, i32
  }
  func.func @transform_11(%arg0: i32) -> (i32, i32) {
    %c0_i32 = arith.constant 0 : i32
    %c0_i32_0 = arith.constant 0 : i32
    %c0_i32_1 = arith.constant 0 : i32
    return %c0_i32, %c0_i32_0 : i32, i32
  }
  func.func @transform_12(%arg0: i32) -> (i32, i32) {
    %c0_i32 = arith.constant 0 : i32
    %c0_i32_0 = arith.constant 0 : i32
    %c0_i32_1 = arith.constant 0 : i32
    return %c0_i32, %c0_i32_0 : i32, i32
  }
  func.func @transform_13(%arg0: i32) -> (i32, i32) {
    %c0_i32 = arith.constant 0 : i32
    %c0_i32_0 = arith.constant 0 : i32
    return %arg0, %c0_i32 : i32, i32
  }
}

</mosaic_0001>

<bundles_post_ra>
// kernel: net_forward.1
= control target key start
LH: loop header
LB: loop body
LE: loop exit
PB: predicated region body
PF: predicated region fallthrough
CT: control target
= control target key end

     0   :  { %18 = vsyncpa [#allocation5], 0  ;;  %s14097_s0 = inlined_call_operand.vmem [shape: bf16[144,128], index: 0, kind: input, shape index: {}]   ;;  %s14098_s1 = inlined_call_operand.vmem [shape: bf16[3,128,224], index: 1, kind: input, shape index: {}]   ;;  %s14099_s2 = inlined_call_operand.vmem [shape: f32[1,224], index: 2, kind: input, shape index: {}]   ;;  %s14100_s3 = inlined_call_operand.hbm [shape: bf16[3,224,448], index: 3, kind: input, shape index: {}]   ;;  %s14101_s4 = inlined_call_operand.vmem [shape: f32[1,448], index: 4, kind: input, shape index: {}]   ;;  %s14102_s5 = inlined_call_operand.vmem [shape: bf16[3,448,448], index: 5, kind: input, shape index: {}]   ;;  %s14103_s6 = inlined_call_operand.vmem [shape: f32[1,448], index: 6, kind: input, shape index: {}]   ;;  %s14104_s7 = inlined_call_operand.hbm [shape: bf16[7,448,120], index: 7, kind: input, shape index: {}]   ;;  %s14105_s8 = inlined_call_operand.vmem [shape: f32[1,120], index: 8, kind: input, shape index: {}]   ;;  %s14106_s9 = inlined_call_operand.vmem [shape: bf16[120,84], index: 9, kind: input, shape index: {}]   ;;  %s14107_s10 = inlined_call_operand.vmem [shape: f32[1,84], index: 10, kind: input, shape index: {}]   ;;  %s14108_s11 = inlined_call_operand.vmem [shape: bf16[84,128], index: 11, kind: input, shape index: {}]   ;;  %s14109_s12 = inlined_call_operand.vmem [shape: f32[1,128], index: 12, kind: input, shape index: {}]   ;;  %s14110_s13 = inlined_call_operand.vmem [shape: f32[16,128], index: 13, kind: output, shape index: {}]  }
   0x1   :  { %19 = vsyncpa [#allocation7], 0  ;;  %s11788_s25 = smov [#allocation4]   ;;  %s11740_s29 = scalar_lea.hbm %s14100_s3, 21504 }
   0x2   :  { %s31_s26 = sshll.u32 %s11788_s25, 4  ;;  %p11741_p0 = scmp.ne.s32.totalorder %s14100_s3, %s11740_s29  ;;  %s32_s26 = int_to_ptr.vmem [resolvable:$true] %s31_s26 }
   0x3   :  { %p11744_p1 = scmp.lt.u32.totalorder %s11740_s29, %s14100_s3 }
   0x5   :  { %p11746_p2 = pnand %p11744_p1, %p11741_p0 }
   0x7   :  { %11749 = shalt.err (!%p11746_p2)
}
   0x8   :  { %s11750_s17 = scalar_lea.vmem %s32_s26, 21504  ;;  %p11755_p4 = scmp.lt.s32.totalorder %s32_s26, %s32_s26 }
   0x9   :  { %p11751_p3 = scmp.ne.s32.totalorder %s32_s26, %s11750_s17  ;;  %p11756_p5 = scmp.lt.s32.totalorder %s11750_s17, %s11750_s17 }
   0xb   :  { %p11757_p6 = por %p11756_p5, %p11755_p4 }
   0xd   :  { %p11758_p7 = pnand %p11757_p6, %p11751_p3 }
   0xf   :  { %11761 = shalt.err (!%p11758_p7)
}
  0x10   :  { %s11789_s18 = smov 256   ;;  %s11790_s19 = smov 16  }
  0x11   :  { %37 = dma.hbm_to_vmem [thread:$0]  %s14100_s3, 21504, %s32_s26, [#allocation5], %s11789_s18, %s11789_s18, %s11790_s19  }
  0x12   :  { %s11791_s22 = smov [#allocation6]   ;;  %s11762_s27 = scalar_lea.hbm %s14104_s7, 25088 }
  0x13   :  { %s49_s23 = sshll.u32 %s11791_s22, 4  ;;  %p11763_p8 = scmp.ne.s32.totalorder %s14104_s7, %s11762_s27  ;;  %s50_s23 = int_to_ptr.vmem [resolvable:$true] %s49_s23 }
  0x14   :  { %p11766_p9 = scmp.lt.u32.totalorder %s11762_s27, %s14104_s7 }
  0x16   :  { %p11768_p10 = pnand %p11766_p9, %p11763_p8 }
  0x18   :  { %11771 = shalt.err (!%p11768_p10)
}
  0x19   :  { %s11772_s15 = scalar_lea.vmem %s50_s23, 25088  ;;  %p11777_p12 = scmp.lt.s32.totalorder %s50_s23, %s50_s23 }
  0x1a   :  { %p11773_p11 = scmp.ne.s32.totalorder %s50_s23, %s11772_s15  ;;  %p11778_p13 = scmp.lt.s32.totalorder %s11772_s15, %s11772_s15 }
  0x1c   :  { %p11779_p0 = por %p11778_p13, %p11777_p12 }
  0x1e   :  { %p11780_p1 = pnand %p11779_p0, %p11773_p11 }
  0x20   :  { %11783 = shalt.err (!%p11780_p1)
}
  0x21   :  { %s11792_s3 = smov 64   ;;  %s11793_s26 = smov 4  }
  0x22   :  { %55 = dma.hbm_to_vmem [thread:$0]  %s14104_s7, 25088, %s50_s23, [#allocation7], %s11792_s3, %s11792_s3, %s11793_s26  }
  0x23   :  { %11784 = dma.done.wait [#allocation5], 21504  }
  0x24   :  { %11785 = vsyncadd [#allocation5], 4294945792 }
  0x25   :  { %11786 = dma.done.wait [#allocation7], 25088  }
  0x26   :  { %11787 = vsyncadd [#allocation7], 4294942208  ;;  %v11794_v0 = vmov 0   ;;  %v10666_v1 = vld [vmem:[%s14098_s1 + $0x84] ss:$8 sps:$4 sm:$0xff]   ;;  %v11966_v23 = vld [vmem:[%s14097_s0 + $0x10] sm:$0xff]  }
  0x27   :  { %290 = vmatprep.mubr.bf16.mxu0 %v11794_v0  ;;  %73 = vst [vmem:[#allocation2] sm:$0xff] %v11794_v0  ;;  %v10668_v2 = vld [vmem:[%s14098_s1 + $0x80] ss:$8 sps:$4 sm:$0xff]   ;;  %258 = vmatprep.subr.bf16.mxu0 %v10666_v1  ;;  %v10669_v3 = vld [vmem:[%s14098_s1 + $0x94] ss:$8 sps:$4 sm:$0xff]   ;;  %vm74_vm0 = vcmask 785408  }
  0x28   :  { %259 = vmatpush1.bf16.msra.mxu0 %v10668_v2  ;;  %v10671_v4 = vld [vmem:[%s14098_s1 + $0x90] ss:$8 sps:$4 sm:$0xff]   ;;  %v10672_v5 = vld [vmem:[%s14098_s1 + $0xa4] ss:$8 sps:$4 sm:$0xff]   ;;  %v10674_v6 = vld [vmem:[%s14098_s1 + $0xa0] ss:$8 sps:$4 sm:$0xff]  }
  0x29   :  { %260 = vmatprep.subr.bf16.mxu0 %v10669_v3  ;;  %v10675_v7 = vld [vmem:[%s14098_s1 + $0xb4] ss:$8 sps:$4 sm:$0xff]   ;;  %v10677_v8 = vld [vmem:[%s14098_s1 + $0xb0] ss:$8 sps:$4 sm:$0xff]   ;;  %v10678_v9 = vld [vmem:[%s14098_s1 + $0xc4] ss:$8 sps:$4 sm:$0xff]  }
  0x2a   :  { %v10680_v10 = vld [vmem:[%s14098_s1 + $0xc0] ss:$8 sps:$4 sm:$0xff]   ;;  %v10681_v11 = vld [vmem:[%s14098_s1 + $0xd4] ss:$8 sps:$4 sm:$0xff]   ;;  %v10683_v12 = vld [vmem:[%s14098_s1 + $0xd0] ss:$8 sps:$4 sm:$0xff]  }
  0x2b   :  { %v10684_v13 = vld [vmem:[%s14098_s1 + $0xe4] ss:$8 sps:$4 sm:$0xff]   ;;  %v10686_v14 = vld [vmem:[%s14098_s1 + $0xe0] ss:$8 sps:$4 sm:$0xff]   ;;  %v10687_v15 = vld [vmem:[%s14098_s1 + $0xf4] ss:$8 sps:$4 sm:$0xff]  }
  0x2c   :  { %261 = vmatpush1.bf16.msra.mxu0 %v10671_v4  ;;  %v10689_v16 = vld [vmem:[%s14098_s1 + $0xf0] ss:$8 sps:$4 sm:$0xff]   ;;  %v10693_v17 = vld [vmem:[%s14098_s1 + $0x4] ss:$8 sps:$4 sm:$0xff]   ;;  %v10691_v19 = vld [vmem:[%s14098_s1] ss:$8 sps:$4 sm:$0xff]  }
  0x2d   :  { %262 = vmatprep.subr.bf16.mxu0 %v10672_v5  ;;  %v11947_v18 = vld [vmem:[%s14097_s0 + $0x8] sm:$0xff]   ;;  %v10696_v20 = vld [vmem:[%s14098_s1 + $0x14] ss:$8 sps:$4 sm:$0xff]   ;;  %v10694_v21 = vld [vmem:[%s14098_s1 + $0x10] ss:$8 sps:$4 sm:$0xff]   ;;  %vm81_vm1 = vcmask 523264  }
  0x2e   :  { %v10700_v22 = vld [vmem:[%s14098_s1 + $0x24] ss:$8 sps:$4 sm:$0xff]   ;;  %v10698_v24 = vld [vmem:[%s14098_s1 + $0x20] ss:$8 sps:$4 sm:$0xff]   ;;  %v10704_v25 = vld [vmem:[%s14098_s1 + $0x34] ss:$8 sps:$4 sm:$0xff]  }
  0x2f   :  { %v10702_v26 = vld [vmem:[%s14098_s1 + $0x30] ss:$8 sps:$4 sm:$0xff]   ;;  %v10708_v28 = vld [vmem:[%s14098_s1 + $0x44] ss:$8 sps:$4 sm:$0xff]   ;;  %v10706_v29 = vld [vmem:[%s14098_s1 + $0x40] ss:$8 sps:$4 sm:$0xff]  }
  0x30   :  { %263 = vmatpush1.bf16.msra.mxu0 %v10674_v6  ;;  %v11982_v27 = vld [vmem:[%s14097_s0 + $0x18] sm:$0xff]   ;;  %v10716_v32 = vld [vmem:[%s14098_s1 + $0x64] ss:$8 sps:$4 sm:$0xff]   ;;  %v10714_v34 = vld [vmem:[%s14098_s1 + $0x60] ss:$8 sps:$4 sm:$0xff]   ;;  %vm8718_vm2 = vcmask 1043456  }
  0x31   :  { %264 = vmatprep.subr.bf16.mxu0 %v10675_v7  ;;  %v10712_v30 = vld [vmem:[%s14098_s1 + $0x54] ss:$8 sps:$4 sm:$0xff]   ;;  %v10710_v31 = vld [vmem:[%s14098_s1 + $0x50] ss:$8 sps:$4 sm:$0xff]   ;;  %v12004_v33 = vld [vmem:[%s14097_s0 + $0x20] sm:$0xff]   ;;  %vm11796_vm3 = vmmov 0  }
  0x32   :  { %v10720_v35 = vld [vmem:[%s14098_s1 + $0x74] ss:$8 sps:$4 sm:$0xff]   ;;  %v10718_v36 = vld [vmem:[%s14098_s1 + $0x70] ss:$8 sps:$4 sm:$0xff]   ;;  %v10724_v37 = vld [vmem:[%s14098_s1 + $0x104] ss:$8 sps:$4 sm:$0xff]  }
  0x33   :  { %v12023_v38 = vld [vmem:[%s14097_s0 + $0x28] sm:$0xff]   ;;  %v10753_v39 = vld [vmem:[#allocation4 + $0x1c4] ss:$16 sps:$4 sm:$0xff]   ;;  %v10755_v40 = vld [vmem:[#allocation4 + $0x1c0] ss:$16 sps:$4 sm:$0xff]   ;;  %vm8714_vm4 = vcmask 982016  }
  0x34   :  { %265 = vmatpush1.bf16.msra.mxu0 %v10677_v8  ;;  %v10756_v41 = vld [vmem:[#allocation4 + $0x1e4] ss:$16 sps:$4 sm:$0xff]   ;;  %1360 = vmatprep.subr.bf16.mxu1 %v10753_v39  ;;  %v10758_v42 = vld [vmem:[#allocation4 + $0x1e0] ss:$16 sps:$4 sm:$0xff]   ;;  %v10717_v48 = vld [vmem:[%s14097_s0 + $0x38] sm:$0xff]   ;;  %vm8821_vm5 = vcmask 1041408  }
  0x35   :  { %266 = vmatprep.subr.bf16.mxu0 %v10678_v9  ;;  %1361 = vmatpush1.bf16.msra.mxu1 %v10755_v40  ;;  %v12030_v43 = vld [vmem:[%s14097_s0 + $0x30] sm:$0xff]   ;;  %v10721_v53 = vld [vmem:[%s14097_s0] sm:$0xff]   ;;  %vm8817_vm6 = vcmask 687104  }
  0x36   :  { %1362 = vmatprep.subr.bf16.mxu1 %v10756_v41  ;;  %v10759_v44 = vld [vmem:[#allocation4 + $0x204] ss:$16 sps:$4 sm:$0xff]   ;;  %v10761_v45 = vld [vmem:[#allocation4 + $0x200] ss:$16 sps:$4 sm:$0xff]  }
  0x37   :  { %v10762_v46 = vld [vmem:[#allocation4 + $0x224] ss:$16 sps:$4 sm:$0xff]   ;;  %v10764_v47 = vld [vmem:[#allocation4 + $0x220] ss:$16 sps:$4 sm:$0xff]  }
  0x38   :  { %267 = vmatpush1.bf16.msra.mxu0 %v10680_v10  ;;  %v10765_v49 = vld [vmem:[#allocation4 + $0x244] ss:$16 sps:$4 sm:$0xff]   ;;  %v10767_v50 = vld [vmem:[#allocation4 + $0x240] ss:$16 sps:$4 sm:$0xff]  }
  0x39   :  { %268 = vmatprep.subr.bf16.mxu0 %v10681_v11  ;;  %1363 = vmatpush1.bf16.msra.mxu1 %v10758_v42  ;;  %v10768_v51 = vld [vmem:[#allocation4 + $0x264] ss:$16 sps:$4 sm:$0xff]   ;;  %v10770_v52 = vld [vmem:[#allocation4 + $0x260] ss:$16 sps:$4 sm:$0xff]  }
  0x3a   :  { %1364 = vmatprep.subr.bf16.mxu1 %v10759_v44  ;;  %v10771_v54 = vld [vmem:[#allocation4 + $0x284] ss:$16 sps:$4 sm:$0xff]   ;;  %v10722_v55 = vld [vmem:[%s14098_s1 + $0x100] ss:$8 sps:$4 sm:$0xff]   ;;  %v10725_v59 = vld [vmem:[%s14098_s1 + $0x110] ss:$8 sps:$4 sm:$0xff]  }
  0x3b   :  { %v10727_v56 = vld [vmem:[%s14098_s1 + $0x114] ss:$8 sps:$4 sm:$0xff]   ;;  %v10773_v57 = vld [vmem:[#allocation4 + $0x280] ss:$16 sps:$4 sm:$0xff]   ;;  %v10730_v60 = vld [vmem:[%s14098_s1 + $0x124] ss:$8 sps:$4 sm:$0xff]  }
  0x3c   :  { %269 = vmatpush1.bf16.msra.mxu0 %v10683_v12  ;;  %v10774_v58 = vld [vmem:[#allocation4 + $0x2a4] ss:$16 sps:$4 sm:$0xff]   ;;  %v10776_v61 = vld [vmem:[#allocation4 + $0x2a0] ss:$16 sps:$4 sm:$0xff]  }
  0x3d   :  { %270 = vmatprep.subr.bf16.mxu0 %v10684_v13  ;;  %1365 = vmatpush1.bf16.msra.mxu1 %v10761_v45  ;;  %v10777_v62 = vld [vmem:[#allocation4 + $0x2c4] ss:$16 sps:$4 sm:$0xff]   ;;  %v10728_v63 = vld [vmem:[%s14098_s1 + $0x120] ss:$8 sps:$4 sm:$0xff]   ;;  %v10731_v4 = vld [vmem:[%s14098_s1 + $0x130] ss:$8 sps:$4 sm:$0xff]  }
  0x3e   :  { %1366 = vmatprep.subr.bf16.mxu1 %v10762_v46  ;;  %v10733_v1 = vld [vmem:[%s14098_s1 + $0x134] ss:$8 sps:$4 sm:$0xff]   ;;  %v10779_v2 = vld [vmem:[#allocation4 + $0x2c0] ss:$16 sps:$4 sm:$0xff]   ;;  %v10736_v5 = vld [vmem:[%s14098_s1 + $0x144] ss:$8 sps:$4 sm:$0xff]  }
  0x3f   :  { %v10780_v3 = vld [vmem:[#allocation4 + $0x2e4] ss:$16 sps:$4 sm:$0xff]   ;;  %v10734_v6 = vld [vmem:[%s14098_s1 + $0x140] ss:$8 sps:$4 sm:$0xff]   ;;  %v10737_v8 = vld [vmem:[%s14098_s1 + $0x150] ss:$8 sps:$4 sm:$0xff]  }
  0x40   :  { %271 = vmatpush1.bf16.msra.mxu0 %v10686_v14  ;;  %v10739_v7 = vld [vmem:[%s14098_s1 + $0x154] ss:$8 sps:$4 sm:$0xff]   ;;  %v10742_v9 = vld [vmem:[%s14098_s1 + $0x164] ss:$8 sps:$4 sm:$0xff]   ;;  %v10740_v10 = vld [vmem:[%s14098_s1 + $0x160] ss:$8 sps:$4 sm:$0xff]  }
  0x41   :  { %272 = vmatprep.subr.bf16.mxu0 %v10687_v15  ;;  %1367 = vmatpush1.bf16.msra.mxu1 %v10764_v47  ;;  %v10745_v11 = vld [vmem:[%s14098_s1 + $0x174] ss:$8 sps:$4 sm:$0xff]   ;;  %v10743_v12 = vld [vmem:[%s14098_s1 + $0x170] ss:$8 sps:$4 sm:$0xff]   ;;  %v11719_v13 = vld [vmem:[#allocation2] sm:$0xff] }
  0x42   :  { %1368 = vmatprep.subr.bf16.mxu1 %v10765_v49  ;;  %v10746_v14 = vld [vmem:[%s14097_s0 + $0x10] sm:$0xff]   ;;  %v10747_v15 = vld [vmem:[%s14097_s0 + $0x18] sm:$0xff]   ;;  %75 = vst.msk [vmem:[#allocation2 + $0x8] sm:$0xff] %vm74_vm0, %v11719_v13  ;;  %77 = vst.msk [vmem:[#allocation2 + $0x88] sm:$0xff] %vm74_vm0, %v11719_v13 }
  0x44   :  { %273 = vmatpush1.bf16.msra.mxu0 %v10689_v16  ;;  %v10749_v16 = vld [vmem:[%s14097_s0 + $0x28] sm:$0xff]  }
  0x45   :  { %447 = vmatprep.subr.bf16.mxu0 %v10693_v17  ;;  %1369 = vmatpush1.bf16.msra.mxu1 %v10767_v50  ;;  %v10750_v17 = vld [vmem:[%s14097_s0 + $0x30] sm:$0xff]  }
  0x46   :  { %1370 = vmatprep.subr.bf16.mxu1 %v10768_v51 }
  0x47   :  { %291 = vmatmul.mubr.bf16.vlgmr.msra.gmra.mrb[0].mxu0 %v11947_v18 }
  0x48   :  { %448 = vmatpush1.bf16.msra.mxu0 %v10691_v19  ;;  %300 = vmatprep.mubr.bf16.mxu0 %v11794_v0  ;;  %v10752_v19 = vld [vmem:[%s14097_s0 + $0x40] sm:$0xff]  }
  0x49   :  { %449 = vmatprep.subr.bf16.mxu0 %v10696_v20  ;;  %1371 = vmatpush1.bf16.msra.mxu1 %v10770_v52  ;;  %v10782_v20 = vld [vmem:[#allocation4 + $0x2e0] ss:$16 sps:$4 sm:$0xff]  }
  0x4a   :  { %1372 = vmatprep.subr.bf16.mxu1 %v10771_v54 }
  0x4c   :  { %450 = vmatpush1.bf16.msra.mxu0 %v10694_v21  ;;  %v10783_v21 = vld [vmem:[#allocation4 + $0x304] ss:$16 sps:$4 sm:$0xff]  }
  0x4d   :  { %451 = vmatprep.subr.bf16.mxu0 %v10700_v22  ;;  %1373 = vmatpush1.bf16.msra.mxu1 %v10773_v57  ;;  %v10785_v22 = vld [vmem:[#allocation4 + $0x300] ss:$16 sps:$4 sm:$0xff]  }
  0x4e   :  { %1374 = vmatprep.subr.bf16.mxu1 %v10774_v58 }
  0x4f   :  { %301 = vmatmul.mubr.bf16.gmra.mrb[4].mxu0 %v11966_v23 }
  0x50   :  { %310 = vmatprep.mubr.bf16.mxu0 %v11794_v0  ;;  %452 = vmatpush1.bf16.msra.mxu0 %v10698_v24  ;;  %v10788_v24 = vld [vmem:[#allocation4 + $0x320] ss:$16 sps:$4 sm:$0xff]  }
  0x51   :  { %453 = vmatprep.subr.bf16.mxu0 %v10704_v25  ;;  %1375 = vmatpush1.bf16.msra.mxu1 %v10776_v61  ;;  %v10789_v25 = vld [vmem:[#allocation4 + $0x344] ss:$16 sps:$4 sm:$0xff]  }
  0x52   :  { %1376 = vmatprep.subr.bf16.mxu1 %v10777_v62 }
  0x54   :  { %454 = vmatpush1.bf16.msra.mxu0 %v10702_v26  ;;  %v10791_v26 = vld [vmem:[#allocation4 + $0x340] ss:$16 sps:$4 sm:$0xff]  }
  0x55   :  { %455 = vmatprep.subr.bf16.mxu0 %v10708_v28  ;;  %1377 = vmatpush1.bf16.msra.mxu1 %v10779_v2  ;;  %v10794_v28 = vld [vmem:[#allocation4 + $0x360] ss:$16 sps:$4 sm:$0xff]  }
  0x56   :  { %1378 = vmatprep.subr.bf16.mxu1 %v10780_v3 }
  0x57   :  { %311 = vmatmul.mubr.bf16.gmra.mrb[8].mxu0 %v11982_v27 }
  0x58   :  { %320 = vmatprep.mubr.bf16.mxu0 %v11794_v0  ;;  %456 = vmatpush1.bf16.msra.mxu0 %v10706_v29  ;;  %v10797_v29 = vld [vmem:[#allocation4 + $0x1cc] ss:$16 sps:$4 sm:$0xff]  }
  0x59   :  { %457 = vmatprep.subr.bf16.mxu0 %v10712_v30  ;;  %1379 = vmatpush1.bf16.msra.mxu1 %v10782_v20  ;;  %v836_v30 = vlaneseq }
  0x5a   :  { %1380 = vmatprep.subr.bf16.mxu1 %v10783_v21 }
  0x5c   :  { %458 = vmatpush1.bf16.msra.mxu0 %v10710_v31  ;;  %v12121_v31 = vshrl.u32 %v836_v30, 7 }
  0x5d   :  { %459 = vmatprep.subr.bf16.mxu0 %v10716_v32  ;;  %1381 = vmatpush1.bf16.msra.mxu1 %v10785_v22 }
  0x5e   :  { %v12124_v32 = vsub.s32 0, %v12121_v31 }
  0x5f   :  { %321 = vmatmul.mubr.bf16.gmra.mrb[12].mxu0 %v12004_v33 }
  0x60   :  { %330 = vmatprep.mubr.bf16.mxu0 %v11794_v0  ;;  %460 = vmatpush1.bf16.msra.mxu0 %v10714_v34  ;;  %v12130_v34 = vsub.s32 1, %v12121_v31 }
  0x61   :  { %461 = vmatprep.subr.bf16.mxu0 %v10720_v35 }
  0x64   :  { %462 = vmatpush1.bf16.msra.mxu0 %v10718_v36 }
  0x65   :  { %703 = vmatprep.subr.bf16.mxu0 %v10724_v37 }
  0x67   :  { %331 = vmatmul.mubr.bf16.gmra.mrb[16].mxu0 %v12023_v38 }
  0x68   :  { %340 = vmatprep.mubr.bf16.mxu0 %v11794_v0 }
  0x6f   :  { %341 = vmatmul.mubr.bf16.gmra.mrb[20].mxu0 %v12030_v43 }
  0x70   :  { %350 = vmatprep.mubr.bf16.mxu0 %v11794_v0 }
  0x77   :  { %351 = vmatmul.mubr.bf16.gmra.mrb[24].mxu0 %v10717_v48 }
  0x78   :  { %479 = vmatprep.mubr.bf16.mxu0 %v11794_v0 }
  0x7f   :  { %480 = vmatmul.mubr.bf16.vlgmr.msra.gmra.mrb[0].mxu0 %v10721_v53 }
  0x80   :  { %704 = vmatpush1.bf16.msra.mxu0 %v10722_v55  ;;  %489 = vmatprep.mubr.bf16.mxu0 %v11794_v0 }
  0x81   :  { %705 = vmatprep.subr.bf16.mxu0 %v10727_v56 }
  0x84   :  { %706 = vmatpush1.bf16.msra.mxu0 %v10725_v59 }
  0x85   :  { %707 = vmatprep.subr.bf16.mxu0 %v10730_v60 }
  0x87   :  { %490 = vmatmul.mubr.bf16.gmra.mrb[4].mxu0 %v11947_v18  ;;  %v10751_v18 = vld [vmem:[%s14097_s0 + $0x38] sm:$0xff]  }
  0x88   :  { %499 = vmatprep.mubr.bf16.mxu0 %v11794_v0  ;;  %708 = vmatpush1.bf16.msra.mxu0 %v10728_v63  ;;  %v10795_v63 = vld [vmem:[#allocation4 + $0x1c8] ss:$16 sps:$4 sm:$0xff]  }
  0x89   :  { %709 = vmatprep.subr.bf16.mxu0 %v10733_v1 }
  0x8c   :  { %710 = vmatpush1.bf16.msra.mxu0 %v10731_v4 }
  0x8d   :  { %711 = vmatprep.subr.bf16.mxu0 %v10736_v5 }
  0x8f   :  { %500 = vmatmul.mubr.bf16.gmra.mrb[8].mxu0 %v11966_v23  ;;  %v10786_v23 = vld [vmem:[#allocation4 + $0x324] ss:$16 sps:$4 sm:$0xff]  }
  0x90   :  { %509 = vmatprep.mubr.bf16.mxu0 %v11794_v0  ;;  %712 = vmatpush1.bf16.msra.mxu0 %v10734_v6 }
  0x91   :  { %713 = vmatprep.subr.bf16.mxu0 %v10739_v7  ;;  %1382 = vmatprep.subr.bf16.mxu1 %v10786_v23  ;;  %v10800_v7 = vld [vmem:[#allocation4 + $0x1ec] ss:$16 sps:$4 sm:$0xff]  }
  0x92   :  { %1383 = vmatpush1.bf16.msra.mxu1 %v10788_v24 }
  0x93   :  { %1384 = vmatprep.subr.bf16.mxu1 %v10789_v25  ;;  %v10806_v25 = vld [vmem:[#allocation4 + $0x22c] ss:$16 sps:$4 sm:$0xff]  }
  0x94   :  { %714 = vmatpush1.bf16.msra.mxu0 %v10737_v8 }
  0x95   :  { %715 = vmatprep.subr.bf16.mxu0 %v10742_v9 }
  0x96   :  { %1385 = vmatpush1.bf16.msra.mxu1 %v10791_v26 }
  0x97   :  { %510 = vmatmul.mubr.bf16.gmra.mrb[12].mxu0 %v11982_v27  ;;  %v10792_v27 = vld [vmem:[#allocation4 + $0x364] ss:$16 sps:$4 sm:$0xff]  }
  0x98   :  { %519 = vmatprep.mubr.bf16.mxu0 %v11794_v0  ;;  %716 = vmatpush1.bf16.msra.mxu0 %v10740_v10 }
  0x99   :  { %717 = vmatprep.subr.bf16.mxu0 %v10745_v11  ;;  %1386 = vmatprep.subr.bf16.mxu1 %v10792_v27 }
  0x9a   :  { %1387 = vmatpush1.bf16.msra.mxu1 %v10794_v28 }
  0x9b   :  { %1463 = vmatprep.subr.bf16.mxu1 %v10797_v29 }
  0x9c   :  { %718 = vmatpush1.bf16.msra.mxu0 %v10743_v12 }
  0x9f   :  { %520 = vmatmul.mubr.bf16.gmra.mrb[16].mxu0 %v12004_v33  ;;  %v834_v33 = vld [vmem:[%s14099_s2] sm:$0x3] }
  0xa0   :  { %529 = vmatprep.mubr.bf16.mxu0 %v11794_v0  ;;  %v12133_v35 = vrot.slane %v834_v33, %v12124_v32  ;;  %v12136_v36 = vrot.slane %v834_v33, %v12130_v34  ;;  %v10804_v33 = vld [vmem:[#allocation4 + $0x228] ss:$16 sps:$4 sm:$0xff]  }
  0xa7   :  { %530 = vmatmul.mubr.bf16.gmra.mrb[20].mxu0 %v12023_v38 }
  0xa8   :  { %539 = vmatprep.mubr.bf16.mxu0 %v11794_v0  ;;  %v10748_v0 = vld [vmem:[%s14097_s0 + $0x20] sm:$0xff]  }
  0xaf   :  { %540 = vmatmul.mubr.bf16.gmra.mrb[24].mxu0 %v12030_v43 }
  0xb0   :  { %735 = vmatprep.mubr.bf16.mxu0 %v11719_v13 }
  0xb7   :  { %736 = vmatmul.mubr.bf16.vlgmr.msra.gmra.mrb[0].mxu0 %v10746_v14  ;;  %v10803_v14 = vld [vmem:[#allocation4 + $0x20c] ss:$16 sps:$4 sm:$0xff]  }
  0xb8   :  { %745 = vmatprep.mubr.bf16.mxu0 %v11719_v13 }
  0xbf   :  { %746 = vmatmul.mubr.bf16.gmra.mrb[4].mxu0 %v10747_v15 }
  0xc0   :  { %755 = vmatprep.mubr.bf16.mxu0 %v11719_v13 }
  0xc7   :  { %756 = vmatmul.mubr.bf16.gmra.mrb[8].mxu0 %v10748_v0 }
  0xc8   :  { %765 = vmatprep.mubr.bf16.mxu0 %v11719_v13 }
  0xcf   :  { %766 = vmatmul.mubr.bf16.gmra.mrb[12].mxu0 %v10749_v16 }
  0xd0   :  { %775 = vmatprep.mubr.bf16.mxu0 %v11719_v13 }
  0xd7   :  { %776 = vmatmul.mubr.bf16.gmra.mrb[16].mxu0 %v10750_v17 }
  0xd8   :  { %785 = vmatprep.mubr.bf16.mxu0 %v11719_v13 }
  0xdf   :  { %786 = vmatmul.mubr.bf16.gmra.mrb[20].mxu0 %v10751_v18  ;;  %v10801_v18 = vld [vmem:[#allocation4 + $0x208] ss:$16 sps:$4 sm:$0xff]  }
  0xe0   :  { %795 = vmatprep.mubr.bf16.mxu0 %v11719_v13  ;;  %v10798_v13 = vld [vmem:[#allocation4 + $0x1e8] ss:$16 sps:$4 sm:$0xff]  }
  0xe7   :  { %796 = vmatmul.mubr.bf16.gmra.mrb[24].mxu0 %v10752_v19 }
 0x18a   :  { %v737_v37 = vpop.f32.mrb[0].mxu0 }
 0x18b   :  { %v846_v38 = vadd.f32 %v12133_v35, %v737_v37  ;;  %v739_v39 = vpop.f32.mrb[1].mxu0  ;;  %v10809_v37 = vld [vmem:[#allocation4 + $0x24c] ss:$16 sps:$4 sm:$0xff]  }
 0x18c   :  { %v847_v40 = vadd.f32 %v12136_v36, %v739_v39  ;;  %v741_v41 = vpop.f32.mrb[2].mxu0 }
 0x18d   :  { %v848_v42 = vadd.f32 %v12133_v35, %v741_v41  ;;  %v743_v43 = vpop.f32.mrb[3].mxu0  ;;  %v874_v45 = vmax.f32 %v846_v38, 0.0 }
 0x18e   :  { %v849_v44 = vadd.f32 %v12136_v36, %v743_v43  ;;  %v875_v47 = vmax.f32 %v847_v40, 0.0 }
 0x18f   :  { %v876_v46 = vmax.f32 %v848_v42, 0.0  ;;  %v10807_v42 = vld [vmem:[#allocation4 + $0x248] ss:$16 sps:$4 sm:$0xff]  }
 0x190   :  { %v877_v48 = vmax.f32 %v849_v44, 0.0 }
 0x191   :  { %v12142_v49 = vpack.c.bf16 %v876_v46, %v874_v45 }
 0x192   :  { %v903_v50 = vpack.c.bf16 %v877_v48, %v875_v47  ;;  %v747_v51 = vpop.f32.mrb[4].mxu0 }
 0x193   :  { %v850_v52 = vadd.f32 %v12133_v35, %v747_v51  ;;  %v749_v53 = vpop.f32.mrb[5].mxu0 }
 0x194   :  { %917 = vst.msk [vmem:[#allocation2 + $0x18] sm:$0xff] %vm74_vm0, %v903_v50  ;;  %v851_v54 = vadd.f32 %v12136_v36, %v749_v53  ;;  %v751_v55 = vpop.f32.mrb[6].mxu0  ;;  %v10812_v50 = vld [vmem:[#allocation4 + $0x26c] ss:$16 sps:$4 sm:$0xff]  }
 0x195   :  { %v852_v56 = vadd.f32 %v12133_v35, %v751_v55  ;;  %v753_v57 = vpop.f32.mrb[7].mxu0  ;;  %v878_v59 = vmax.f32 %v850_v52, 0.0 }
 0x196   :  { %v853_v58 = vadd.f32 %v12136_v36, %v753_v57  ;;  %v879_v61 = vmax.f32 %v851_v54, 0.0  ;;  %v10815_v57 = vld [vmem:[#allocation4 + $0x28c] ss:$16 sps:$4 sm:$0xff]  }
 0x197   :  { %v880_v60 = vmax.f32 %v852_v56, 0.0  ;;  %v10810_v56 = vld [vmem:[#allocation4 + $0x268] ss:$16 sps:$4 sm:$0xff]  }
 0x198   :  { %v881_v62 = vmax.f32 %v853_v58, 0.0 }
 0x199   :  { %v12149_v1 = vpack.c.bf16 %v880_v60, %v878_v59 }
 0x19a   :  { %v905_v2 = vpack.c.bf16 %v881_v62, %v879_v61  ;;  %v757_v3 = vpop.f32.mrb[8].mxu0  ;;  %v10813_v62 = vld [vmem:[#allocation4 + $0x288] ss:$16 sps:$4 sm:$0xff]  }
 0x19b   :  { %918 = vst [vmem:[#allocation2 + $0x20] sm:$0xff] %v12149_v1  ;;  %v854_v4 = vadd.f32 %v12133_v35, %v757_v3  ;;  %v759_v5 = vpop.f32.mrb[9].mxu0  ;;  %v12153_v6 = vld [vmem:[#allocation2 + $0x18] sm:$0xff] }
 0x19c   :  { %919 = vst.msk [vmem:[#allocation2 + $0x28] sm:$0xff] %vm74_vm0, %v905_v2  ;;  %v855_v8 = vadd.f32 %v12136_v36, %v759_v5  ;;  %v761_v9 = vpop.f32.mrb[10].mxu0  ;;  %9025 = vmatprep.mubr.msk.bf16.mxu1 %vm74_vm0, %v12153_v6 }
 0x19d   :  { %v856_v10 = vadd.f32 %v12133_v35, %v761_v9  ;;  %v763_v11 = vpop.f32.mrb[11].mxu0  ;;  %1393 = vmatmul.mubr.bf16.vlgmr.msra.gmra.mrb[0].mxu1 %v12142_v49  ;;  %v882_v15 = vmax.f32 %v854_v4, 0.0 }
 0x19e   :  { %v857_v12 = vadd.f32 %v12136_v36, %v763_v11  ;;  %1464 = vmatpush1.bf16.msra.mxu1 %v10795_v63  ;;  %v883_v16 = vmax.f32 %v855_v8, 0.0  ;;  %v10818_v8 = vld [vmem:[#allocation4 + $0x2ac] ss:$16 sps:$4 sm:$0xff]  }
 0x19f   :  { %v884_v0 = vmax.f32 %v856_v10, 0.0  ;;  %1465 = vmatprep.subr.bf16.mxu1 %v10800_v7 }
 0x1a0   :  { %v885_v17 = vmax.f32 %v857_v12, 0.0 }
 0x1a1   :  { %v12162_v19 = vpack.c.bf16 %v884_v0, %v882_v15  ;;  %v10821_v15 = vld [vmem:[#allocation4 + $0x2cc] ss:$16 sps:$4 sm:$0xff]  }
 0x1a2   :  { %v907_v20 = vpack.c.bf16 %v885_v17, %v883_v16  ;;  %v767_v21 = vpop.f32.mrb[12].mxu0  ;;  %1466 = vmatpush1.bf16.msra.mxu1 %v10798_v13 }
 0x1a3   :  { %v858_v22 = vadd.f32 %v12133_v35, %v767_v21  ;;  %v769_v23 = vpop.f32.mrb[13].mxu0  ;;  %v12165_v24 = vld [vmem:[#allocation2 + $0x28] sm:$0xff]  ;;  %1467 = vmatprep.subr.bf16.mxu1 %v10803_v14 }
 0x1a4   :  { %921 = vst.msk [vmem:[#allocation2 + $0x38] sm:$0xff] %vm74_vm0, %v907_v20  ;;  %v859_v26 = vadd.f32 %v12136_v36, %v769_v23  ;;  %v771_v27 = vpop.f32.mrb[14].mxu0  ;;  %9026 = vmatprep.mubr.msk.bf16.mxu1 %vm74_vm0, %v12165_v24  ;;  %v10816_v14 = vld [vmem:[#allocation4 + $0x2a8] ss:$16 sps:$4 sm:$0xff]  }
 0x1a5   :  { %v860_v28 = vadd.f32 %v12133_v35, %v771_v27  ;;  %v773_v29 = vpop.f32.mrb[15].mxu0  ;;  %1403 = vmatmul.mubr.bf16.gmra.mrb[4].mxu1 %v12149_v1  ;;  %v886_v38 = vmax.f32 %v858_v22, 0.0  ;;  %v10819_v20 = vld [vmem:[#allocation4 + $0x2c8] ss:$16 sps:$4 sm:$0xff]  }
 0x1a6   :  { %v861_v30 = vadd.f32 %v12136_v36, %v773_v29  ;;  %1468 = vmatpush1.bf16.msra.mxu1 %v10801_v18  ;;  %v887_v40 = vmax.f32 %v859_v26, 0.0 }
 0x1a7   :  { %v888_v39 = vmax.f32 %v860_v28, 0.0  ;;  %1469 = vmatprep.subr.bf16.mxu1 %v10806_v25  ;;  %v10824_v28 = vld [vmem:[#allocation4 + $0x2ec] ss:$16 sps:$4 sm:$0xff]  }
 0x1a8   :  { %v889_v41 = vmax.f32 %v861_v30, 0.0 }
 0x1a9   :  { %v12174_v43 = vpack.c.bf16 %v888_v39, %v886_v38  ;;  %v10822_v39 = vld [vmem:[#allocation4 + $0x2e8] ss:$16 sps:$4 sm:$0xff]  }
 0x1aa   :  { %v909_v44 = vpack.c.bf16 %v889_v41, %v887_v40  ;;  %v777_v45 = vpop.f32.mrb[16].mxu0  ;;  %1470 = vmatpush1.bf16.msra.mxu1 %v10804_v33 }
 0x1ab   :  { %v862_v46 = vadd.f32 %v12133_v35, %v777_v45  ;;  %v779_v47 = vpop.f32.mrb[17].mxu0  ;;  %v12177_v48 = vld [vmem:[#allocation2 + $0x38] sm:$0xff]  ;;  %1471 = vmatprep.subr.bf16.mxu1 %v10809_v37 }
 0x1ac   :  { %923 = vst.msk [vmem:[#allocation2 + $0x48] sm:$0xff] %vm74_vm0, %v909_v44  ;;  %v863_v51 = vadd.f32 %v12136_v36, %v779_v47  ;;  %v781_v52 = vpop.f32.mrb[18].mxu0  ;;  %9027 = vmatprep.mubr.msk.bf16.mxu1 %vm74_vm0, %v12177_v48 }
 0x1ad   :  { %v864_v53 = vadd.f32 %v12133_v35, %v781_v52  ;;  %v783_v54 = vpop.f32.mrb[19].mxu0  ;;  %1413 = vmatmul.mubr.bf16.gmra.mrb[8].mxu1 %v12162_v19  ;;  %v890_v58 = vmax.f32 %v862_v46, 0.0  ;;  %v10833_v52 = vld [vmem:[#allocation4 + $0x34c] ss:$16 sps:$4 sm:$0xff]  }
 0x1ae   :  { %v865_v55 = vadd.f32 %v12136_v36, %v783_v54  ;;  %1472 = vmatpush1.bf16.msra.mxu1 %v10807_v42  ;;  %v891_v60 = vmax.f32 %v863_v51, 0.0  ;;  %v10827_v42 = vld [vmem:[#allocation4 + $0x30c] ss:$16 sps:$4 sm:$0xff]  }
 0x1af   :  { %v892_v59 = vmax.f32 %v864_v53, 0.0  ;;  %1473 = vmatprep.subr.bf16.mxu1 %v10812_v50  ;;  %v10825_v50 = vld [vmem:[#allocation4 + $0x308] ss:$16 sps:$4 sm:$0xff]  }
 0x1b0   :  { %v893_v61 = vmax.f32 %v865_v55, 0.0  ;;  %v10831_v53 = vld [vmem:[#allocation4 + $0x348] ss:$16 sps:$4 sm:$0xff]   ;;  %v10836_v55 = vld [vmem:[#allocation4 + $0x36c] ss:$16 sps:$4 sm:$0xff]  }
 0x1b1   :  { %v12186_v63 = vpack.c.bf16 %v892_v59, %v890_v58  ;;  %v10837_v58 = vld [vmem:[#allocation4] ss:$16 sps:$4 sm:$0xff]   ;;  %v10842_v59 = vld [vmem:[#allocation4 + $0x24] ss:$16 sps:$4 sm:$0xff]  }
 0x1b2   :  { %v911_v2 = vpack.c.bf16 %v893_v61, %v891_v60  ;;  %v787_v3 = vpop.f32.mrb[20].mxu0  ;;  %1474 = vmatpush1.bf16.msra.mxu1 %v10810_v56  ;;  %v10834_v56 = vld [vmem:[#allocation4 + $0x368] ss:$16 sps:$4 sm:$0xff]   ;;  %v10840_v60 = vld [vmem:[#allocation4 + $0x20] ss:$16 sps:$4 sm:$0xff]  }
 0x1b3   :  { %v866_v4 = vadd.f32 %v12133_v35, %v787_v3  ;;  %v789_v5 = vpop.f32.mrb[21].mxu0  ;;  %v12189_v7 = vld [vmem:[#allocation2 + $0x48] sm:$0xff]  ;;  %1475 = vmatprep.subr.bf16.mxu1 %v10815_v57  ;;  %v10839_v57 = vld [vmem:[#allocation4 + $0x4] ss:$16 sps:$4 sm:$0xff]   ;;  %v10846_v3 = vld [vmem:[#allocation4 + $0x60] ss:$16 sps:$4 sm:$0xff]  }
 0x1b4   :  { %925 = vst.msk [vmem:[#allocation2 + $0x58] sm:$0xff] %vm74_vm0, %v911_v2  ;;  %v867_v9 = vadd.f32 %v12136_v36, %v789_v5  ;;  %v791_v10 = vpop.f32.mrb[22].mxu0  ;;  %9028 = vmatprep.mubr.msk.bf16.mxu1 %vm74_vm0, %v12189_v7  ;;  %v10845_v61 = vld [vmem:[#allocation4 + $0x44] ss:$16 sps:$4 sm:$0xff]   ;;  %v10849_v5 = vld [vmem:[#allocation4 + $0x80] ss:$16 sps:$4 sm:$0xff]  }
 0x1b5   :  { %v868_v11 = vadd.f32 %v12133_v35, %v791_v10  ;;  %v793_v12 = vpop.f32.mrb[23].mxu0  ;;  %1423 = vmatmul.mubr.bf16.gmra.mrb[12].mxu1 %v12174_v43  ;;  %v894_v0 = vmax.f32 %v866_v4, 0.0  ;;  %v10848_v2 = vld [vmem:[#allocation4 + $0x64] ss:$16 sps:$4 sm:$0xff]  }
 0x1b6   :  { %v869_v13 = vadd.f32 %v12136_v36, %v793_v12  ;;  %1476 = vmatpush1.bf16.msra.mxu1 %v10813_v62  ;;  %v895_v17 = vmax.f32 %v867_v9, 0.0  ;;  %v10843_v62 = vld [vmem:[#allocation4 + $0x40] ss:$16 sps:$4 sm:$0xff]   ;;  %v10851_v4 = vld [vmem:[#allocation4 + $0x84] ss:$16 sps:$4 sm:$0xff]  }
 0x1b7   :  { %v896_v16 = vmax.f32 %v868_v11, 0.0  ;;  %1477 = vmatprep.subr.bf16.mxu1 %v10818_v8  ;;  %v10854_v8 = vld [vmem:[#allocation4 + $0xa4] ss:$16 sps:$4 sm:$0xff]   ;;  %v10852_v9 = vld [vmem:[#allocation4 + $0xa0] ss:$16 sps:$4 sm:$0xff]  }
 0x1b8   :  { %v897_v18 = vmax.f32 %v869_v13, 0.0  ;;  %v10857_v10 = vld [vmem:[#allocation4 + $0xc4] ss:$16 sps:$4 sm:$0xff]   ;;  %v10855_v11 = vld [vmem:[#allocation4 + $0xc0] ss:$16 sps:$4 sm:$0xff]  }
 0x1b9   :  { %v12198_v21 = vpack.c.bf16 %v896_v16, %v894_v0  ;;  %v10860_v12 = vld [vmem:[#allocation4 + $0xe4] ss:$16 sps:$4 sm:$0xff]   ;;  %v10858_v13 = vld [vmem:[#allocation4 + $0xe0] ss:$16 sps:$4 sm:$0xff]  }
 0x1ba   :  { %v913_v22 = vpack.c.bf16 %v897_v18, %v895_v17  ;;  %v797_v23 = vpop.f32.mrb[24].mxu0  ;;  %1478 = vmatpush1.bf16.msra.mxu1 %v10816_v14  ;;  %v10863_v14 = vld [vmem:[#allocation4 + $0x104] ss:$16 sps:$4 sm:$0xff]   ;;  %v10864_v16 = vld [vmem:[#allocation4 + $0x120] ss:$16 sps:$4 sm:$0xff]  }
 0x1bb   :  { %v870_v25 = vadd.f32 %v12133_v35, %v797_v23  ;;  %v799_v26 = vpop.f32.mrb[25].mxu0  ;;  %v12201_v27 = vld [vmem:[#allocation2 + $0x58] sm:$0xff]  ;;  %1479 = vmatprep.subr.bf16.mxu1 %v10821_v15  ;;  %v10861_v15 = vld [vmem:[#allocation4 + $0x100] ss:$16 sps:$4 sm:$0xff]   ;;  %v10866_v0 = vld [vmem:[#allocation4 + $0x124] ss:$16 sps:$4 sm:$0xff]  }
 0x1bc   :  { %927 = vst.msk [vmem:[#allocation2 + $0x68] sm:$0xff] %vm74_vm0, %v913_v22  ;;  %v871_v29 = vadd.f32 %v12136_v36, %v799_v26  ;;  %v801_v30 = vpop.f32.mrb[26].mxu0  ;;  %9029 = vmatprep.mubr.msk.bf16.mxu1 %vm74_vm0, %v12201_v27  ;;  %v10869_v17 = vld [vmem:[#allocation4 + $0x144] ss:$16 sps:$4 sm:$0xff]   ;;  %v10867_v18 = vld [vmem:[#allocation4 + $0x140] ss:$16 sps:$4 sm:$0xff]  }
 0x1bd   :  { %v872_v33 = vadd.f32 %v12133_v35, %v801_v30  ;;  %v803_v37 = vpop.f32.mrb[27].mxu0  ;;  %1433 = vmatmul.mubr.bf16.gmra.mrb[16].mxu1 %v12186_v63  ;;  %v898_v40 = vmax.f32 %v870_v25, 0.0  ;;  %v10830_v35 = vld [vmem:[#allocation4 + $0x32c] ss:$16 sps:$4 sm:$0xff]   ;;  %v10870_v22 = vld [vmem:[#allocation4 + $0x160] ss:$16 sps:$4 sm:$0xff]  }
 0x1be   :  { %v873_v38 = vadd.f32 %v12136_v36, %v803_v37  ;;  %1480 = vmatpush1.bf16.msra.mxu1 %v10819_v20  ;;  %v899_v44 = vmax.f32 %v871_v29, 0.0  ;;  %v10828_v36 = vld [vmem:[#allocation4 + $0x328] ss:$16 sps:$4 sm:$0xff]   ;;  %v10872_v20 = vld [vmem:[#allocation4 + $0x164] ss:$16 sps:$4 sm:$0xff]  }
 0x1bf   :  { %v900_v41 = vmax.f32 %v872_v33, 0.0  ;;  %1481 = vmatprep.subr.bf16.mxu1 %v10824_v28  ;;  %v10875_v23 = vld [vmem:[#allocation4 + $0x184] ss:$16 sps:$4 sm:$0xff]   ;;  %v10873_v25 = vld [vmem:[#allocation4 + $0x180] ss:$16 sps:$4 sm:$0xff]   ;;  %v12243_v28 = vld [vmem:[#allocation2 + $0x8] sm:$0xff] }
 0x1c0   :  { %v901_v45 = vmax.f32 %v873_v38, 0.0  ;;  %v10878_v26 = vld [vmem:[#allocation4 + $0x1a4] ss:$16 sps:$4 sm:$0xff]   ;;  %v10876_v29 = vld [vmem:[#allocation4 + $0x1a0] ss:$16 sps:$4 sm:$0xff]  }
 0x1c1   :  { %v12210_v46 = vpack.c.bf16 %v900_v41, %v898_v40  ;;  %v10881_v30 = vld [vmem:[#allocation4 + $0xc] ss:$16 sps:$4 sm:$0xff]   ;;  %v10879_v33 = vld [vmem:[#allocation4 + $0x8] ss:$16 sps:$4 sm:$0xff]   ;;  %v12248_v38 = vld [vmem:[#allocation2] sm:$0xff] }
 0x1c2   :  { %v915_v47 = vpack.c.bf16 %v901_v45, %v899_v44  ;;  %1482 = vmatpush1.bf16.msra.mxu1 %v10822_v39  ;;  %v10884_v37 = vld [vmem:[#allocation4 + $0x2c] ss:$16 sps:$4 sm:$0xff]   ;;  %v10882_v39 = vld [vmem:[#allocation4 + $0x28] ss:$16 sps:$4 sm:$0xff]   ;;  %82 = vst.msk [vmem:[#allocation3 + $0x18] sm:$0xff] %vm81_vm1, %v12248_v38  ;;  %86 = vst.msk [vmem:[#allocation3 + $0x118] sm:$0xff] %vm81_vm1, %v12248_v38 }
 0x1c3   :  { %v12212_v51 = vld [vmem:[#allocation2 + $0x68] sm:$0xff]  ;;  %1483 = vmatprep.subr.bf16.mxu1 %v10827_v42 }
 0x1c4   :  { %929 = vst.msk [vmem:[#allocation2 + $0x78] sm:$0xff] %vm74_vm0, %v915_v47  ;;  %9030 = vmatprep.mubr.msk.bf16.mxu1 %vm74_vm0, %v12212_v51  ;;  %v10887_v40 = vld [vmem:[#allocation4 + $0x4c] ss:$16 sps:$4 sm:$0xff]   ;;  %v10885_v41 = vld [vmem:[#allocation4 + $0x48] ss:$16 sps:$4 sm:$0xff]  }
 0x1c5   :  { %1443 = vmatmul.mubr.bf16.gmra.mrb[20].mxu1 %v12198_v21  ;;  %v10890_v42 = vld [vmem:[#allocation4 + $0x6c] ss:$16 sps:$4 sm:$0xff]   ;;  %v10888_v44 = vld [vmem:[#allocation4 + $0x68] ss:$16 sps:$4 sm:$0xff]  }
 0x1c6   :  { %1484 = vmatpush1.bf16.msra.mxu1 %v10825_v50  ;;  %v10893_v45 = vld [vmem:[#allocation4 + $0x8c] ss:$16 sps:$4 sm:$0xff]   ;;  %v10891_v47 = vld [vmem:[#allocation4 + $0x88] ss:$16 sps:$4 sm:$0xff]  }
 0x1c7   :  { %1485 = vmatprep.subr.bf16.mxu1 %v10830_v35  ;;  %v10896_v50 = vld [vmem:[#allocation4 + $0xac] ss:$16 sps:$4 sm:$0xff]   ;;  %v10894_v35 = vld [vmem:[#allocation4 + $0xa8] ss:$16 sps:$4 sm:$0xff]  }
 0x1ca   :  { %1486 = vmatpush1.bf16.msra.mxu1 %v10828_v36  ;;  %v10899_v36 = vld [vmem:[#allocation4 + $0xcc] ss:$16 sps:$4 sm:$0xff]  }
 0x1cb   :  { %v12218_v54 = vld [vmem:[#allocation2 + $0x78] sm:$0xff]  ;;  %1487 = vmatprep.subr.bf16.mxu1 %v10833_v52 }
 0x1cc   :  { %9031 = vmatprep.mubr.msk.bf16.mxu1 %vm74_vm0, %v12218_v54  ;;  %v10897_v52 = vld [vmem:[#allocation4 + $0xc8] ss:$16 sps:$4 sm:$0xff]  }
 0x1cd   :  { %1453 = vmatmul.mubr.bf16.gmra.mrb[24].mxu1 %v12210_v46 }
 0x1ce   :  { %1488 = vmatpush1.bf16.msra.mxu1 %v10831_v53  ;;  %9032 = vmatprep.mubr.msk.bf16.mxu1 %vm74_vm0, %v12153_v6  ;;  %v10902_v53 = vld [vmem:[#allocation4 + $0xec] ss:$16 sps:$4 sm:$0xff]  }
 0x1cf   :  { %1489 = vmatprep.subr.bf16.mxu1 %v10836_v55  ;;  %v10900_v55 = vld [vmem:[#allocation4 + $0xe8] ss:$16 sps:$4 sm:$0xff]  }
 0x1d2   :  { %1490 = vmatpush1.bf16.msra.mxu1 %v10834_v56  ;;  %v10905_v56 = vld [vmem:[#allocation4 + $0x10c] ss:$16 sps:$4 sm:$0xff]  }
 0x1d3   :  { %1849 = vmatprep.subr.bf16.mxu1 %v10839_v57  ;;  %v10903_v57 = vld [vmem:[#allocation4 + $0x108] ss:$16 sps:$4 sm:$0xff]  }
 0x1d5   :  { %1496 = vmatmul.mubr.bf16.vlgmr.msra.gmra.mrb[28].mxu1 %v12142_v49 }
 0x1d6   :  { %9033 = vmatprep.mubr.msk.bf16.mxu1 %vm74_vm0, %v12165_v24  ;;  %1850 = vmatpush1.bf16.msra.mxu1 %v10837_v58  ;;  %v10908_v58 = vld [vmem:[#allocation4 + $0x12c] ss:$16 sps:$4 sm:$0xff]  }
 0x1d7   :  { %1851 = vmatprep.subr.bf16.mxu1 %v10842_v59  ;;  %v10906_v59 = vld [vmem:[#allocation4 + $0x128] ss:$16 sps:$4 sm:$0xff]  }
 0x1da   :  { %1852 = vmatpush1.bf16.msra.mxu1 %v10840_v60  ;;  %v10911_v60 = vld [vmem:[#allocation4 + $0x14c] ss:$16 sps:$4 sm:$0xff]  }
 0x1db   :  { %1853 = vmatprep.subr.bf16.mxu1 %v10845_v61  ;;  %v10909_v61 = vld [vmem:[#allocation4 + $0x148] ss:$16 sps:$4 sm:$0xff]  }
 0x1dd   :  { %1506 = vmatmul.mubr.bf16.gmra.mrb[32].mxu1 %v12149_v1 }
 0x1de   :  { %9034 = vmatprep.mubr.msk.bf16.mxu1 %vm74_vm0, %v12177_v48  ;;  %1854 = vmatpush1.bf16.msra.mxu1 %v10843_v62  ;;  %v10914_v62 = vld [vmem:[#allocation4 + $0x16c] ss:$16 sps:$4 sm:$0xff]  }
 0x1df   :  { %1855 = vmatprep.subr.bf16.mxu1 %v10848_v2  ;;  %v10912_v2 = vld [vmem:[#allocation4 + $0x168] ss:$16 sps:$4 sm:$0xff]  }
 0x1e2   :  { %1856 = vmatpush1.bf16.msra.mxu1 %v10846_v3  ;;  %v10917_v3 = vld [vmem:[#allocation4 + $0x18c] ss:$16 sps:$4 sm:$0xff]  }
 0x1e3   :  { %1857 = vmatprep.subr.bf16.mxu1 %v10851_v4  ;;  %v10915_v4 = vld [vmem:[#allocation4 + $0x188] ss:$16 sps:$4 sm:$0xff]  }
 0x1e5   :  { %1516 = vmatmul.mubr.bf16.gmra.mrb[36].mxu1 %v12162_v19 }
 0x1e6   :  { %9035 = vmatprep.mubr.msk.bf16.mxu1 %vm74_vm0, %v12189_v7  ;;  %1858 = vmatpush1.bf16.msra.mxu1 %v10849_v5  ;;  %v10920_v5 = vld [vmem:[#allocation4 + $0x1ac] ss:$16 sps:$4 sm:$0xff]  }
 0x1e7   :  { %1859 = vmatprep.subr.bf16.mxu1 %v10854_v8  ;;  %v10918_v8 = vld [vmem:[#allocation4 + $0x1a8] ss:$16 sps:$4 sm:$0xff]  }
 0x1ea   :  { %1860 = vmatpush1.bf16.msra.mxu1 %v10852_v9  ;;  %v10923_v9 = vld [vmem:[#allocation4 + $0x384] ss:$16 sps:$4 sm:$0xff]  }
 0x1eb   :  { %1861 = vmatprep.subr.bf16.mxu1 %v10857_v10  ;;  %v10921_v10 = vld [vmem:[#allocation4 + $0x380] ss:$16 sps:$4 sm:$0xff]  }
 0x1ed   :  { %1526 = vmatmul.mubr.bf16.gmra.mrb[40].mxu1 %v12174_v43 }
 0x1ee   :  { %9036 = vmatprep.mubr.msk.bf16.mxu1 %vm74_vm0, %v12201_v27  ;;  %1862 = vmatpush1.bf16.msra.mxu1 %v10855_v11  ;;  %v10926_v11 = vld [vmem:[#allocation4 + $0x3a4] ss:$16 sps:$4 sm:$0xff]  }
 0x1ef   :  { %1863 = vmatprep.subr.bf16.mxu1 %v10860_v12  ;;  %v10924_v12 = vld [vmem:[#allocation4 + $0x3a0] ss:$16 sps:$4 sm:$0xff]  }
 0x1f2   :  { %1864 = vmatpush1.bf16.msra.mxu1 %v10858_v13  ;;  %v10929_v13 = vld [vmem:[#allocation4 + $0x3c4] ss:$16 sps:$4 sm:$0xff]  }
 0x1f3   :  { %1865 = vmatprep.subr.bf16.mxu1 %v10863_v14  ;;  %v10927_v14 = vld [vmem:[#allocation4 + $0x3c0] ss:$16 sps:$4 sm:$0xff]  }
 0x1f5   :  { %1536 = vmatmul.mubr.bf16.gmra.mrb[44].mxu1 %v12186_v63 }
 0x1f6   :  { %9037 = vmatprep.mubr.msk.bf16.mxu1 %vm74_vm0, %v12212_v51  ;;  %1866 = vmatpush1.bf16.msra.mxu1 %v10861_v15  ;;  %v10932_v15 = vld [vmem:[#allocation4 + $0x3e4] ss:$16 sps:$4 sm:$0xff]  }
 0x1f7   :  { %1867 = vmatprep.subr.bf16.mxu1 %v10866_v0  ;;  %v10930_v0 = vld [vmem:[#allocation4 + $0x3e0] ss:$16 sps:$4 sm:$0xff]  }
 0x1fa   :  { %1868 = vmatpush1.bf16.msra.mxu1 %v10864_v16  ;;  %v10935_v16 = vld [vmem:[#allocation4 + $0x404] ss:$16 sps:$4 sm:$0xff]  }
 0x1fb   :  { %1869 = vmatprep.subr.bf16.mxu1 %v10869_v17  ;;  %v10933_v17 = vld [vmem:[#allocation4 + $0x400] ss:$16 sps:$4 sm:$0xff]  }
 0x1fd   :  { %1546 = vmatmul.mubr.bf16.gmra.mrb[48].mxu1 %v12198_v21 }
 0x1fe   :  { %9038 = vmatprep.mubr.msk.bf16.mxu1 %vm74_vm0, %v12218_v54  ;;  %1870 = vmatpush1.bf16.msra.mxu1 %v10867_v18  ;;  %v10936_v18 = vld [vmem:[#allocation4 + $0x420] ss:$16 sps:$4 sm:$0xff]  }
 0x1ff   :  { %1871 = vmatprep.subr.bf16.mxu1 %v10872_v20  ;;  %v10939_v20 = vld [vmem:[#allocation4 + $0x440] ss:$16 sps:$4 sm:$0xff]  }
 0x202   :  { %1872 = vmatpush1.bf16.msra.mxu1 %v10870_v22  ;;  %v10944_v22 = vld [vmem:[#allocation4 + $0x464] ss:$16 sps:$4 sm:$0xff]  }
 0x203   :  { %1873 = vmatprep.subr.bf16.mxu1 %v10875_v23  ;;  %v10942_v23 = vld [vmem:[#allocation4 + $0x460] ss:$16 sps:$4 sm:$0xff]  }
 0x205   :  { %1556 = vmatmul.mubr.bf16.gmra.mrb[52].mxu1 %v12210_v46 }
 0x206   :  { %1874 = vmatpush1.bf16.msra.mxu1 %v10873_v25  ;;  %9095 = vmatprep.mubr.msk.bf16.mxu1 %vm74_vm0, %v12243_v28  ;;  %v10947_v25 = vld [vmem:[#allocation4 + $0x484] ss:$16 sps:$4 sm:$0xff]  }
 0x207   :  { %1875 = vmatprep.subr.bf16.mxu1 %v10878_v26  ;;  %v10945_v26 = vld [vmem:[#allocation4 + $0x480] ss:$16 sps:$4 sm:$0xff]  }
 0x20a   :  { %1876 = vmatpush1.bf16.msra.mxu1 %v10876_v29  ;;  %v11005_v29 = vld [vmem:[%s14102_s5 + $0x380] ss:$16 sps:$4 sm:$0xff]  }
 0x20b   :  { %1952 = vmatprep.subr.bf16.mxu1 %v10881_v30  ;;  %v11007_v30 = vld [vmem:[%s14102_s5 + $0x384] ss:$16 sps:$4 sm:$0xff]  }
 0x20c   :  { %3717 = vmatprep.subr.bf16.mxu0 %v11007_v30  ;;  %v10987_v30 = vld [vmem:[#allocation4 + $0x488] ss:$16 sps:$4 sm:$0xff]  }
 0x20d   :  { %1882 = vmatmul.mubr.bf16.vlgmr.msra.gmra.mrb[0].mxu1 %v12248_v38  ;;  %3718 = vmatpush1.bf16.msra.mxu0 %v11005_v29  ;;  %v10989_v29 = vld [vmem:[#allocation4 + $0x48c] ss:$16 sps:$4 sm:$0xff]  }
 0x20e   :  { %9096 = vmatprep.mubr.msk.bf16.mxu1 %vm74_vm0, %v12153_v6  ;;  %1953 = vmatpush1.bf16.msra.mxu1 %v10879_v33  ;;  %v10948_v33 = vld [vmem:[#allocation4 + $0x4a0] ss:$16 sps:$4 sm:$0xff]  }
 0x20f   :  { %1954 = vmatprep.subr.bf16.mxu1 %v10884_v37  ;;  %v11010_v37 = vld [vmem:[%s14102_s5 + $0x3a4] ss:$16 sps:$4 sm:$0xff]  }
 0x210   :  { %3719 = vmatprep.subr.bf16.mxu0 %v11010_v37  ;;  %v10990_v37 = vld [vmem:[#allocation4 + $0x4a8] ss:$16 sps:$4 sm:$0xff]  }
 0x212   :  { %1955 = vmatpush1.bf16.msra.mxu1 %v10882_v39  ;;  %v10953_v39 = vld [vmem:[#allocation4 + $0x4c4] ss:$16 sps:$4 sm:$0xff]  }
 0x213   :  { %1956 = vmatprep.subr.bf16.mxu1 %v10887_v40  ;;  %v11008_v40 = vld [vmem:[%s14102_s5 + $0x3a0] ss:$16 sps:$4 sm:$0xff]  }
 0x214   :  { %3720 = vmatpush1.bf16.msra.mxu0 %v11008_v40  ;;  %v10993_v40 = vld [vmem:[#allocation4 + $0x4c8] ss:$16 sps:$4 sm:$0xff]  }
 0x215   :  { %1892 = vmatmul.mubr.bf16.gmra.mrb[4].mxu1 %v12142_v49 }
 0x216   :  { %9097 = vmatprep.mubr.msk.bf16.mxu1 %vm74_vm0, %v12165_v24  ;;  %1957 = vmatpush1.bf16.msra.mxu1 %v10885_v41  ;;  %v11013_v41 = vld [vmem:[%s14102_s5 + $0x3c4] ss:$16 sps:$4 sm:$0xff]  }
 0x217   :  { %1958 = vmatprep.subr.bf16.mxu1 %v10890_v42  ;;  %v10951_v42 = vld [vmem:[#allocation4 + $0x4c0] ss:$16 sps:$4 sm:$0xff]   ;;  %3721 = vmatprep.subr.bf16.mxu0 %v11013_v41  ;;  %v10998_v41 = vld [vmem:[#allocation4 + $0x4ec] ss:$16 sps:$4 sm:$0xff]  }
 0x21a   :  { %1959 = vmatpush1.bf16.msra.mxu1 %v10888_v44  ;;  %v10956_v44 = vld [vmem:[#allocation4 + $0x4e4] ss:$16 sps:$4 sm:$0xff]  }
 0x21b   :  { %1960 = vmatprep.subr.bf16.mxu1 %v10893_v45  ;;  %v11011_v45 = vld [vmem:[%s14102_s5 + $0x3c0] ss:$16 sps:$4 sm:$0xff]  }
 0x21c   :  { %3722 = vmatpush1.bf16.msra.mxu0 %v11011_v45  ;;  %v11001_v45 = vld [vmem:[#allocation4 + $0x50c] ss:$16 sps:$4 sm:$0xff]  }
 0x21d   :  { %1902 = vmatmul.mubr.bf16.gmra.mrb[8].mxu1 %v12149_v1 }
 0x21e   :  { %9098 = vmatprep.mubr.msk.bf16.mxu1 %vm74_vm0, %v12177_v48  ;;  %1961 = vmatpush1.bf16.msra.mxu1 %v10891_v47  ;;  %v11016_v47 = vld [vmem:[%s14102_s5 + $0x3e4] ss:$16 sps:$4 sm:$0xff]  }
 0x21f   :  { %1962 = vmatprep.subr.bf16.mxu1 %v10896_v50  ;;  %v10954_v50 = vld [vmem:[#allocation4 + $0x4e0] ss:$16 sps:$4 sm:$0xff]   ;;  %3723 = vmatprep.subr.bf16.mxu0 %v11016_v47  ;;  %v10999_v47 = vld [vmem:[#allocation4 + $0x508] ss:$16 sps:$4 sm:$0xff]  }
 0x222   :  { %1963 = vmatpush1.bf16.msra.mxu1 %v10894_v35  ;;  %v10959_v35 = vld [vmem:[#allocation4 + $0x504] ss:$16 sps:$4 sm:$0xff]  }
 0x223   :  { %1964 = vmatprep.subr.bf16.mxu1 %v10899_v36  ;;  %v11014_v36 = vld [vmem:[%s14102_s5 + $0x3e0] ss:$16 sps:$4 sm:$0xff]  }
 0x224   :  { %3724 = vmatpush1.bf16.msra.mxu0 %v11014_v36  ;;  %v11721_v36 = vld [vmem:[#allocation2 + $0x20] sm:$0xff] }
 0x225   :  { %1912 = vmatmul.mubr.bf16.gmra.mrb[12].mxu1 %v12162_v19 }
 0x226   :  { %9099 = vmatprep.mubr.msk.bf16.mxu1 %vm74_vm0, %v12189_v7  ;;  %1965 = vmatpush1.bf16.msra.mxu1 %v10897_v52  ;;  %v11019_v52 = vld [vmem:[%s14102_s5 + $0x404] ss:$16 sps:$4 sm:$0xff]  }
 0x227   :  { %1966 = vmatprep.subr.bf16.mxu1 %v10902_v53  ;;  %v10957_v53 = vld [vmem:[#allocation4 + $0x500] ss:$16 sps:$4 sm:$0xff]   ;;  %3725 = vmatprep.subr.bf16.mxu0 %v11019_v52 }
 0x228   :  { %v11041_v52 = vld [vmem:[%s14102_s5 + $0x500] ss:$16 sps:$4 sm:$0xff]  }
 0x22a   :  { %1967 = vmatpush1.bf16.msra.mxu1 %v10900_v55  ;;  %v10962_v55 = vld [vmem:[#allocation4 + $0x524] ss:$16 sps:$4 sm:$0xff]  }
 0x22b   :  { %1968 = vmatprep.subr.bf16.mxu1 %v10905_v56  ;;  %v11017_v56 = vld [vmem:[%s14102_s5 + $0x400] ss:$16 sps:$4 sm:$0xff]  }
 0x22c   :  { %3726 = vmatpush1.bf16.msra.mxu0 %v11017_v56 }
 0x22d   :  { %1922 = vmatmul.mubr.bf16.gmra.mrb[16].mxu1 %v12174_v43 }
 0x22e   :  { %9100 = vmatprep.mubr.msk.bf16.mxu1 %vm74_vm0, %v12201_v27  ;;  %1969 = vmatpush1.bf16.msra.mxu1 %v10903_v57  ;;  %v11022_v57 = vld [vmem:[%s14102_s5 + $0x424] ss:$16 sps:$4 sm:$0xff]  }
 0x22f   :  { %1970 = vmatprep.subr.bf16.mxu1 %v10908_v58  ;;  %v10960_v58 = vld [vmem:[#allocation4 + $0x520] ss:$16 sps:$4 sm:$0xff]   ;;  %3727 = vmatprep.subr.bf16.mxu0 %v11022_v57 }
 0x232   :  { %1971 = vmatpush1.bf16.msra.mxu1 %v10906_v59  ;;  %v10965_v59 = vld [vmem:[#allocation4 + $0x38c] ss:$16 sps:$4 sm:$0xff]  }
 0x233   :  { %1972 = vmatprep.subr.bf16.mxu1 %v10911_v60  ;;  %v11020_v60 = vld [vmem:[%s14102_s5 + $0x420] ss:$16 sps:$4 sm:$0xff]  }
 0x234   :  { %3728 = vmatpush1.bf16.msra.mxu0 %v11020_v60 }
 0x235   :  { %1932 = vmatmul.mubr.bf16.gmra.mrb[20].mxu1 %v12186_v63 }
 0x236   :  { %9101 = vmatprep.mubr.msk.bf16.mxu1 %vm74_vm0, %v12212_v51  ;;  %1973 = vmatpush1.bf16.msra.mxu1 %v10909_v61  ;;  %v11025_v61 = vld [vmem:[%s14102_s5 + $0x444] ss:$16 sps:$4 sm:$0xff]  }
 0x237   :  { %1974 = vmatprep.subr.bf16.mxu1 %v10914_v62  ;;  %v10963_v62 = vld [vmem:[#allocation4 + $0x388] ss:$16 sps:$4 sm:$0xff]   ;;  %3729 = vmatprep.subr.bf16.mxu0 %v11025_v61 }
 0x23a   :  { %1975 = vmatpush1.bf16.msra.mxu1 %v10912_v2  ;;  %v10968_v2 = vld [vmem:[#allocation4 + $0x3ac] ss:$16 sps:$4 sm:$0xff]  }
 0x23b   :  { %1976 = vmatprep.subr.bf16.mxu1 %v10917_v3  ;;  %v11023_v3 = vld [vmem:[%s14102_s5 + $0x440] ss:$16 sps:$4 sm:$0xff]  }
 0x23c   :  { %3730 = vmatpush1.bf16.msra.mxu0 %v11023_v3 }
 0x23d   :  { %1942 = vmatmul.mubr.bf16.gmra.mrb[24].mxu1 %v12198_v21 }
 0x23e   :  { %1977 = vmatpush1.bf16.msra.mxu1 %v10915_v4  ;;  %9102 = vmatprep.mubr.msk.bf16.mxu1 %vm74_vm0, %v12243_v28  ;;  %v10950_v28 = vld [vmem:[#allocation4 + $0x4a4] ss:$16 sps:$4 sm:$0xff]  }
 0x23f   :  { %1978 = vmatprep.subr.bf16.mxu1 %v10920_v5  ;;  %v11028_v4 = vld [vmem:[%s14102_s5 + $0x464] ss:$16 sps:$4 sm:$0xff]   ;;  %v10966_v5 = vld [vmem:[#allocation4 + $0x3a8] ss:$16 sps:$4 sm:$0xff]  }
 0x240   :  { %3731 = vmatprep.subr.bf16.mxu0 %v11028_v4 }
 0x242   :  { %1979 = vmatpush1.bf16.msra.mxu1 %v10918_v8  ;;  %v10971_v8 = vld [vmem:[#allocation4 + $0x3cc] ss:$16 sps:$4 sm:$0xff]  }
 0x243   :  { %2427 = vmatprep.subr.bf16.mxu1 %v10923_v9  ;;  %v11026_v9 = vld [vmem:[%s14102_s5 + $0x460] ss:$16 sps:$4 sm:$0xff]  }
 0x244   :  { %3732 = vmatpush1.bf16.msra.mxu0 %v11026_v9  ;;  %v11053_v9 = vld [vmem:[%s14102_s5 + $0x580] ss:$16 sps:$4 sm:$0xff]  }
 0x245   :  { %1985 = vmatmul.mubr.bf16.vlgmr.msra.gmra.mrb[28].mxu1 %v12248_v38 }
 0x246   :  { %9103 = vmatprep.mubr.msk.bf16.mxu1 %vm74_vm0, %v12153_v6  ;;  %2428 = vmatpush1.bf16.msra.mxu1 %v10921_v10  ;;  %v10938_v6 = vld [vmem:[#allocation4 + $0x424] ss:$16 sps:$4 sm:$0xff]   ;;  %v10969_v10 = vld [vmem:[#allocation4 + $0x3c8] ss:$16 sps:$4 sm:$0xff]  }
 0x247   :  { %2429 = vmatprep.subr.bf16.mxu1 %v10926_v11  ;;  %v10974_v11 = vld [vmem:[#allocation4 + $0x3ec] ss:$16 sps:$4 sm:$0xff]  }
 0x24a   :  { %2430 = vmatpush1.bf16.msra.mxu1 %v10924_v12  ;;  %v11029_v12 = vld [vmem:[%s14102_s5 + $0x480] ss:$16 sps:$4 sm:$0xff]  }
 0x24b   :  { %2431 = vmatprep.subr.bf16.mxu1 %v10929_v13  ;;  %v11034_v13 = vld [vmem:[%s14102_s5 + $0x4a4] ss:$16 sps:$4 sm:$0xff]  }
 0x24d   :  { %1995 = vmatmul.mubr.bf16.gmra.mrb[32].mxu1 %v12142_v49  ;;  %v10941_v49 = vld [vmem:[#allocation4 + $0x444] ss:$16 sps:$4 sm:$0xff]  }
 0x24e   :  { %9104 = vmatprep.mubr.msk.bf16.mxu1 %vm74_vm0, %v12165_v24  ;;  %2432 = vmatpush1.bf16.msra.mxu1 %v10927_v14  ;;  %v10972_v14 = vld [vmem:[#allocation4 + $0x3e8] ss:$16 sps:$4 sm:$0xff]  }
 0x24f   :  { %2433 = vmatprep.subr.bf16.mxu1 %v10932_v15  ;;  %v10977_v15 = vld [vmem:[#allocation4 + $0x40c] ss:$16 sps:$4 sm:$0xff]  }
 0x252   :  { %2434 = vmatpush1.bf16.msra.mxu1 %v10930_v0  ;;  %v11032_v0 = vld [vmem:[%s14102_s5 + $0x4a0] ss:$16 sps:$4 sm:$0xff]  }
 0x253   :  { %2435 = vmatprep.subr.bf16.mxu1 %v10935_v16  ;;  %v11037_v16 = vld [vmem:[%s14102_s5 + $0x4c4] ss:$16 sps:$4 sm:$0xff]  }
 0x255   :  { %2005 = vmatmul.mubr.bf16.gmra.mrb[36].mxu1 %v12149_v1 }
 0x256   :  { %9105 = vmatprep.mubr.msk.bf16.mxu1 %vm74_vm0, %v12177_v48  ;;  %2436 = vmatpush1.bf16.msra.mxu1 %v10933_v17  ;;  %v10975_v17 = vld [vmem:[#allocation4 + $0x408] ss:$16 sps:$4 sm:$0xff]  }
 0x257   :  { %2437 = vmatprep.subr.bf16.mxu1 %v10938_v6  ;;  %v10980_v6 = vld [vmem:[#allocation4 + $0x42c] ss:$16 sps:$4 sm:$0xff]  }
 0x25a   :  { %2438 = vmatpush1.bf16.msra.mxu1 %v10936_v18  ;;  %v11035_v18 = vld [vmem:[%s14102_s5 + $0x4c0] ss:$16 sps:$4 sm:$0xff]  }
 0x25b   :  { %2439 = vmatprep.subr.bf16.mxu1 %v10941_v49  ;;  %v11040_v49 = vld [vmem:[%s14102_s5 + $0x4e4] ss:$16 sps:$4 sm:$0xff]  }
 0x25d   :  { %2015 = vmatmul.mubr.bf16.gmra.mrb[40].mxu1 %v12162_v19 }
 0x25e   :  { %9106 = vmatprep.mubr.msk.bf16.mxu1 %vm74_vm0, %v12189_v7  ;;  %2440 = vmatpush1.bf16.msra.mxu1 %v10939_v20  ;;  %v10978_v20 = vld [vmem:[#allocation4 + $0x428] ss:$16 sps:$4 sm:$0xff]  }
 0x25f   :  { %2441 = vmatprep.subr.bf16.mxu1 %v10944_v22  ;;  %v10983_v22 = vld [vmem:[#allocation4 + $0x44c] ss:$16 sps:$4 sm:$0xff]  }
 0x262   :  { %2442 = vmatpush1.bf16.msra.mxu1 %v10942_v23  ;;  %v11038_v23 = vld [vmem:[%s14102_s5 + $0x4e0] ss:$16 sps:$4 sm:$0xff]  }
 0x263   :  { %2443 = vmatprep.subr.bf16.mxu1 %v10947_v25  ;;  %v10981_v25 = vld [vmem:[#allocation4 + $0x448] ss:$16 sps:$4 sm:$0xff]  }
 0x265   :  { %2025 = vmatmul.mubr.bf16.gmra.mrb[44].mxu1 %v12174_v43 }
 0x266   :  { %9107 = vmatprep.mubr.msk.bf16.mxu1 %vm74_vm0, %v12201_v27  ;;  %2444 = vmatpush1.bf16.msra.mxu1 %v10945_v26  ;;  %v10986_v26 = vld [vmem:[#allocation4 + $0x46c] ss:$16 sps:$4 sm:$0xff]  }
 0x267   :  { %2445 = vmatprep.subr.bf16.mxu1 %v10950_v28  ;;  %v10984_v28 = vld [vmem:[#allocation4 + $0x468] ss:$16 sps:$4 sm:$0xff]  }
 0x26a   :  { %2446 = vmatpush1.bf16.msra.mxu1 %v10948_v33  ;;  %v10992_v33 = vld [vmem:[#allocation4 + $0x4ac] ss:$16 sps:$4 sm:$0xff]  }
 0x26b   :  { %2447 = vmatprep.subr.bf16.mxu1 %v10953_v39  ;;  %v10995_v39 = vld [vmem:[#allocation4 + $0x4cc] ss:$16 sps:$4 sm:$0xff]  }
 0x26d   :  { %2035 = vmatmul.mubr.bf16.gmra.mrb[48].mxu1 %v12186_v63 }
 0x26e   :  { %9108 = vmatprep.mubr.msk.bf16.mxu1 %vm74_vm0, %v12212_v51  ;;  %2448 = vmatpush1.bf16.msra.mxu1 %v10951_v42  ;;  %v2068_v42 = vld [vmem:[#allocation2 + $0x88] sm:$0xff] }
 0x26f   :  { %2449 = vmatprep.subr.bf16.mxu1 %v10956_v44  ;;  %v10996_v44 = vld [vmem:[#allocation4 + $0x4e8] ss:$16 sps:$4 sm:$0xff]  }
 0x272   :  { %2450 = vmatpush1.bf16.msra.mxu1 %v10954_v50  ;;  %v11004_v50 = vld [vmem:[#allocation4 + $0x52c] ss:$16 sps:$4 sm:$0xff]  }
 0x273   :  { %2451 = vmatprep.subr.bf16.mxu1 %v10959_v35  ;;  %v11002_v35 = vld [vmem:[#allocation4 + $0x528] ss:$16 sps:$4 sm:$0xff]  }
 0x275   :  { %2045 = vmatmul.mubr.bf16.gmra.mrb[52].mxu1 %v12198_v21 }
 0x276   :  { %2452 = vmatpush1.bf16.msra.mxu1 %v10957_v53  ;;  %9165 = vmatprep.mubr.msk.bf16.mxu1 %vm74_vm0, %v12165_v24 }
 0x277   :  { %2453 = vmatprep.subr.bf16.mxu1 %v10962_v55 }
 0x27a   :  { %2454 = vmatpush1.bf16.msra.mxu1 %v10960_v58 }
 0x27b   :  { %2530 = vmatprep.subr.bf16.mxu1 %v10965_v59 }
 0x27d   :  { %2460 = vmatmul.mubr.bf16.vlgmr.msra.gmra.mrb[0].mxu1 %v12149_v1  ;;  %v11031_v1 = vld [vmem:[%s14102_s5 + $0x484] ss:$16 sps:$4 sm:$0xff]  }
 0x27e   :  { %9166 = vmatprep.mubr.msk.bf16.mxu1 %vm74_vm0, %v12177_v48  ;;  %2531 = vmatpush1.bf16.msra.mxu1 %v10963_v62 }
 0x27f   :  { %2532 = vmatprep.subr.bf16.mxu1 %v10968_v2  ;;  %3733 = vmatprep.subr.bf16.mxu0 %v11031_v1 }
 0x280   :  { %3734 = vmatpush1.bf16.msra.mxu0 %v11029_v12 }
 0x281   :  { %3735 = vmatprep.subr.bf16.mxu0 %v11034_v13 }
 0x282   :  { %2533 = vmatpush1.bf16.msra.mxu1 %v10966_v5 }
 0x283   :  { %2534 = vmatprep.subr.bf16.mxu1 %v10971_v8 }
 0x284   :  { %3736 = vmatpush1.bf16.msra.mxu0 %v11032_v0 }
 0x285   :  { %2470 = vmatmul.mubr.bf16.gmra.mrb[4].mxu1 %v12162_v19  ;;  %3737 = vmatprep.subr.bf16.mxu0 %v11037_v16  ;;  %v11056_v16 = vld [vmem:[%s14102_s5 + $0x5a0] ss:$16 sps:$4 sm:$0xff]  }
 0x286   :  { %9167 = vmatprep.mubr.msk.bf16.mxu1 %vm74_vm0, %v12189_v7  ;;  %2535 = vmatpush1.bf16.msra.mxu1 %v10969_v10 }
 0x287   :  { %2536 = vmatprep.subr.bf16.mxu1 %v10974_v11  ;;  %v11058_v11 = vld [vmem:[%s14102_s5 + $0x5a4] ss:$16 sps:$4 sm:$0xff]  }
 0x288   :  { %3738 = vmatpush1.bf16.msra.mxu0 %v11035_v18  ;;  %v11061_v18 = vld [vmem:[%s14102_s5 + $0x5c4] ss:$16 sps:$4 sm:$0xff]  }
 0x289   :  { %3739 = vmatprep.subr.bf16.mxu0 %v11040_v49 }
 0x28a   :  { %2537 = vmatpush1.bf16.msra.mxu1 %v10972_v14 }
 0x28b   :  { %2538 = vmatprep.subr.bf16.mxu1 %v10977_v15 }
 0x28c   :  { %3740 = vmatpush1.bf16.msra.mxu0 %v11038_v23 }
 0x28d   :  { %2480 = vmatmul.mubr.bf16.gmra.mrb[8].mxu1 %v12174_v43 }
 0x28e   :  { %9168 = vmatprep.mubr.msk.bf16.mxu1 %vm74_vm0, %v12201_v27  ;;  %2539 = vmatpush1.bf16.msra.mxu1 %v10975_v17 }
 0x28f   :  { %2540 = vmatprep.subr.bf16.mxu1 %v10980_v6 }
 0x292   :  { %2541 = vmatpush1.bf16.msra.mxu1 %v10978_v20 }
 0x293   :  { %2542 = vmatprep.subr.bf16.mxu1 %v10983_v22 }
 0x295   :  { %2490 = vmatmul.mubr.bf16.gmra.mrb[12].mxu1 %v12186_v63 }
 0x296   :  { %9169 = vmatprep.mubr.msk.bf16.mxu1 %vm74_vm0, %v12212_v51  ;;  %2543 = vmatpush1.bf16.msra.mxu1 %v10981_v25 }
 0x297   :  { %2544 = vmatprep.subr.bf16.mxu1 %v10986_v26  ;;  %v11059_v26 = vld [vmem:[%s14102_s5 + $0x5c0] ss:$16 sps:$4 sm:$0xff]  }
 0x29a   :  { %2545 = vmatpush1.bf16.msra.mxu1 %v10984_v28 }
 0x29b   :  { %2546 = vmatprep.subr.bf16.mxu1 %v10989_v29 }
 0x29d   :  { %2500 = vmatmul.mubr.bf16.gmra.mrb[16].mxu1 %v12198_v21 }
 0x29e   :  { %9170 = vmatprep.mubr.msk.bf16.mxu1 %vm74_vm0, %v12218_v54  ;;  %2547 = vmatpush1.bf16.msra.mxu1 %v10987_v30  ;;  %v11064_v30 = vld [vmem:[%s14102_s5 + $0x5e4] ss:$16 sps:$4 sm:$0xff]  }
 0x29f   :  { %2548 = vmatprep.subr.bf16.mxu1 %v10992_v33 }
 0x2a2   :  { %2549 = vmatpush1.bf16.msra.mxu1 %v10990_v37 }
 0x2a3   :  { %2550 = vmatprep.subr.bf16.mxu1 %v10995_v39 }
 0x2a5   :  { %2510 = vmatmul.mubr.bf16.gmra.mrb[20].mxu1 %v12210_v46 }
 0x2a6   :  { %2551 = vmatpush1.bf16.msra.mxu1 %v10993_v40  ;;  %9171 = vmatprep.mubr.msk.bf16.mxu1 %vm74_vm0, %v2068_v42 }
 0x2a7   :  { %2552 = vmatprep.subr.bf16.mxu1 %v10998_v41 }
 0x2aa   :  { %2553 = vmatpush1.bf16.msra.mxu1 %v10996_v44 }
 0x2ab   :  { %2554 = vmatprep.subr.bf16.mxu1 %v11001_v45 }
 0x2ad   :  { %2520 = vmatmul.mubr.bf16.gmra.mrb[24].mxu1 %v12248_v38 }
 0x2ae   :  { %2555 = vmatpush1.bf16.msra.mxu1 %v10999_v47  ;;  %9172 = vmatprep.mubr.msk.bf16.mxu1 %vm74_vm0, %v12165_v24  ;;  %v11043_v24 = vld [vmem:[%s14102_s5 + $0x504] ss:$16 sps:$4 sm:$0xff]  }
 0x2af   :  { %2556 = vmatprep.subr.bf16.mxu1 %v11004_v50  ;;  %3741 = vmatprep.subr.bf16.mxu0 %v11043_v24  ;;  %v11067_v47 = vld [vmem:[%s14102_s5 + $0x604] ss:$16 sps:$4 sm:$0xff]  }
 0x2b0   :  { %3742 = vmatpush1.bf16.msra.mxu0 %v11041_v52 }
 0x2b2   :  { %2557 = vmatpush1.bf16.msra.mxu1 %v11002_v35 }
 0x2b5   :  { %2563 = vmatmul.mubr.bf16.vlgmr.msra.gmra.mrb[28].mxu1 %v11721_v36 }
 0x2b6   :  { %9173 = vmatprep.mubr.msk.bf16.mxu1 %vm74_vm0, %v12177_v48  ;;  %v11049_v48 = vld [vmem:[%s14102_s5 + $0x544] ss:$16 sps:$4 sm:$0xff]  }
 0x2bd   :  { %2573 = vmatmul.mubr.bf16.gmra.mrb[32].mxu1 %v12162_v19  ;;  %v11046_v19 = vld [vmem:[%s14102_s5 + $0x524] ss:$16 sps:$4 sm:$0xff]  }
 0x2be   :  { %9174 = vmatprep.mubr.msk.bf16.mxu1 %vm74_vm0, %v12189_v7  ;;  %3743 = vmatprep.subr.bf16.mxu0 %v11046_v19  ;;  %v11052_v7 = vld [vmem:[%s14102_s5 + $0x564] ss:$16 sps:$4 sm:$0xff]   ;;  %v11065_v19 = vld [vmem:[%s14102_s5 + $0x600] ss:$16 sps:$4 sm:$0xff]  }
 0x2c5   :  { %2583 = vmatmul.mubr.bf16.gmra.mrb[36].mxu1 %v12174_v43  ;;  %v11044_v43 = vld [vmem:[%s14102_s5 + $0x520] ss:$16 sps:$4 sm:$0xff]  }
 0x2c6   :  { %9175 = vmatprep.mubr.msk.bf16.mxu1 %vm74_vm0, %v12201_v27  ;;  %3744 = vmatpush1.bf16.msra.mxu0 %v11044_v43  ;;  %v11050_v27 = vld [vmem:[%s14102_s5 + $0x560] ss:$16 sps:$4 sm:$0xff]  }
 0x2c7   :  { %3745 = vmatprep.subr.bf16.mxu0 %v11049_v48 }
 0x2cd   :  { %2593 = vmatmul.mubr.bf16.gmra.mrb[40].mxu1 %v12186_v63  ;;  %v11047_v63 = vld [vmem:[%s14102_s5 + $0x540] ss:$16 sps:$4 sm:$0xff]  }
 0x2ce   :  { %9176 = vmatprep.mubr.msk.bf16.mxu1 %vm74_vm0, %v12212_v51  ;;  %3746 = vmatpush1.bf16.msra.mxu0 %v11047_v63  ;;  %v11070_v63 = vld [vmem:[%s14102_s5 + $0x624] ss:$16 sps:$4 sm:$0xff]  }
 0x2cf   :  { %3747 = vmatprep.subr.bf16.mxu0 %v11052_v7 }
 0x2d2   :  { %3748 = vmatpush1.bf16.msra.mxu0 %v11050_v27 }
 0x2d5   :  { %2603 = vmatmul.mubr.bf16.gmra.mrb[44].mxu1 %v12198_v21  ;;  %v11055_v21 = vld [vmem:[%s14102_s5 + $0x584] ss:$16 sps:$4 sm:$0xff]  }
 0x2d6   :  { %9177 = vmatprep.mubr.msk.bf16.mxu1 %vm74_vm0, %v12218_v54  ;;  %3820 = vmatprep.subr.bf16.mxu0 %v11055_v21 }
 0x2dd   :  { %2613 = vmatmul.mubr.bf16.gmra.mrb[48].mxu1 %v12210_v46  ;;  %v12435_v46 = vld [vmem:[%s14101_s4] sm:$0xf] }
 0x2de   :  { %9178 = vmatprep.mubr.msk.bf16.mxu1 %vm74_vm0, %v2068_v42  ;;  %v12439_v51 = vrot.slane %v12435_v46, %v12124_v32  ;;  %v12443_v54 = vrot.slane %v12435_v46, %v12130_v34  ;;  %v11062_v42 = vld [vmem:[%s14102_s5 + $0x5e0] ss:$16 sps:$4 sm:$0xff]  }
 0x2e5   :  { %2623 = vmatmul.mubr.bf16.gmra.mrb[52].mxu1 %v12248_v38 }
 0x350   :  { %v2461_v53 = vpop.f32.mrb[0].mxu1 }
 0x351   :  { %v2711_v55 = vadd.f32 %v12439_v51, %v2461_v53  ;;  %v2463_v56 = vpop.f32.mrb[1].mxu1 }
 0x352   :  { %v2712_v57 = vadd.f32 %v12443_v54, %v2463_v56  ;;  %v2465_v38 = vpop.f32.mrb[2].mxu1  ;;  %v11068_v56 = vld [vmem:[%s14102_s5 + $0x620] ss:$16 sps:$4 sm:$0xff]  }
 0x353   :  { %v2715_v58 = vadd.f32 %v12439_v51, %v2465_v38  ;;  %v2467_v59 = vpop.f32.mrb[3].mxu1  ;;  %v2767_v61 = vmax.f32 %v2711_v55, 0.0 }
 0x354   :  { %v2716_v60 = vadd.f32 %v12443_v54, %v2467_v59  ;;  %v2768_v2 = vmax.f32 %v2712_v57, 0.0 }
 0x355   :  { %v2771_v62 = vmax.f32 %v2715_v58, 0.0  ;;  %v11073_v58 = vld [vmem:[%s14102_s5 + $0x644] ss:$16 sps:$4 sm:$0xff]  }
 0x356   :  { %v2772_v3 = vmax.f32 %v2716_v60, 0.0 }
 0x357   :  { %v12449_v4 = vpack.c.bf16 %v2771_v62, %v2767_v61 }
 0x358   :  { %v12451_v5 = vpack.c.bf16 %v2772_v3, %v2768_v2  ;;  %v2471_v8 = vpop.f32.mrb[4].mxu1  ;;  %v11071_v3 = vld [vmem:[%s14102_s5 + $0x640] ss:$16 sps:$4 sm:$0xff]  }
 0x359   :  { %2851 = vst [vmem:[#allocation3 + $0x20] sm:$0xff] %v12449_v4  ;;  %v2719_v1 = vadd.f32 %v12439_v51, %v2471_v8  ;;  %v2473_v10 = vpop.f32.mrb[5].mxu1 }
 0x35a   :  { %2852 = vst [vmem:[#allocation3 + $0x28] sm:$0xff] %v12451_v5  ;;  %v2720_v12 = vadd.f32 %v12443_v54, %v2473_v10  ;;  %v2475_v13 = vpop.f32.mrb[6].mxu1  ;;  %3749 = vmatprep.mubr.bf16.mxu0 %v12451_v5 }
 0x35b   :  { %v2723_v14 = vadd.f32 %v12439_v51, %v2475_v13  ;;  %v2477_v15 = vpop.f32.mrb[7].mxu1  ;;  %3750 = vmatmul.mubr.bf16.vlgmr.msra.gmra.mrb[28].mxu0 %v12449_v4  ;;  %v2775_v17 = vmax.f32 %v2719_v1, 0.0  ;;  %v11076_v1 = vld [vmem:[%s14102_s5 + $0x664] ss:$16 sps:$4 sm:$0xff]  }
 0x35c   :  { %v2724_v0 = vadd.f32 %v12443_v54, %v2477_v15  ;;  %3821 = vmatpush1.bf16.msra.mxu0 %v11053_v9  ;;  %v2776_v49 = vmax.f32 %v2720_v12, 0.0  ;;  %v11074_v15 = vld [vmem:[%s14102_s5 + $0x660] ss:$16 sps:$4 sm:$0xff]  }
 0x35d   :  { %v2779_v6 = vmax.f32 %v2723_v14, 0.0  ;;  %3822 = vmatprep.subr.bf16.mxu0 %v11058_v11 }
 0x35e   :  { %v2780_v20 = vmax.f32 %v2724_v0, 0.0 }
 0x35f   :  { %v12473_v22 = vpack.c.bf16 %v2779_v6, %v2775_v17  ;;  %v11079_v17 = vld [vmem:[%s14102_s5 + $0x684] ss:$16 sps:$4 sm:$0xff]  }
 0x360   :  { %v12475_v23 = vpack.c.bf16 %v2780_v20, %v2776_v49  ;;  %v2481_v25 = vpop.f32.mrb[8].mxu1  ;;  %3823 = vmatpush1.bf16.msra.mxu0 %v11056_v16 }
 0x361   :  { %2855 = vst [vmem:[#allocation3 + $0x40] sm:$0xff] %v12473_v22  ;;  %v2727_v28 = vadd.f32 %v12439_v51, %v2481_v25  ;;  %v2483_v29 = vpop.f32.mrb[9].mxu1  ;;  %3824 = vmatprep.subr.bf16.mxu0 %v11061_v18 }
 0x362   :  { %2856 = vst [vmem:[#allocation3 + $0x48] sm:$0xff] %v12475_v23  ;;  %v2728_v33 = vadd.f32 %v12443_v54, %v2483_v29  ;;  %v2485_v37 = vpop.f32.mrb[10].mxu1  ;;  %3759 = vmatprep.mubr.bf16.mxu0 %v12475_v23 }
 0x363   :  { %v2731_v39 = vadd.f32 %v12439_v51, %v2485_v37  ;;  %v2487_v40 = vpop.f32.mrb[11].mxu1  ;;  %3760 = vmatmul.mubr.bf16.gmra.mrb[32].mxu0 %v12473_v22  ;;  %v2783_v44 = vmax.f32 %v2727_v28, 0.0 }
 0x364   :  { %v2732_v41 = vadd.f32 %v12443_v54, %v2487_v40  ;;  %3825 = vmatpush1.bf16.msra.mxu0 %v11059_v26  ;;  %v2784_v50 = vmax.f32 %v2728_v33, 0.0  ;;  %v11077_v26 = vld [vmem:[%s14102_s5 + $0x680] ss:$16 sps:$4 sm:$0xff]  }
 0x365   :  { %v2787_v45 = vmax.f32 %v2731_v39, 0.0  ;;  %3826 = vmatprep.subr.bf16.mxu0 %v11064_v30  ;;  %v11082_v30 = vld [vmem:[%s14102_s5 + $0x6a4] ss:$16 sps:$4 sm:$0xff]  }
 0x366   :  { %v2788_v35 = vmax.f32 %v2732_v41, 0.0 }
 0x367   :  { %v12497_v36 = vpack.c.bf16 %v2787_v45, %v2783_v44 }
 0x368   :  { %v12499_v24 = vpack.c.bf16 %v2788_v35, %v2784_v50  ;;  %v2491_v52 = vpop.f32.mrb[12].mxu1  ;;  %3827 = vmatpush1.bf16.msra.mxu0 %v11062_v42  ;;  %v11080_v42 = vld [vmem:[%s14102_s5 + $0x6a0] ss:$16 sps:$4 sm:$0xff]  }
 0x369   :  { %2859 = vst [vmem:[#allocation3 + $0x60] sm:$0xff] %v12497_v36  ;;  %v2735_v43 = vadd.f32 %v12439_v51, %v2491_v52  ;;  %v2493_v48 = vpop.f32.mrb[13].mxu1  ;;  %3828 = vmatprep.subr.bf16.mxu0 %v11067_v47  ;;  %v11085_v47 = vld [vmem:[%s14102_s5 + $0x6c4] ss:$16 sps:$4 sm:$0xff]  }
 0x36a   :  { %2860 = vst [vmem:[#allocation3 + $0x68] sm:$0xff] %v12499_v24  ;;  %v2736_v7 = vadd.f32 %v12443_v54, %v2493_v48  ;;  %v2495_v27 = vpop.f32.mrb[14].mxu1  ;;  %3769 = vmatprep.mubr.bf16.mxu0 %v12499_v24  ;;  %v11083_v48 = vld [vmem:[%s14102_s5 + $0x6c0] ss:$16 sps:$4 sm:$0xff]  }
 0x36b   :  { %v2739_v21 = vadd.f32 %v12439_v51, %v2495_v27  ;;  %v2497_v53 = vpop.f32.mrb[15].mxu1  ;;  %3770 = vmatmul.mubr.bf16.gmra.mrb[36].mxu0 %v12497_v36  ;;  %v2791_v57 = vmax.f32 %v2735_v43, 0.0  ;;  %v2701_v27 = vsub.s32 2, %v12121_v31 }
 0x36c   :  { %v2740_v55 = vadd.f32 %v12443_v54, %v2497_v53  ;;  %3829 = vmatpush1.bf16.msra.mxu0 %v11065_v19  ;;  %v2792_v59 = vmax.f32 %v2736_v7, 0.0 }
 0x36d   :  { %v2795_v38 = vmax.f32 %v2739_v21, 0.0  ;;  %3830 = vmatprep.subr.bf16.mxu0 %v11070_v63  ;;  %v11088_v21 = vld [vmem:[%s14102_s5 + $0x6e4] ss:$16 sps:$4 sm:$0xff]  }
 0x36e   :  { %v2796_v60 = vmax.f32 %v2740_v55, 0.0 }
 0x36f   :  { %v12521_v61 = vpack.c.bf16 %v2795_v38, %v2791_v57 }
 0x370   :  { %v12523_v62 = vpack.c.bf16 %v2796_v60, %v2792_v59  ;;  %v2501_v2 = vpop.f32.mrb[16].mxu1  ;;  %3831 = vmatpush1.bf16.msra.mxu0 %v11068_v56  ;;  %v2705_v56 = vsub.s32 3, %v12121_v31  ;;  %v11086_v59 = vld [vmem:[%s14102_s5 + $0x6e0] ss:$16 sps:$4 sm:$0xff]  }
 0x371   :  { %2863 = vst [vmem:[#allocation3 + $0x80] sm:$0xff] %v12521_v61  ;;  %v2743_v8 = vadd.f32 %v12439_v51, %v2501_v2  ;;  %v2503_v9 = vpop.f32.mrb[17].mxu1  ;;  %3832 = vmatprep.subr.bf16.mxu0 %v11073_v58 }
 0x372   :  { %2864 = vst [vmem:[#allocation3 + $0x88] sm:$0xff] %v12523_v62  ;;  %v2744_v10 = vadd.f32 %v12443_v54, %v2503_v9  ;;  %v2505_v11 = vpop.f32.mrb[18].mxu1  ;;  %3779 = vmatprep.mubr.bf16.mxu0 %v12523_v62 }
 0x373   :  { %v2747_v12 = vadd.f32 %v12439_v51, %v2505_v11  ;;  %v2507_v13 = vpop.f32.mrb[19].mxu1  ;;  %3780 = vmatmul.mubr.bf16.gmra.mrb[40].mxu0 %v12521_v61  ;;  %v2799_v0 = vmax.f32 %v2743_v8, 0.0 }
 0x374   :  { %v2748_v14 = vadd.f32 %v12443_v54, %v2507_v13  ;;  %3833 = vmatpush1.bf16.msra.mxu0 %v11071_v3  ;;  %v2800_v6 = vmax.f32 %v2744_v10, 0.0  ;;  %v12595_v3 = vrot.slane %v12435_v46, %v2701_v27 }
 0x375   :  { %v2803_v16 = vmax.f32 %v2747_v12, 0.0  ;;  %3834 = vmatprep.subr.bf16.mxu0 %v11076_v1 }
 0x376   :  { %v2804_v18 = vmax.f32 %v2748_v14, 0.0 }
 0x377   :  { %v12545_v49 = vpack.c.bf16 %v2803_v16, %v2799_v0 }
 0x378   :  { %v12547_v20 = vpack.c.bf16 %v2804_v18, %v2800_v6  ;;  %v2511_v25 = vpop.f32.mrb[20].mxu1  ;;  %3835 = vmatpush1.bf16.msra.mxu0 %v11074_v15 }
 0x379   :  { %2867 = vst [vmem:[#allocation3 + $0xa0] sm:$0xff] %v12545_v49  ;;  %v2751_v28 = vadd.f32 %v12439_v51, %v2511_v25  ;;  %v2513_v29 = vpop.f32.mrb[21].mxu1  ;;  %3836 = vmatprep.subr.bf16.mxu0 %v11079_v17 }
 0x37a   :  { %2868 = vst [vmem:[#allocation3 + $0xa8] sm:$0xff] %v12547_v20  ;;  %v2752_v33 = vadd.f32 %v12443_v54, %v2513_v29  ;;  %v2515_v37 = vpop.f32.mrb[22].mxu1  ;;  %3789 = vmatprep.mubr.bf16.mxu0 %v12547_v20 }
 0x37b   :  { %v2755_v39 = vadd.f32 %v12439_v51, %v2515_v37  ;;  %v2517_v40 = vpop.f32.mrb[23].mxu1  ;;  %3790 = vmatmul.mubr.bf16.gmra.mrb[44].mxu0 %v12545_v49  ;;  %v2807_v44 = vmax.f32 %v2751_v28, 0.0 }
 0x37c   :  { %v2756_v41 = vadd.f32 %v12443_v54, %v2517_v40  ;;  %3837 = vmatpush1.bf16.msra.mxu0 %v11077_v26  ;;  %v2808_v50 = vmax.f32 %v2752_v33, 0.0 }
 0x37d   :  { %v2811_v45 = vmax.f32 %v2755_v39, 0.0  ;;  %3838 = vmatprep.subr.bf16.mxu0 %v11082_v30 }
 0x37e   :  { %v2812_v35 = vmax.f32 %v2756_v41, 0.0 }
 0x37f   :  { %v12569_v52 = vpack.c.bf16 %v2811_v45, %v2807_v44 }
 0x380   :  { %v12571_v19 = vpack.c.bf16 %v2812_v35, %v2808_v50  ;;  %v2521_v43 = vpop.f32.mrb[24].mxu1  ;;  %3839 = vmatpush1.bf16.msra.mxu0 %v11080_v42 }
 0x381   :  { %2871 = vst [vmem:[#allocation3 + $0xc0] sm:$0xff] %v12569_v52  ;;  %v2759_v63 = vadd.f32 %v12439_v51, %v2521_v43  ;;  %v2523_v7 = vpop.f32.mrb[25].mxu1  ;;  %3840 = vmatprep.subr.bf16.mxu0 %v11085_v47 }
 0x382   :  { %2872 = vst [vmem:[#allocation3 + $0xc8] sm:$0xff] %v12571_v19  ;;  %v2760_v53 = vadd.f32 %v12443_v54, %v2523_v7  ;;  %v2525_v55 = vpop.f32.mrb[26].mxu1  ;;  %3799 = vmatprep.mubr.bf16.mxu0 %v12571_v19 }
 0x383   :  { %v2763_v57 = vadd.f32 %v12439_v51, %v2525_v55  ;;  %v2527_v38 = vpop.f32.mrb[27].mxu1  ;;  %3800 = vmatmul.mubr.bf16.gmra.mrb[48].mxu0 %v12569_v52  ;;  %v2815_v60 = vmax.f32 %v2759_v63, 0.0  ;;  %v11091_v51 = vld [vmem:[%s14102_s5 + $0x38c] ss:$16 sps:$4 sm:$0xff]   ;;  %v11089_v63 = vld [vmem:[%s14102_s5 + $0x388] ss:$16 sps:$4 sm:$0xff]  }
 0x384   :  { %v2764_v58 = vadd.f32 %v12443_v54, %v2527_v38  ;;  %3841 = vmatpush1.bf16.msra.mxu0 %v11083_v48  ;;  %v2816_v8 = vmax.f32 %v2760_v53, 0.0  ;;  %v12603_v54 = vrot.slane %v12435_v46, %v2705_v56  ;;  %v11094_v55 = vld [vmem:[%s14102_s5 + $0x3ac] ss:$16 sps:$4 sm:$0xff]  }
 0x385   :  { %v2819_v2 = vmax.f32 %v2763_v57, 0.0  ;;  %3842 = vmatprep.subr.bf16.mxu0 %v11088_v21 }
 0x386   :  { %v2820_v9 = vmax.f32 %v2764_v58, 0.0 }
 0x387   :  { %v12605_v1 = vpack.c.bf16 %v2819_v2, %v2815_v60  ;;  %v11092_v2 = vld [vmem:[%s14102_s5 + $0x3a8] ss:$16 sps:$4 sm:$0xff]  }
 0x388   :  { %v12607_v10 = vpack.c.bf16 %v2820_v9, %v2816_v8  ;;  %v2564_v11 = vpop.f32.mrb[28].mxu1  ;;  %3843 = vmatpush1.bf16.msra.mxu0 %v11086_v59  ;;  %v11097_v9 = vld [vmem:[%s14102_s5 + $0x3cc] ss:$16 sps:$4 sm:$0xff]  }
 0x389   :  { %2875 = vst [vmem:[#allocation3 + $0xe0] sm:$0xff] %v12605_v1  ;;  %v2713_v12 = vadd.f32 %v12595_v3, %v2564_v11  ;;  %v2566_v13 = vpop.f32.mrb[29].mxu1  ;;  %3923 = vmatprep.subr.bf16.mxu0 %v11091_v51 }
 0x38a   :  { %2876 = vst [vmem:[#allocation3 + $0xe8] sm:$0xff] %v12607_v10  ;;  %v2714_v14 = vadd.f32 %v12603_v54, %v2566_v13  ;;  %v2568_v15 = vpop.f32.mrb[30].mxu1  ;;  %3809 = vmatprep.mubr.bf16.mxu0 %v12607_v10 }
 0x38b   :  { %v2717_v46 = vadd.f32 %v12595_v3, %v2568_v15  ;;  %v2570_v0 = vpop.f32.mrb[31].mxu1  ;;  %3810 = vmatmul.mubr.bf16.gmra.mrb[52].mxu0 %v12605_v1  ;;  %v2769_v17 = vmax.f32 %v2713_v12, 0.0 }
 0x38c   :  { %v2718_v16 = vadd.f32 %v12603_v54, %v2570_v0  ;;  %v2770_v18 = vmax.f32 %v2714_v14, 0.0 }
 0x38d   :  { %v2773_v6 = vmax.f32 %v2717_v46, 0.0  ;;  %v11095_v46 = vld [vmem:[%s14102_s5 + $0x3c8] ss:$16 sps:$4 sm:$0xff]  }
 0x38e   :  { %v2774_v25 = vmax.f32 %v2718_v16, 0.0 }
 0x38f   :  { %v12617_v26 = vpack.c.bf16 %v2773_v6, %v2769_v17  ;;  %v11100_v6 = vld [vmem:[%s14102_s5 + $0x3ec] ss:$16 sps:$4 sm:$0xff]  }
 0x390   :  { %v2826_v28 = vpack.c.bf16 %v2774_v25, %v2770_v18  ;;  %v2574_v29 = vpop.f32.mrb[32].mxu1 }
 0x391   :  { %2853 = vst [vmem:[#allocation3 + $0x30] sm:$0xff] %v12617_v26  ;;  %v2721_v30 = vadd.f32 %v12595_v3, %v2574_v29  ;;  %v2576_v33 = vpop.f32.mrb[33].mxu1 }
 0x392   :  { %2854 = vst.msk [vmem:[#allocation3 + $0x38] sm:$0xff] %vm81_vm1, %v2826_v28  ;;  %v2722_v37 = vadd.f32 %v12603_v54, %v2576_v33  ;;  %v2578_v39 = vpop.f32.mrb[34].mxu1  ;;  %v11098_v33 = vld [vmem:[%s14102_s5 + $0x3e8] ss:$16 sps:$4 sm:$0xff]  }
 0x393   :  { %v2725_v40 = vadd.f32 %v12595_v3, %v2578_v39  ;;  %v2580_v41 = vpop.f32.mrb[35].mxu1  ;;  %v2777_v44 = vmax.f32 %v2721_v30, 0.0 }
 0x394   :  { %v2726_v42 = vadd.f32 %v12603_v54, %v2580_v41  ;;  %v2778_v47 = vmax.f32 %v2722_v37, 0.0 }
 0x395   :  { %v2781_v45 = vmax.f32 %v2725_v40, 0.0  ;;  %v11103_v40 = vld [vmem:[%s14102_s5 + $0x40c] ss:$16 sps:$4 sm:$0xff]  }
 0x396   :  { %v2782_v50 = vmax.f32 %v2726_v42, 0.0 }
 0x397   :  { %v12625_v35 = vpack.c.bf16 %v2781_v45, %v2777_v44 }
 0x398   :  { %v2830_v43 = vpack.c.bf16 %v2782_v50, %v2778_v47  ;;  %v2584_v48 = vpop.f32.mrb[36].mxu1  ;;  %v11101_v50 = vld [vmem:[%s14102_s5 + $0x408] ss:$16 sps:$4 sm:$0xff]  }
 0x399   :  { %2857 = vst [vmem:[#allocation3 + $0x50] sm:$0xff] %v12625_v35  ;;  %v2729_v7 = vadd.f32 %v12595_v3, %v2584_v48  ;;  %v2586_v21 = vpop.f32.mrb[37].mxu1  ;;  %v12632_v53 = vld [vmem:[#allocation3 + $0x38] sm:$0xff] }
 0x39a   :  { %2858 = vst.msk [vmem:[#allocation3 + $0x58] sm:$0xff] %vm81_vm1, %v2830_v43  ;;  %v2730_v57 = vadd.f32 %v12603_v54, %v2586_v21  ;;  %v2588_v38 = vpop.f32.mrb[38].mxu1  ;;  %9403 = vmatprep.mubr.msk.bf16.mxu0 %vm81_vm1, %v12632_v53 }
 0x39b   :  { %v2733_v58 = vadd.f32 %v12595_v3, %v2588_v38  ;;  %v2590_v59 = vpop.f32.mrb[39].mxu1  ;;  %3853 = vmatmul.mubr.bf16.vlgmr.msra.gmra.mrb[28].mxu0 %v12617_v26  ;;  %v2785_v51 = vmax.f32 %v2729_v7, 0.0  ;;  %v11106_v7 = vld [vmem:[%s14102_s5 + $0x42c] ss:$16 sps:$4 sm:$0xff]  }
 0x39c   :  { %v2734_v60 = vadd.f32 %v12603_v54, %v2590_v59  ;;  %3924 = vmatpush1.bf16.msra.mxu0 %v11089_v63  ;;  %v2786_v11 = vmax.f32 %v2730_v57, 0.0  ;;  %v11104_v59 = vld [vmem:[%s14102_s5 + $0x428] ss:$16 sps:$4 sm:$0xff]  }
 0x39d   :  { %v2789_v8 = vmax.f32 %v2733_v58, 0.0  ;;  %3925 = vmatprep.subr.bf16.mxu0 %v11094_v55 }
 0x39e   :  { %v2790_v12 = vmax.f32 %v2734_v60, 0.0 }
 0x39f   :  { %v12650_v13 = vpack.c.bf16 %v2789_v8, %v2785_v51  ;;  %v11109_v51 = vld [vmem:[%s14102_s5 + $0x44c] ss:$16 sps:$4 sm:$0xff]  }
 0x3a0   :  { %v2834_v14 = vpack.c.bf16 %v2790_v12, %v2786_v11  ;;  %3926 = vmatpush1.bf16.msra.mxu0 %v11092_v2  ;;  %v2594_v15 = vpop.f32.mrb[40].mxu1 }
 0x3a1   :  { %2861 = vst [vmem:[#allocation3 + $0x70] sm:$0xff] %v12650_v13  ;;  %v2737_v0 = vadd.f32 %v12595_v3, %v2594_v15  ;;  %v2596_v16 = vpop.f32.mrb[41].mxu1  ;;  %v12657_v17 = vld [vmem:[#allocation3 + $0x58] sm:$0xff]  ;;  %3927 = vmatprep.subr.bf16.mxu0 %v11097_v9 }
 0x3a2   :  { %2862 = vst.msk [vmem:[#allocation3 + $0x78] sm:$0xff] %vm81_vm1, %v2834_v14  ;;  %v2738_v18 = vadd.f32 %v12603_v54, %v2596_v16  ;;  %v2598_v25 = vpop.f32.mrb[42].mxu1  ;;  %9404 = vmatprep.mubr.msk.bf16.mxu0 %vm81_vm1, %v12657_v17  ;;  %v11107_v15 = vld [vmem:[%s14102_s5 + $0x448] ss:$16 sps:$4 sm:$0xff]  }
 0x3a3   :  { %v2741_v28 = vadd.f32 %v12595_v3, %v2598_v25  ;;  %v2600_v29 = vpop.f32.mrb[43].mxu1  ;;  %3863 = vmatmul.mubr.bf16.gmra.mrb[32].mxu0 %v12625_v35  ;;  %v2793_v37 = vmax.f32 %v2737_v0, 0.0 }
 0x3a4   :  { %v2742_v30 = vadd.f32 %v12603_v54, %v2600_v29  ;;  %3928 = vmatpush1.bf16.msra.mxu0 %v11095_v46  ;;  %v2794_v41 = vmax.f32 %v2738_v18, 0.0 }
 0x3a5   :  { %v2797_v39 = vmax.f32 %v2741_v28, 0.0  ;;  %3929 = vmatprep.subr.bf16.mxu0 %v11100_v6  ;;  %v11112_v6 = vld [vmem:[%s14102_s5 + $0x46c] ss:$16 sps:$4 sm:$0xff]  }
 0x3a6   :  { %v2798_v42 = vmax.f32 %v2742_v30, 0.0 }
 0x3a7   :  { %v12675_v44 = vpack.c.bf16 %v2797_v39, %v2793_v37 }
 0x3a8   :  { %v2838_v45 = vpack.c.bf16 %v2798_v42, %v2794_v41  ;;  %3930 = vmatpush1.bf16.msra.mxu0 %v11098_v33  ;;  %v2604_v47 = vpop.f32.mrb[44].mxu1  ;;  %v11110_v33 = vld [vmem:[%s14102_s5 + $0x468] ss:$16 sps:$4 sm:$0xff]  }
 0x3a9   :  { %2865 = vst [vmem:[#allocation3 + $0x90] sm:$0xff] %v12675_v44  ;;  %v2745_v43 = vadd.f32 %v12595_v3, %v2604_v47  ;;  %v2606_v48 = vpop.f32.mrb[45].mxu1  ;;  %v12682_v63 = vld [vmem:[#allocation3 + $0x78] sm:$0xff]  ;;  %3931 = vmatprep.subr.bf16.mxu0 %v11103_v40 }
 0x3aa   :  { %2866 = vst.msk [vmem:[#allocation3 + $0x98] sm:$0xff] %vm81_vm1, %v2838_v45  ;;  %v2746_v21 = vadd.f32 %v12603_v54, %v2606_v48  ;;  %v2608_v55 = vpop.f32.mrb[46].mxu1  ;;  %9405 = vmatprep.mubr.msk.bf16.mxu0 %vm81_vm1, %v12682_v63  ;;  %v11115_v40 = vld [vmem:[%s14102_s5 + $0x48c] ss:$16 sps:$4 sm:$0xff]  }
 0x3ab   :  { %v2749_v57 = vadd.f32 %v12595_v3, %v2608_v55  ;;  %v2610_v38 = vpop.f32.mrb[47].mxu1  ;;  %3873 = vmatmul.mubr.bf16.gmra.mrb[36].mxu0 %v12650_v13  ;;  %v2801_v60 = vmax.f32 %v2745_v43, 0.0  ;;  %v11113_v43 = vld [vmem:[%s14102_s5 + $0x488] ss:$16 sps:$4 sm:$0xff]   ;;  %v11118_v55 = vld [vmem:[%s14102_s5 + $0x4ac] ss:$16 sps:$4 sm:$0xff]  }
 0x3ac   :  { %v2750_v58 = vadd.f32 %v12603_v54, %v2610_v38  ;;  %3932 = vmatpush1.bf16.msra.mxu0 %v11101_v50  ;;  %v2802_v8 = vmax.f32 %v2746_v21, 0.0 }
 0x3ad   :  { %v2805_v2 = vmax.f32 %v2749_v57, 0.0  ;;  %3933 = vmatprep.subr.bf16.mxu0 %v11106_v7 }
 0x3ae   :  { %v2806_v9 = vmax.f32 %v2750_v58, 0.0 }
 0x3af   :  { %v12700_v11 = vpack.c.bf16 %v2805_v2, %v2801_v60  ;;  %v11116_v2 = vld [vmem:[%s14102_s5 + $0x4a8] ss:$16 sps:$4 sm:$0xff]  }
 0x3b0   :  { %v2842_v12 = vpack.c.bf16 %v2806_v9, %v2802_v8  ;;  %3934 = vmatpush1.bf16.msra.mxu0 %v11104_v59  ;;  %v2614_v14 = vpop.f32.mrb[48].mxu1  ;;  %v11121_v9 = vld [vmem:[%s14102_s5 + $0x4cc] ss:$16 sps:$4 sm:$0xff]  }
 0x3b1   :  { %2869 = vst [vmem:[#allocation3 + $0xb0] sm:$0xff] %v12700_v11  ;;  %v2753_v46 = vadd.f32 %v12595_v3, %v2614_v14  ;;  %v2616_v0 = vpop.f32.mrb[49].mxu1  ;;  %v12707_v16 = vld [vmem:[#allocation3 + $0x98] sm:$0xff]  ;;  %3935 = vmatprep.subr.bf16.mxu0 %v11109_v51 }
 0x3b2   :  { %2870 = vst.msk [vmem:[#allocation3 + $0xb8] sm:$0xff] %vm81_vm1, %v2842_v12  ;;  %v2754_v18 = vadd.f32 %v12603_v54, %v2616_v0  ;;  %v2618_v25 = vpop.f32.mrb[50].mxu1  ;;  %9406 = vmatprep.mubr.msk.bf16.mxu0 %vm81_vm1, %v12707_v16  ;;  %v11124_v0 = vld [vmem:[%s14102_s5 + $0x4ec] ss:$16 sps:$4 sm:$0xff]  }
 0x3b3   :  { %v2757_v28 = vadd.f32 %v12595_v3, %v2618_v25  ;;  %v2620_v29 = vpop.f32.mrb[51].mxu1  ;;  %3883 = vmatmul.mubr.bf16.gmra.mrb[40].mxu0 %v12675_v44  ;;  %v2809_v37 = vmax.f32 %v2753_v46, 0.0  ;;  %v11125_v25 = vld [vmem:[%s14102_s5 + $0x508] ss:$16 sps:$4 sm:$0xff]  }
 0x3b4   :  { %v2758_v30 = vadd.f32 %v12603_v54, %v2620_v29  ;;  %3936 = vmatpush1.bf16.msra.mxu0 %v11107_v15  ;;  %v2810_v41 = vmax.f32 %v2754_v18, 0.0  ;;  %v11127_v18 = vld [vmem:[%s14102_s5 + $0x50c] ss:$16 sps:$4 sm:$0xff]  }
 0x3b5   :  { %v2813_v39 = vmax.f32 %v2757_v28, 0.0  ;;  %3937 = vmatprep.subr.bf16.mxu0 %v11112_v6  ;;  %v11122_v6 = vld [vmem:[%s14102_s5 + $0x4e8] ss:$16 sps:$4 sm:$0xff]   ;;  %v11130_v29 = vld [vmem:[%s14102_s5 + $0x52c] ss:$16 sps:$4 sm:$0xff]  }
 0x3b6   :  { %v2814_v42 = vmax.f32 %v2758_v30, 0.0  ;;  %v11128_v30 = vld [vmem:[%s14102_s5 + $0x528] ss:$16 sps:$4 sm:$0xff]  }
 0x3b7   :  { %v12725_v45 = vpack.c.bf16 %v2813_v39, %v2809_v37  ;;  %v11131_v37 = vld [vmem:[%s14102_s5 + $0x548] ss:$16 sps:$4 sm:$0xff]   ;;  %v11136_v39 = vld [vmem:[%s14102_s5 + $0x56c] ss:$16 sps:$4 sm:$0xff]  }
 0x3b8   :  { %v2846_v47 = vpack.c.bf16 %v2814_v42, %v2810_v41  ;;  %3938 = vmatpush1.bf16.msra.mxu0 %v11110_v33  ;;  %v2624_v50 = vpop.f32.mrb[52].mxu1  ;;  %v11133_v33 = vld [vmem:[%s14102_s5 + $0x54c] ss:$16 sps:$4 sm:$0xff]   ;;  %v11137_v42 = vld [vmem:[%s14102_s5 + $0x588] ss:$16 sps:$4 sm:$0xff]  }
 0x3b9   :  { %2873 = vst [vmem:[#allocation3 + $0xd0] sm:$0xff] %v12725_v45  ;;  %v2761_v48 = vadd.f32 %v12595_v3, %v2624_v50  ;;  %v2626_v7 = vpop.f32.mrb[53].mxu1  ;;  %v12732_v21 = vld [vmem:[#allocation3 + $0xb8] sm:$0xff]  ;;  %3939 = vmatprep.subr.bf16.mxu0 %v11115_v40 }
 0x3ba   :  { %2874 = vst.msk [vmem:[#allocation3 + $0xd8] sm:$0xff] %vm81_vm1, %v2846_v47  ;;  %v2762_v57 = vadd.f32 %v12603_v54, %v2626_v7  ;;  %v2628_v38 = vpop.f32.mrb[54].mxu1  ;;  %9407 = vmatprep.mubr.msk.bf16.mxu0 %vm81_vm1, %v12732_v21  ;;  %v11134_v40 = vld [vmem:[%s14102_s5 + $0x568] ss:$16 sps:$4 sm:$0xff]   ;;  %v11139_v41 = vld [vmem:[%s14102_s5 + $0x58c] ss:$16 sps:$4 sm:$0xff]  }
 0x3bb   :  { %v2765_v58 = vadd.f32 %v12595_v3, %v2628_v38  ;;  %v2630_v59 = vpop.f32.mrb[55].mxu1  ;;  %3893 = vmatmul.mubr.bf16.gmra.mrb[44].mxu0 %v12700_v11  ;;  %v2817_v51 = vmax.f32 %v2761_v48, 0.0  ;;  %v11142_v47 = vld [vmem:[%s14102_s5 + $0x5ac] ss:$16 sps:$4 sm:$0xff]   ;;  %v11140_v50 = vld [vmem:[%s14102_s5 + $0x5a8] ss:$16 sps:$4 sm:$0xff]  }
 0x3bc   :  { %v2766_v60 = vadd.f32 %v12603_v54, %v2630_v59  ;;  %3940 = vmatpush1.bf16.msra.mxu0 %v11113_v43  ;;  %v2818_v12 = vmax.f32 %v2762_v57, 0.0  ;;  %v11119_v54 = vld [vmem:[%s14102_s5 + $0x4c8] ss:$16 sps:$4 sm:$0xff]   ;;  %v11145_v43 = vld [vmem:[%s14102_s5 + $0x5cc] ss:$16 sps:$4 sm:$0xff]  }
 0x3bd   :  { %v2821_v8 = vmax.f32 %v2765_v58, 0.0  ;;  %3941 = vmatprep.subr.bf16.mxu0 %v11118_v55  ;;  %v11143_v48 = vld [vmem:[%s14102_s5 + $0x5c8] ss:$16 sps:$4 sm:$0xff]   ;;  %v11151_v55 = vld [vmem:[%s14102_s5 + $0x60c] ss:$16 sps:$4 sm:$0xff]  }
 0x3be   :  { %v2822_v14 = vmax.f32 %v2766_v60, 0.0  ;;  %v11146_v7 = vld [vmem:[%s14102_s5 + $0x5e8] ss:$16 sps:$4 sm:$0xff]   ;;  %v11154_v38 = vld [vmem:[%s14102_s5 + $0x62c] ss:$16 sps:$4 sm:$0xff]  }
 0x3bf   :  { %v12750_v3 = vpack.c.bf16 %v2821_v8, %v2817_v51  ;;  %v11149_v57 = vld [vmem:[%s14102_s5 + $0x608] ss:$16 sps:$4 sm:$0xff]   ;;  %v11157_v59 = vld [vmem:[%s14102_s5 + $0x64c] ss:$16 sps:$4 sm:$0xff]  }
 0x3c0   :  { %v2850_v15 = vpack.c.bf16 %v2822_v14, %v2818_v12  ;;  %3942 = vmatpush1.bf16.msra.mxu0 %v11116_v2  ;;  %v11152_v58 = vld [vmem:[%s14102_s5 + $0x628] ss:$16 sps:$4 sm:$0xff]   ;;  %v11160_v2 = vld [vmem:[%s14102_s5 + $0x66c] ss:$16 sps:$4 sm:$0xff]  }
 0x3c1   :  { %2877 = vst [vmem:[#allocation3 + $0xf0] sm:$0xff] %v12750_v3  ;;  %v12756_v46 = vld [vmem:[#allocation3 + $0xd8] sm:$0xff]  ;;  %3943 = vmatprep.subr.bf16.mxu0 %v11121_v9 }
 0x3c2   :  { %2878 = vst.msk [vmem:[#allocation3 + $0xf8] sm:$0xff] %vm81_vm1, %v2850_v15  ;;  %9408 = vmatprep.mubr.msk.bf16.mxu0 %vm81_vm1, %v12756_v46  ;;  %v11155_v60 = vld [vmem:[%s14102_s5 + $0x648] ss:$16 sps:$4 sm:$0xff]   ;;  %v11163_v8 = vld [vmem:[%s14102_s5 + $0x68c] ss:$16 sps:$4 sm:$0xff]  }
 0x3c3   :  { %3903 = vmatmul.mubr.bf16.gmra.mrb[48].mxu0 %v12725_v45  ;;  %v11158_v51 = vld [vmem:[%s14102_s5 + $0x668] ss:$16 sps:$4 sm:$0xff]   ;;  %v11166_v12 = vld [vmem:[%s14102_s5 + $0x6ac] ss:$16 sps:$4 sm:$0xff]  }
 0x3c4   :  { %3944 = vmatpush1.bf16.msra.mxu0 %v11119_v54  ;;  %v11161_v9 = vld [vmem:[%s14102_s5 + $0x688] ss:$16 sps:$4 sm:$0xff]   ;;  %v11169_v15 = vld [vmem:[%s14102_s5 + $0x6cc] ss:$16 sps:$4 sm:$0xff]  }
 0x3c5   :  { %3945 = vmatprep.subr.bf16.mxu0 %v11124_v0  ;;  %v11164_v14 = vld [vmem:[%s14102_s5 + $0x6a8] ss:$16 sps:$4 sm:$0xff]   ;;  %v11172_v0 = vld [vmem:[%s14102_s5 + $0x6ec] ss:$16 sps:$4 sm:$0xff]  }
 0x3c6   :  { %v11167_v54 = vld [vmem:[%s14102_s5 + $0x6c8] ss:$16 sps:$4 sm:$0xff]  }
 0x3c8   :  { %3946 = vmatpush1.bf16.msra.mxu0 %v11122_v6  ;;  %v11170_v6 = vld [vmem:[%s14102_s5 + $0x6e8] ss:$16 sps:$4 sm:$0xff]  }
 0x3c9   :  { %v12774_v28 = vld [vmem:[#allocation3 + $0xf8] sm:$0xff]  ;;  %3947 = vmatprep.subr.bf16.mxu0 %v11127_v18  ;;  %v11175_v18 = vld [vmem:[%s14102_s5 + $0x4] ss:$16 sps:$4 sm:$0xff]  }
 0x3ca   :  { %9409 = vmatprep.mubr.msk.bf16.mxu0 %vm81_vm1, %v12774_v28 }
 0x3cb   :  { %3913 = vmatmul.mubr.bf16.gmra.mrb[52].mxu0 %v12750_v3 }
 0x3cc   :  { %3948 = vmatpush1.bf16.msra.mxu0 %v11125_v25  ;;  %3955 = vmatprep.mubr.bf16.mxu0 %v12451_v5  ;;  %v11178_v25 = vld [vmem:[%s14102_s5 + $0x24] ss:$16 sps:$4 sm:$0xff]  }
 0x3cd   :  { %3949 = vmatprep.subr.bf16.mxu0 %v11130_v29  ;;  %v11181_v29 = vld [vmem:[%s14102_s5 + $0x44] ss:$16 sps:$4 sm:$0xff]  }
 0x3d0   :  { %3950 = vmatpush1.bf16.msra.mxu0 %v11128_v30  ;;  %v11179_v30 = vld [vmem:[%s14102_s5 + $0x40] ss:$16 sps:$4 sm:$0xff]  }
 0x3d1   :  { %3951 = vmatprep.subr.bf16.mxu0 %v11133_v33  ;;  %v11184_v33 = vld [vmem:[%s14102_s5 + $0x64] ss:$16 sps:$4 sm:$0xff]  }
 0x3d4   :  { %3952 = vmatpush1.bf16.msra.mxu0 %v11131_v37  ;;  %v11182_v37 = vld [vmem:[%s14102_s5 + $0x60] ss:$16 sps:$4 sm:$0xff]  }
 0x3d5   :  { %3953 = vmatprep.subr.bf16.mxu0 %v11136_v39  ;;  %v11187_v39 = vld [vmem:[%s14102_s5 + $0x84] ss:$16 sps:$4 sm:$0xff]  }
 0x3d8   :  { %3954 = vmatpush1.bf16.msra.mxu0 %v11134_v40  ;;  %v11185_v40 = vld [vmem:[%s14102_s5 + $0x80] ss:$16 sps:$4 sm:$0xff]  }
 0x3d9   :  { %4026 = vmatprep.subr.bf16.mxu0 %v11139_v41  ;;  %v11190_v41 = vld [vmem:[%s14102_s5 + $0xa4] ss:$16 sps:$4 sm:$0xff]  }
 0x3db   :  { %3956 = vmatmul.mubr.bf16.vlgmr.msra.gmra.mrb[56].mxu0 %v12449_v4  ;;  %v11148_v4 = vld [vmem:[%s14102_s5 + $0x5ec] ss:$16 sps:$4 sm:$0xff]  }
 0x3dc   :  { %3965 = vmatprep.mubr.bf16.mxu0 %v12475_v23  ;;  %4027 = vmatpush1.bf16.msra.mxu0 %v11137_v42  ;;  %v11188_v42 = vld [vmem:[%s14102_s5 + $0xa0] ss:$16 sps:$4 sm:$0xff]  }
 0x3dd   :  { %4028 = vmatprep.subr.bf16.mxu0 %v11142_v47  ;;  %v11193_v47 = vld [vmem:[%s14102_s5 + $0xc4] ss:$16 sps:$4 sm:$0xff]  }
 0x3e0   :  { %4029 = vmatpush1.bf16.msra.mxu0 %v11140_v50  ;;  %v11191_v50 = vld [vmem:[%s14102_s5 + $0xc0] ss:$16 sps:$4 sm:$0xff]  }
 0x3e1   :  { %4030 = vmatprep.subr.bf16.mxu0 %v11145_v43  ;;  %v11196_v43 = vld [vmem:[%s14102_s5 + $0xe4] ss:$16 sps:$4 sm:$0xff]  }
 0x3e3   :  { %3966 = vmatmul.mubr.bf16.gmra.mrb[60].mxu0 %v12473_v22 }
 0x3e4   :  { %3975 = vmatprep.mubr.bf16.mxu0 %v12499_v24  ;;  %4031 = vmatpush1.bf16.msra.mxu0 %v11143_v48  ;;  %v11194_v48 = vld [vmem:[%s14102_s5 + $0xe0] ss:$16 sps:$4 sm:$0xff]  }
 0x3e5   :  { %4032 = vmatprep.subr.bf16.mxu0 %v11148_v4  ;;  %v11199_v4 = vld [vmem:[%s14102_s5 + $0x104] ss:$16 sps:$4 sm:$0xff]  }
 0x3e8   :  { %4033 = vmatpush1.bf16.msra.mxu0 %v11146_v7  ;;  %v11197_v7 = vld [vmem:[%s14102_s5 + $0x100] ss:$16 sps:$4 sm:$0xff]  }
 0x3e9   :  { %4034 = vmatprep.subr.bf16.mxu0 %v11151_v55  ;;  %v11202_v55 = vld [vmem:[%s14102_s5 + $0x124] ss:$16 sps:$4 sm:$0xff]  }
 0x3eb   :  { %3976 = vmatmul.mubr.bf16.gmra.mrb[64].mxu0 %v12497_v36 }
 0x3ec   :  { %3985 = vmatprep.mubr.bf16.mxu0 %v12523_v62  ;;  %4035 = vmatpush1.bf16.msra.mxu0 %v11149_v57  ;;  %v11200_v57 = vld [vmem:[%s14102_s5 + $0x120] ss:$16 sps:$4 sm:$0xff]  }
 0x3ed   :  { %4036 = vmatprep.subr.bf16.mxu0 %v11154_v38  ;;  %v11205_v38 = vld [vmem:[%s14102_s5 + $0x144] ss:$16 sps:$4 sm:$0xff]  }
 0x3f0   :  { %4037 = vmatpush1.bf16.msra.mxu0 %v11152_v58  ;;  %v11203_v58 = vld [vmem:[%s14102_s5 + $0x140] ss:$16 sps:$4 sm:$0xff]  }
 0x3f1   :  { %4038 = vmatprep.subr.bf16.mxu0 %v11157_v59  ;;  %v11208_v59 = vld [vmem:[%s14102_s5 + $0x164] ss:$16 sps:$4 sm:$0xff]  }
 0x3f3   :  { %3986 = vmatmul.mubr.bf16.gmra.mrb[68].mxu0 %v12521_v61 }
 0x3f4   :  { %3995 = vmatprep.mubr.bf16.mxu0 %v12547_v20  ;;  %4039 = vmatpush1.bf16.msra.mxu0 %v11155_v60  ;;  %v11206_v60 = vld [vmem:[%s14102_s5 + $0x160] ss:$16 sps:$4 sm:$0xff]  }
 0x3f5   :  { %4040 = vmatprep.subr.bf16.mxu0 %v11160_v2  ;;  %v11211_v2 = vld [vmem:[%s14102_s5 + $0x184] ss:$16 sps:$4 sm:$0xff]  }
 0x3f8   :  { %4041 = vmatpush1.bf16.msra.mxu0 %v11158_v51  ;;  %v11209_v51 = vld [vmem:[%s14102_s5 + $0x180] ss:$16 sps:$4 sm:$0xff]  }
 0x3f9   :  { %4042 = vmatprep.subr.bf16.mxu0 %v11163_v8  ;;  %v11214_v8 = vld [vmem:[%s14102_s5 + $0x1a4] ss:$16 sps:$4 sm:$0xff]  }
 0x3fb   :  { %3996 = vmatmul.mubr.bf16.gmra.mrb[72].mxu0 %v12545_v49 }
 0x3fc   :  { %4005 = vmatprep.mubr.bf16.mxu0 %v12571_v19  ;;  %4043 = vmatpush1.bf16.msra.mxu0 %v11161_v9  ;;  %v12988_v9 = vld [vmem:[#allocation2] sm:$0xff] }
 0x3fd   :  { %4044 = vmatprep.subr.bf16.mxu0 %v11166_v12  ;;  %v11217_v12 = vld [vmem:[%s14102_s5 + $0x1c4] ss:$16 sps:$4 sm:$0xff]  }
 0x400   :  { %4045 = vmatpush1.bf16.msra.mxu0 %v11164_v14  ;;  %v11215_v14 = vld [vmem:[%s14102_s5 + $0x1c0] ss:$16 sps:$4 sm:$0xff]  }
 0x401   :  { %4046 = vmatprep.subr.bf16.mxu0 %v11169_v15  ;;  %v11218_v15 = vld [vmem:[%s14102_s5 + $0x1e0] ss:$16 sps:$4 sm:$0xff]  }
 0x403   :  { %4006 = vmatmul.mubr.bf16.gmra.mrb[76].mxu0 %v12569_v52 }
 0x404   :  { %4015 = vmatprep.mubr.bf16.mxu0 %v12607_v10  ;;  %4047 = vmatpush1.bf16.msra.mxu0 %v11167_v54  ;;  %v11173_v10 = vld [vmem:[%s14102_s5] ss:$16 sps:$4 sm:$0xff]   ;;  %v11223_v54 = vld [vmem:[%s14102_s5 + $0x204] ss:$16 sps:$4 sm:$0xff]  }
 0x405   :  { %4048 = vmatprep.subr.bf16.mxu0 %v11172_v0  ;;  %v11221_v0 = vld [vmem:[%s14102_s5 + $0x200] ss:$16 sps:$4 sm:$0xff]  }
 0x408   :  { %4049 = vmatpush1.bf16.msra.mxu0 %v11170_v6  ;;  %v11226_v6 = vld [vmem:[%s14102_s5 + $0x224] ss:$16 sps:$4 sm:$0xff]  }
 0x409   :  { %4692 = vmatprep.subr.bf16.mxu0 %v11175_v18  ;;  %v11224_v18 = vld [vmem:[%s14102_s5 + $0x220] ss:$16 sps:$4 sm:$0xff]  }
 0x40b   :  { %4016 = vmatmul.mubr.bf16.gmra.mrb[80].mxu0 %v12605_v1  ;;  %v11176_v1 = vld [vmem:[%s14102_s5 + $0x20] ss:$16 sps:$4 sm:$0xff]  }
 0x40c   :  { %9410 = vmatprep.mubr.msk.bf16.mxu0 %vm81_vm1, %v12632_v53 }
 0x413   :  { %4059 = vmatmul.mubr.bf16.vlgmr.msra.gmra.mrb[56].mxu0 %v12617_v26 }
 0x414   :  { %4693 = vmatpush1.bf16.msra.mxu0 %v11173_v10  ;;  %9411 = vmatprep.mubr.msk.bf16.mxu0 %vm81_vm1, %v12657_v17  ;;  %v11229_v10 = vld [vmem:[%s14102_s5 + $0x244] ss:$16 sps:$4 sm:$0xff]  }
 0x415   :  { %4694 = vmatprep.subr.bf16.mxu0 %v11178_v25  ;;  %v11227_v25 = vld [vmem:[%s14102_s5 + $0x240] ss:$16 sps:$4 sm:$0xff]  }
 0x418   :  { %4695 = vmatpush1.bf16.msra.mxu0 %v11176_v1  ;;  %v13026_v1 = vld [vmem:[#allocation3 + $0x20] sm:$0xff] }
 0x419   :  { %4696 = vmatprep.subr.bf16.mxu0 %v11181_v29  ;;  %v11230_v29 = vld [vmem:[%s14102_s5 + $0x260] ss:$16 sps:$4 sm:$0xff]  }
 0x41b   :  { %4069 = vmatmul.mubr.bf16.gmra.mrb[60].mxu0 %v12625_v35 }
 0x41c   :  { %4697 = vmatpush1.bf16.msra.mxu0 %v11179_v30  ;;  %9412 = vmatprep.mubr.msk.bf16.mxu0 %vm81_vm1, %v12682_v63  ;;  %v11235_v30 = vld [vmem:[%s14102_s5 + $0x284] ss:$16 sps:$4 sm:$0xff]  }
 0x41d   :  { %4698 = vmatprep.subr.bf16.mxu0 %v11184_v33  ;;  %v11233_v33 = vld [vmem:[%s14102_s5 + $0x280] ss:$16 sps:$4 sm:$0xff]  }
 0x420   :  { %4699 = vmatpush1.bf16.msra.mxu0 %v11182_v37  ;;  %v11236_v37 = vld [vmem:[%s14102_s5 + $0x2a0] ss:$16 sps:$4 sm:$0xff]  }
 0x421   :  { %4700 = vmatprep.subr.bf16.mxu0 %v11187_v39  ;;  %v11241_v39 = vld [vmem:[%s14102_s5 + $0x2c4] ss:$16 sps:$4 sm:$0xff]  }
 0x423   :  { %4079 = vmatmul.mubr.bf16.gmra.mrb[64].mxu0 %v12650_v13 }
 0x424   :  { %4701 = vmatpush1.bf16.msra.mxu0 %v11185_v40  ;;  %9413 = vmatprep.mubr.msk.bf16.mxu0 %vm81_vm1, %v12707_v16  ;;  %v11239_v40 = vld [vmem:[%s14102_s5 + $0x2c0] ss:$16 sps:$4 sm:$0xff]  }
 0x425   :  { %4702 = vmatprep.subr.bf16.mxu0 %v11190_v41  ;;  %v11247_v41 = vld [vmem:[%s14102_s5 + $0x304] ss:$16 sps:$4 sm:$0xff]  }
 0x428   :  { %4703 = vmatpush1.bf16.msra.mxu0 %v11188_v42  ;;  %v11245_v42 = vld [vmem:[%s14102_s5 + $0x300] ss:$16 sps:$4 sm:$0xff]  }
 0x429   :  { %4704 = vmatprep.subr.bf16.mxu0 %v11193_v47  ;;  %v11253_v47 = vld [vmem:[%s14102_s5 + $0x344] ss:$16 sps:$4 sm:$0xff]  }
 0x42b   :  { %4089 = vmatmul.mubr.bf16.gmra.mrb[68].mxu0 %v12675_v44 }
 0x42c   :  { %4705 = vmatpush1.bf16.msra.mxu0 %v11191_v50  ;;  %9414 = vmatprep.mubr.msk.bf16.mxu0 %vm81_vm1, %v12732_v21  ;;  %v11251_v50 = vld [vmem:[%s14102_s5 + $0x340] ss:$16 sps:$4 sm:$0xff]  }
 0x42d   :  { %4706 = vmatprep.subr.bf16.mxu0 %v11196_v43  ;;  %v11259_v43 = vld [vmem:[%s14102_s5 + $0xc] ss:$16 sps:$4 sm:$0xff]  }
 0x430   :  { %4707 = vmatpush1.bf16.msra.mxu0 %v11194_v48  ;;  %v13092_v48 = vld [vmem:[#allocation3 + $0x18] sm:$0xff] }
 0x431   :  { %4708 = vmatprep.subr.bf16.mxu0 %v11199_v4  ;;  %v11265_v4 = vld [vmem:[%s14102_s5 + $0x4c] ss:$16 sps:$4 sm:$0xff]  }
 0x433   :  { %4099 = vmatmul.mubr.bf16.gmra.mrb[72].mxu0 %v12700_v11 }
 0x434   :  { %4709 = vmatpush1.bf16.msra.mxu0 %v11197_v7  ;;  %9415 = vmatprep.mubr.msk.bf16.mxu0 %vm81_vm1, %v12756_v46  ;;  %v11263_v7 = vld [vmem:[%s14102_s5 + $0x48] ss:$16 sps:$4 sm:$0xff]  }
 0x435   :  { %4710 = vmatprep.subr.bf16.mxu0 %v11202_v55  ;;  %v11268_v55 = vld [vmem:[%s14102_s5 + $0x6c] ss:$16 sps:$4 sm:$0xff]  }
 0x438   :  { %4711 = vmatpush1.bf16.msra.mxu0 %v11200_v57  ;;  %v11266_v57 = vld [vmem:[%s14102_s5 + $0x68] ss:$16 sps:$4 sm:$0xff]  }
 0x439   :  { %4712 = vmatprep.subr.bf16.mxu0 %v11205_v38  ;;  %v11271_v38 = vld [vmem:[%s14102_s5 + $0x8c] ss:$16 sps:$4 sm:$0xff]  }
 0x43b   :  { %4109 = vmatmul.mubr.bf16.gmra.mrb[76].mxu0 %v12725_v45 }
 0x43c   :  { %4713 = vmatpush1.bf16.msra.mxu0 %v11203_v58  ;;  %9416 = vmatprep.mubr.msk.bf16.mxu0 %vm81_vm1, %v12774_v28  ;;  %v11212_v28 = vld [vmem:[%s14102_s5 + $0x1a0] ss:$16 sps:$4 sm:$0xff]   ;;  %v11269_v58 = vld [vmem:[%s14102_s5 + $0x88] ss:$16 sps:$4 sm:$0xff]  }
 0x43d   :  { %4714 = vmatprep.subr.bf16.mxu0 %v11208_v59  ;;  %v11272_v59 = vld [vmem:[%s14102_s5 + $0xa8] ss:$16 sps:$4 sm:$0xff]  }
 0x440   :  { %4715 = vmatpush1.bf16.msra.mxu0 %v11206_v60  ;;  %v11277_v60 = vld [vmem:[%s14102_s5 + $0xcc] ss:$16 sps:$4 sm:$0xff]  }
 0x441   :  { %4716 = vmatprep.subr.bf16.mxu0 %v11211_v2  ;;  %v11275_v2 = vld [vmem:[%s14102_s5 + $0xc8] ss:$16 sps:$4 sm:$0xff]  }
 0x443   :  { %4119 = vmatmul.mubr.bf16.gmra.mrb[80].mxu0 %v12750_v3  ;;  %v11220_v3 = vld [vmem:[%s14102_s5 + $0x1e4] ss:$16 sps:$4 sm:$0xff]  }
 0x444   :  { %4717 = vmatpush1.bf16.msra.mxu0 %v11209_v51  ;;  %4724 = vmatprep.mubr.bf16.mxu0 %v12988_v9  ;;  %v11278_v51 = vld [vmem:[%s14102_s5 + $0xe8] ss:$16 sps:$4 sm:$0xff]  }
 0x445   :  { %4718 = vmatprep.subr.bf16.mxu0 %v11214_v8  ;;  %v11283_v8 = vld [vmem:[%s14102_s5 + $0x10c] ss:$16 sps:$4 sm:$0xff]  }
 0x448   :  { %4719 = vmatpush1.bf16.msra.mxu0 %v11212_v28  ;;  %v11281_v28 = vld [vmem:[%s14102_s5 + $0x108] ss:$16 sps:$4 sm:$0xff]  }
 0x449   :  { %4720 = vmatprep.subr.bf16.mxu0 %v11217_v12  ;;  %v11284_v12 = vld [vmem:[%s14102_s5 + $0x128] ss:$16 sps:$4 sm:$0xff]  }
 0x44c   :  { %4721 = vmatpush1.bf16.msra.mxu0 %v11215_v14  ;;  %v11289_v14 = vld [vmem:[%s14102_s5 + $0x14c] ss:$16 sps:$4 sm:$0xff]  }
 0x44d   :  { %4722 = vmatprep.subr.bf16.mxu0 %v11220_v3  ;;  %v11287_v3 = vld [vmem:[%s14102_s5 + $0x148] ss:$16 sps:$4 sm:$0xff]  }
 0x450   :  { %4723 = vmatpush1.bf16.msra.mxu0 %v11218_v15  ;;  %v11292_v15 = vld [vmem:[%s14102_s5 + $0x16c] ss:$16 sps:$4 sm:$0xff]  }
 0x451   :  { %4795 = vmatprep.subr.bf16.mxu0 %v11223_v54  ;;  %v11290_v54 = vld [vmem:[%s14102_s5 + $0x168] ss:$16 sps:$4 sm:$0xff]  }
 0x453   :  { %4725 = vmatmul.mubr.bf16.vlgmr.msra.gmra.mrb[28].mxu0 %v12988_v9 }
 0x454   :  { %4734 = vmatprep.mubr.bf16.mxu0 %v12451_v5  ;;  %4796 = vmatpush1.bf16.msra.mxu0 %v11221_v0  ;;  %v11232_v5 = vld [vmem:[%s14102_s5 + $0x264] ss:$16 sps:$4 sm:$0xff]   ;;  %v11295_v0 = vld [vmem:[%s14102_s5 + $0x18c] ss:$16 sps:$4 sm:$0xff]  }
 0x455   :  { %4797 = vmatprep.subr.bf16.mxu0 %v11226_v6  ;;  %v11293_v6 = vld [vmem:[%s14102_s5 + $0x188] ss:$16 sps:$4 sm:$0xff]  }
 0x458   :  { %4798 = vmatpush1.bf16.msra.mxu0 %v11224_v18  ;;  %v11298_v18 = vld [vmem:[%s14102_s5 + $0x1ac] ss:$16 sps:$4 sm:$0xff]  }
 0x459   :  { %4799 = vmatprep.subr.bf16.mxu0 %v11229_v10  ;;  %v11296_v10 = vld [vmem:[%s14102_s5 + $0x1a8] ss:$16 sps:$4 sm:$0xff]  }
 0x45b   :  { %4735 = vmatmul.mubr.bf16.gmra.mrb[32].mxu0 %v13026_v1 }
 0x45c   :  { %4744 = vmatprep.mubr.bf16.mxu0 %v12475_v23  ;;  %4800 = vmatpush1.bf16.msra.mxu0 %v11227_v25  ;;  %v11238_v23 = vld [vmem:[%s14102_s5 + $0x2a4] ss:$16 sps:$4 sm:$0xff]   ;;  %v11301_v25 = vld [vmem:[%s14102_s5 + $0x1cc] ss:$16 sps:$4 sm:$0xff]  }
 0x45d   :  { %4801 = vmatprep.subr.bf16.mxu0 %v11232_v5  ;;  %v11299_v5 = vld [vmem:[%s14102_s5 + $0x1c8] ss:$16 sps:$4 sm:$0xff]  }
 0x460   :  { %4802 = vmatpush1.bf16.msra.mxu0 %v11230_v29  ;;  %v11304_v29 = vld [vmem:[%s14102_s5 + $0x1ec] ss:$16 sps:$4 sm:$0xff]  }
 0x461   :  { %4803 = vmatprep.subr.bf16.mxu0 %v11235_v30  ;;  %v11302_v30 = vld [vmem:[%s14102_s5 + $0x1e8] ss:$16 sps:$4 sm:$0xff]  }
 0x463   :  { %4745 = vmatmul.mubr.bf16.gmra.mrb[36].mxu0 %v12473_v22  ;;  %v11244_v22 = vld [vmem:[%s14102_s5 + $0x2e4] ss:$16 sps:$4 sm:$0xff]  }
 0x464   :  { %4754 = vmatprep.mubr.bf16.mxu0 %v12499_v24  ;;  %4804 = vmatpush1.bf16.msra.mxu0 %v11233_v33  ;;  %v11242_v24 = vld [vmem:[%s14102_s5 + $0x2e0] ss:$16 sps:$4 sm:$0xff]   ;;  %v11307_v33 = vld [vmem:[%s14102_s5 + $0x20c] ss:$16 sps:$4 sm:$0xff]  }
 0x465   :  { %4805 = vmatprep.subr.bf16.mxu0 %v11238_v23  ;;  %v11305_v23 = vld [vmem:[%s14102_s5 + $0x208] ss:$16 sps:$4 sm:$0xff]  }
 0x468   :  { %4806 = vmatpush1.bf16.msra.mxu0 %v11236_v37  ;;  %v11310_v37 = vld [vmem:[%s14102_s5 + $0x22c] ss:$16 sps:$4 sm:$0xff]  }
 0x469   :  { %4807 = vmatprep.subr.bf16.mxu0 %v11241_v39  ;;  %v11724_v39 = vld [vmem:[#allocation3 + $0x28] sm:$0xff] }
 0x46b   :  { %4755 = vmatmul.mubr.bf16.gmra.mrb[40].mxu0 %v12497_v36  ;;  %v11250_v36 = vld [vmem:[%s14102_s5 + $0x324] ss:$16 sps:$4 sm:$0xff]  }
 0x46c   :  { %4764 = vmatprep.mubr.bf16.mxu0 %v12523_v62  ;;  %4808 = vmatpush1.bf16.msra.mxu0 %v11239_v40  ;;  %v11248_v62 = vld [vmem:[%s14102_s5 + $0x320] ss:$16 sps:$4 sm:$0xff]   ;;  %v11308_v40 = vld [vmem:[%s14102_s5 + $0x228] ss:$16 sps:$4 sm:$0xff]  }
 0x46d   :  { %4809 = vmatprep.subr.bf16.mxu0 %v11244_v22  ;;  %v11313_v22 = vld [vmem:[%s14102_s5 + $0x24c] ss:$16 sps:$4 sm:$0xff]  }
 0x470   :  { %4810 = vmatpush1.bf16.msra.mxu0 %v11242_v24  ;;  %v11311_v24 = vld [vmem:[%s14102_s5 + $0x248] ss:$16 sps:$4 sm:$0xff]  }
 0x471   :  { %4811 = vmatprep.subr.bf16.mxu0 %v11247_v41  ;;  %v11316_v41 = vld [vmem:[%s14102_s5 + $0x26c] ss:$16 sps:$4 sm:$0xff]  }
 0x473   :  { %4765 = vmatmul.mubr.bf16.gmra.mrb[44].mxu0 %v12521_v61  ;;  %v11256_v61 = vld [vmem:[%s14102_s5 + $0x364] ss:$16 sps:$4 sm:$0xff]  }
 0x474   :  { %4774 = vmatprep.mubr.bf16.mxu0 %v12547_v20  ;;  %4812 = vmatpush1.bf16.msra.mxu0 %v11245_v42  ;;  %v11254_v20 = vld [vmem:[%s14102_s5 + $0x360] ss:$16 sps:$4 sm:$0xff]   ;;  %v11725_v42 = vld [vmem:[#allocation3 + $0x48] sm:$0xff] }
 0x475   :  { %4813 = vmatprep.subr.bf16.mxu0 %v11250_v36  ;;  %v11314_v36 = vld [vmem:[%s14102_s5 + $0x268] ss:$16 sps:$4 sm:$0xff]  }
 0x478   :  { %4814 = vmatpush1.bf16.msra.mxu0 %v11248_v62  ;;  %v11319_v62 = vld [vmem:[%s14102_s5 + $0x28c] ss:$16 sps:$4 sm:$0xff]  }
 0x479   :  { %4815 = vmatprep.subr.bf16.mxu0 %v11253_v47  ;;  %v11317_v47 = vld [vmem:[%s14102_s5 + $0x288] ss:$16 sps:$4 sm:$0xff]  }
 0x47b   :  { %4775 = vmatmul.mubr.bf16.gmra.mrb[48].mxu0 %v12545_v49  ;;  %v11257_v49 = vld [vmem:[%s14102_s5 + $0x8] ss:$16 sps:$4 sm:$0xff]  }
 0x47c   :  { %4784 = vmatprep.mubr.bf16.mxu0 %v12571_v19  ;;  %4816 = vmatpush1.bf16.msra.mxu0 %v11251_v50  ;;  %v11262_v19 = vld [vmem:[%s14102_s5 + $0x2c] ss:$16 sps:$4 sm:$0xff]   ;;  %v11726_v50 = vld [vmem:[#allocation3 + $0x40] sm:$0xff] }
 0x47d   :  { %4817 = vmatprep.subr.bf16.mxu0 %v11256_v61  ;;  %v11727_v61 = vld [vmem:[#allocation3 + $0x68] sm:$0xff] }
 0x480   :  { %4818 = vmatpush1.bf16.msra.mxu0 %v11254_v20  ;;  %v11320_v20 = vld [vmem:[%s14102_s5 + $0x2a8] ss:$16 sps:$4 sm:$0xff]  }
 0x481   :  { %4898 = vmatprep.subr.bf16.mxu0 %v11259_v43  ;;  %v11325_v43 = vld [vmem:[%s14102_s5 + $0x2cc] ss:$16 sps:$4 sm:$0xff]  }
 0x483   :  { %4785 = vmatmul.mubr.bf16.gmra.mrb[52].mxu0 %v12569_v52  ;;  %v11260_v52 = vld [vmem:[%s14102_s5 + $0x28] ss:$16 sps:$4 sm:$0xff]  }
 0x484   :  { %9529 = vmatprep.mubr.msk.bf16.mxu0 %vm81_vm1, %v13092_v48 }
 0x48b   :  { %4828 = vmatmul.mubr.bf16.vlgmr.msra.gmra.mrb[28].mxu0 %v12988_v9 }
 0x48c   :  { %4899 = vmatpush1.bf16.msra.mxu0 %v11257_v49  ;;  %9530 = vmatprep.mubr.msk.bf16.mxu0 %vm81_vm1, %v12632_v53  ;;  %v11323_v49 = vld [vmem:[%s14102_s5 + $0x2c8] ss:$16 sps:$4 sm:$0xff]  }
 0x48d   :  { %4900 = vmatprep.subr.bf16.mxu0 %v11262_v19  ;;  %v11328_v19 = vld [vmem:[%s14102_s5 + $0x2ec] ss:$16 sps:$4 sm:$0xff]  }
 0x490   :  { %4901 = vmatpush1.bf16.msra.mxu0 %v11260_v52  ;;  %v11728_v52 = vld [vmem:[#allocation3 + $0x60] sm:$0xff] }
 0x491   :  { %4902 = vmatprep.subr.bf16.mxu0 %v11265_v4  ;;  %v11729_v4 = vld [vmem:[#allocation3 + $0x88] sm:$0xff] }
 0x493   :  { %4838 = vmatmul.mubr.bf16.gmra.mrb[32].mxu0 %v12617_v26  ;;  %v11274_v26 = vld [vmem:[%s14102_s5 + $0xac] ss:$16 sps:$4 sm:$0xff]  }
 0x494   :  { %4903 = vmatpush1.bf16.msra.mxu0 %v11263_v7  ;;  %9531 = vmatprep.mubr.msk.bf16.mxu0 %vm81_vm1, %v12657_v17  ;;  %v11326_v7 = vld [vmem:[%s14102_s5 + $0x2e8] ss:$16 sps:$4 sm:$0xff]  }
 0x495   :  { %4904 = vmatprep.subr.bf16.mxu0 %v11268_v55  ;;  %v11331_v55 = vld [vmem:[%s14102_s5 + $0x30c] ss:$16 sps:$4 sm:$0xff]  }
 0x498   :  { %4905 = vmatpush1.bf16.msra.mxu0 %v11266_v57  ;;  %v11329_v57 = vld [vmem:[%s14102_s5 + $0x308] ss:$16 sps:$4 sm:$0xff]  }
 0x499   :  { %4906 = vmatprep.subr.bf16.mxu0 %v11271_v38  ;;  %v11334_v38 = vld [vmem:[%s14102_s5 + $0x32c] ss:$16 sps:$4 sm:$0xff]  }
 0x49b   :  { %4848 = vmatmul.mubr.bf16.gmra.mrb[36].mxu0 %v12625_v35  ;;  %v11280_v35 = vld [vmem:[%s14102_s5 + $0xec] ss:$16 sps:$4 sm:$0xff]  }
 0x49c   :  { %4907 = vmatpush1.bf16.msra.mxu0 %v11269_v58  ;;  %9532 = vmatprep.mubr.msk.bf16.mxu0 %vm81_vm1, %v12682_v63  ;;  %v11730_v58 = vld [vmem:[#allocation3 + $0x80] sm:$0xff] }
 0x49d   :  { %4908 = vmatprep.subr.bf16.mxu0 %v11274_v26  ;;  %v11731_v26 = vld [vmem:[#allocation3 + $0xa8] sm:$0xff] }
 0x4a0   :  { %4909 = vmatpush1.bf16.msra.mxu0 %v11272_v59  ;;  %v11332_v59 = vld [vmem:[%s14102_s5 + $0x328] ss:$16 sps:$4 sm:$0xff]  }
 0x4a1   :  { %4910 = vmatprep.subr.bf16.mxu0 %v11277_v60  ;;  %v11337_v60 = vld [vmem:[%s14102_s5 + $0x34c] ss:$16 sps:$4 sm:$0xff]  }
 0x4a3   :  { %4858 = vmatmul.mubr.bf16.gmra.mrb[40].mxu0 %v12650_v13  ;;  %v11286_v13 = vld [vmem:[%s14102_s5 + $0x12c] ss:$16 sps:$4 sm:$0xff]  }
 0x4a4   :  { %4911 = vmatpush1.bf16.msra.mxu0 %v11275_v2  ;;  %9533 = vmatprep.mubr.msk.bf16.mxu0 %vm81_vm1, %v12707_v16  ;;  %v11335_v2 = vld [vmem:[%s14102_s5 + $0x348] ss:$16 sps:$4 sm:$0xff]  }
 0x4a5   :  { %4912 = vmatprep.subr.bf16.mxu0 %v11280_v35  ;;  %v11340_v35 = vld [vmem:[%s14102_s5 + $0x36c] ss:$16 sps:$4 sm:$0xff]  }
 0x4a8   :  { %4913 = vmatpush1.bf16.msra.mxu0 %v11278_v51  ;;  %v11732_v51 = vld [vmem:[#allocation3 + $0xa0] sm:$0xff] }
 0x4a9   :  { %4914 = vmatprep.subr.bf16.mxu0 %v11283_v8  ;;  %v11733_v8 = vld [vmem:[#allocation3 + $0xc8] sm:$0xff] }
 0x4ab   :  { %4868 = vmatmul.mubr.bf16.gmra.mrb[44].mxu0 %v12675_v44 }
 0x4ac   :  { %4915 = vmatpush1.bf16.msra.mxu0 %v11281_v28  ;;  %9534 = vmatprep.mubr.msk.bf16.mxu0 %vm81_vm1, %v12732_v21  ;;  %v11338_v28 = vld [vmem:[%s14102_s5 + $0x368] ss:$16 sps:$4 sm:$0xff]  }
 0x4ad   :  { %4916 = vmatprep.subr.bf16.mxu0 %v11286_v13  ;;  %v11343_v13 = vld [vmem:[%s14102_s5 + $0x704] ss:$16 sps:$4 sm:$0xff]  }
 0x4b0   :  { %4917 = vmatpush1.bf16.msra.mxu0 %v11284_v12  ;;  %v11734_v12 = vld [vmem:[#allocation3 + $0xc0] sm:$0xff] }
 0x4b1   :  { %4918 = vmatprep.subr.bf16.mxu0 %v11289_v14  ;;  %v11341_v14 = vld [vmem:[%s14102_s5 + $0x700] ss:$16 sps:$4 sm:$0xff]  }
 0x4b3   :  { %4878 = vmatmul.mubr.bf16.gmra.mrb[48].mxu0 %v12700_v11 }
 0x4b4   :  { %4919 = vmatpush1.bf16.msra.mxu0 %v11287_v3  ;;  %9535 = vmatprep.mubr.msk.bf16.mxu0 %vm81_vm1, %v12756_v46  ;;  %v11346_v3 = vld [vmem:[%s14102_s5 + $0x724] ss:$16 sps:$4 sm:$0xff]  }
 0x4b5   :  { %4920 = vmatprep.subr.bf16.mxu0 %v11292_v15  ;;  %v11344_v15 = vld [vmem:[%s14102_s5 + $0x720] ss:$16 sps:$4 sm:$0xff]  }
 0x4b8   :  { %4921 = vmatpush1.bf16.msra.mxu0 %v11290_v54  ;;  %v11347_v54 = vld [vmem:[%s14102_s5 + $0x740] ss:$16 sps:$4 sm:$0xff]  }
 0x4b9   :  { %4922 = vmatprep.subr.bf16.mxu0 %v11295_v0  ;;  %v11352_v0 = vld [vmem:[%s14102_s5 + $0x764] ss:$16 sps:$4 sm:$0xff]  }
 0x4bb   :  { %4888 = vmatmul.mubr.bf16.gmra.mrb[52].mxu0 %v12725_v45 }
 0x4bc   :  { %4923 = vmatpush1.bf16.msra.mxu0 %v11293_v6  ;;  %4930 = vmatprep.mubr.bf16.mxu0 %v12988_v9  ;;  %v11350_v6 = vld [vmem:[%s14102_s5 + $0x760] ss:$16 sps:$4 sm:$0xff]  }
 0x4bd   :  { %4924 = vmatprep.subr.bf16.mxu0 %v11298_v18  ;;  %v11355_v18 = vld [vmem:[%s14102_s5 + $0x784] ss:$16 sps:$4 sm:$0xff]  }
 0x4c0   :  { %4925 = vmatpush1.bf16.msra.mxu0 %v11296_v10  ;;  %v11353_v10 = vld [vmem:[%s14102_s5 + $0x780] ss:$16 sps:$4 sm:$0xff]  }
 0x4c1   :  { %4926 = vmatprep.subr.bf16.mxu0 %v11301_v25  ;;  %v11358_v25 = vld [vmem:[%s14102_s5 + $0x7a4] ss:$16 sps:$4 sm:$0xff]  }
 0x4c4   :  { %4927 = vmatpush1.bf16.msra.mxu0 %v11299_v5  ;;  %v11356_v5 = vld [vmem:[%s14102_s5 + $0x7a0] ss:$16 sps:$4 sm:$0xff]  }
 0x4c5   :  { %4928 = vmatprep.subr.bf16.mxu0 %v11304_v29  ;;  %v11361_v29 = vld [vmem:[%s14102_s5 + $0x7c4] ss:$16 sps:$4 sm:$0xff]  }
 0x4c8   :  { %4929 = vmatpush1.bf16.msra.mxu0 %v11302_v30  ;;  %v11359_v30 = vld [vmem:[%s14102_s5 + $0x7c0] ss:$16 sps:$4 sm:$0xff]  }
 0x4c9   :  { %5001 = vmatprep.subr.bf16.mxu0 %v11307_v33  ;;  %v11364_v33 = vld [vmem:[%s14102_s5 + $0x7e4] ss:$16 sps:$4 sm:$0xff]  }
 0x4cb   :  { %4931 = vmatmul.mubr.bf16.vlgmr.msra.gmra.mrb[56].mxu0 %v12988_v9 }
 0x4cc   :  { %4940 = vmatprep.mubr.bf16.mxu0 %v11724_v39  ;;  %5002 = vmatpush1.bf16.msra.mxu0 %v11305_v23  ;;  %v11362_v23 = vld [vmem:[%s14102_s5 + $0x7e0] ss:$16 sps:$4 sm:$0xff]  }
 0x4cd   :  { %5003 = vmatprep.subr.bf16.mxu0 %v11310_v37  ;;  %v11367_v37 = vld [vmem:[%s14102_s5 + $0x804] ss:$16 sps:$4 sm:$0xff]   ;;  %v11365_v39 = vld [vmem:[%s14102_s5 + $0x800] ss:$16 sps:$4 sm:$0xff]  }
 0x4d0   :  { %5004 = vmatpush1.bf16.msra.mxu0 %v11308_v40  ;;  %v11370_v40 = vld [vmem:[%s14102_s5 + $0x824] ss:$16 sps:$4 sm:$0xff]  }
 0x4d1   :  { %5005 = vmatprep.subr.bf16.mxu0 %v11313_v22  ;;  %v11373_v22 = vld [vmem:[%s14102_s5 + $0x844] ss:$16 sps:$4 sm:$0xff]  }
 0x4d3   :  { %4941 = vmatmul.mubr.bf16.gmra.mrb[60].mxu0 %v13026_v1  ;;  %v11322_v1 = vld [vmem:[%s14102_s5 + $0x2ac] ss:$16 sps:$4 sm:$0xff]  }
 0x4d4   :  { %4950 = vmatprep.mubr.bf16.mxu0 %v11725_v42  ;;  %5006 = vmatpush1.bf16.msra.mxu0 %v11311_v24  ;;  %v11371_v24 = vld [vmem:[%s14102_s5 + $0x840] ss:$16 sps:$4 sm:$0xff]  }
 0x4d5   :  { %5007 = vmatprep.subr.bf16.mxu0 %v11316_v41  ;;  %v11379_v41 = vld [vmem:[%s14102_s5 + $0x884] ss:$16 sps:$4 sm:$0xff]   ;;  %v11377_v42 = vld [vmem:[%s14102_s5 + $0x880] ss:$16 sps:$4 sm:$0xff]  }
 0x4d8   :  { %5008 = vmatpush1.bf16.msra.mxu0 %v11314_v36  ;;  %v11380_v36 = vld [vmem:[%s14102_s5 + $0x8a0] ss:$16 sps:$4 sm:$0xff]  }
 0x4d9   :  { %5009 = vmatprep.subr.bf16.mxu0 %v11319_v62  ;;  %v11385_v62 = vld [vmem:[%s14102_s5 + $0x8c4] ss:$16 sps:$4 sm:$0xff]  }
 0x4db   :  { %4951 = vmatmul.mubr.bf16.gmra.mrb[64].mxu0 %v11726_v50  ;;  %v11391_v50 = vld [vmem:[%s14102_s5 + $0x904] ss:$16 sps:$4 sm:$0xff]  }
 0x4dc   :  { %4960 = vmatprep.mubr.bf16.mxu0 %v11727_v61  ;;  %5010 = vmatpush1.bf16.msra.mxu0 %v11317_v47  ;;  %v11383_v47 = vld [vmem:[%s14102_s5 + $0x8c0] ss:$16 sps:$4 sm:$0xff]  }
 0x4dd   :  { %5011 = vmatprep.subr.bf16.mxu0 %v11322_v1  ;;  %v11386_v1 = vld [vmem:[%s14102_s5 + $0x8e0] ss:$16 sps:$4 sm:$0xff]  }
 0x4de   :  { %v11389_v61 = vld [vmem:[%s14102_s5 + $0x900] ss:$16 sps:$4 sm:$0xff]  }
 0x4e0   :  { %5012 = vmatpush1.bf16.msra.mxu0 %v11320_v20  ;;  %v11394_v20 = vld [vmem:[%s14102_s5 + $0x924] ss:$16 sps:$4 sm:$0xff]  }
 0x4e1   :  { %5013 = vmatprep.subr.bf16.mxu0 %v11325_v43  ;;  %v13410_v43 = vld [vmem:[#allocation3 + $0x40] sm:$0xff] }
 0x4e3   :  { %4961 = vmatmul.mubr.bf16.gmra.mrb[68].mxu0 %v11728_v52  ;;  %v11397_v52 = vld [vmem:[%s14102_s5 + $0x944] ss:$16 sps:$4 sm:$0xff]  }
 0x4e4   :  { %4970 = vmatprep.mubr.bf16.mxu0 %v11729_v4  ;;  %5014 = vmatpush1.bf16.msra.mxu0 %v11323_v49  ;;  %v13413_v49 = vld [vmem:[#allocation3 + $0x68] sm:$0xff]  ;;  %v11395_v4 = vld [vmem:[%s14102_s5 + $0x940] ss:$16 sps:$4 sm:$0xff]  }
 0x4e5   :  { %5015 = vmatprep.subr.bf16.mxu0 %v11328_v19  ;;  %v11392_v19 = vld [vmem:[%s14102_s5 + $0x920] ss:$16 sps:$4 sm:$0xff]  }
 0x4e8   :  { %5016 = vmatpush1.bf16.msra.mxu0 %v11326_v7  ;;  %v11400_v7 = vld [vmem:[%s14102_s5 + $0x964] ss:$16 sps:$4 sm:$0xff]  }
 0x4e9   :  { %5017 = vmatprep.subr.bf16.mxu0 %v11331_v55  ;;  %v13428_v55 = vld [vmem:[#allocation3 + $0x60] sm:$0xff] }
 0x4eb   :  { %4971 = vmatmul.mubr.bf16.gmra.mrb[72].mxu0 %v11730_v58  ;;  %v11403_v58 = vld [vmem:[%s14102_s5 + $0x984] ss:$16 sps:$4 sm:$0xff]  }
 0x4ec   :  { %4980 = vmatprep.mubr.bf16.mxu0 %v11731_v26  ;;  %5018 = vmatpush1.bf16.msra.mxu0 %v11329_v57  ;;  %v13431_v57 = vld [vmem:[#allocation3 + $0x88] sm:$0xff]  ;;  %v11401_v26 = vld [vmem:[%s14102_s5 + $0x980] ss:$16 sps:$4 sm:$0xff]  }
 0x4ed   :  { %5019 = vmatprep.subr.bf16.mxu0 %v11334_v38  ;;  %v11398_v38 = vld [vmem:[%s14102_s5 + $0x960] ss:$16 sps:$4 sm:$0xff]  }
 0x4f0   :  { %5020 = vmatpush1.bf16.msra.mxu0 %v11332_v59  ;;  %v11406_v59 = vld [vmem:[%s14102_s5 + $0x9a4] ss:$16 sps:$4 sm:$0xff]  }
 0x4f1   :  { %5021 = vmatprep.subr.bf16.mxu0 %v11337_v60  ;;  %v13446_v60 = vld [vmem:[#allocation3 + $0x80] sm:$0xff] }
 0x4f3   :  { %4981 = vmatmul.mubr.bf16.gmra.mrb[76].mxu0 %v11732_v51  ;;  %v11409_v51 = vld [vmem:[%s14102_s5 + $0x9c4] ss:$16 sps:$4 sm:$0xff]  }
 0x4f4   :  { %4990 = vmatprep.mubr.bf16.mxu0 %v11733_v8  ;;  %5022 = vmatpush1.bf16.msra.mxu0 %v11335_v2  ;;  %v13449_v2 = vld [vmem:[#allocation3 + $0xa8] sm:$0xff]  ;;  %v11407_v8 = vld [vmem:[%s14102_s5 + $0x9c0] ss:$16 sps:$4 sm:$0xff]  }
 0x4f5   :  { %5023 = vmatprep.subr.bf16.mxu0 %v11340_v35  ;;  %v11404_v35 = vld [vmem:[%s14102_s5 + $0x9a0] ss:$16 sps:$4 sm:$0xff]  }
 0x4f8   :  { %5024 = vmatpush1.bf16.msra.mxu0 %v11338_v28  ;;  %v11412_v28 = vld [vmem:[%s14102_s5 + $0x9e4] ss:$16 sps:$4 sm:$0xff]  }
 0x4f9   :  { %5826 = vmatprep.subr.bf16.mxu0 %v11343_v13  ;;  %v13464_v13 = vld [vmem:[#allocation3 + $0xa0] sm:$0xff] }
 0x4fb   :  { %4991 = vmatmul.mubr.bf16.gmra.mrb[80].mxu0 %v11734_v12  ;;  %v13467_v12 = vld [vmem:[#allocation3 + $0xc8] sm:$0xff] }
 0x4fc   :  { %9536 = vmatprep.mubr.msk.bf16.mxu0 %vm81_vm1, %v13092_v48  ;;  %v11349_v48 = vld [vmem:[%s14102_s5 + $0x744] ss:$16 sps:$4 sm:$0xff]  }
 0x503   :  { %5034 = vmatmul.mubr.bf16.vlgmr.msra.gmra.mrb[56].mxu0 %v12988_v9 }
 0x504   :  { %5827 = vmatpush1.bf16.msra.mxu0 %v11341_v14  ;;  %9537 = vmatprep.mubr.msk.bf16.mxu0 %vm81_vm1, %v12632_v53  ;;  %v11735_v53 = vld [vmem:[#allocation3 + $0x30] sm:$0xff] }
 0x505   :  { %5828 = vmatprep.subr.bf16.mxu0 %v11346_v3  ;;  %v11410_v14 = vld [vmem:[%s14102_s5 + $0x9e0] ss:$16 sps:$4 sm:$0xff]   ;;  %v11415_v3 = vld [vmem:[%s14102_s5 + $0xa04] ss:$16 sps:$4 sm:$0xff]  }
 0x508   :  { %5829 = vmatpush1.bf16.msra.mxu0 %v11344_v15  ;;  %v11413_v15 = vld [vmem:[%s14102_s5 + $0xa00] ss:$16 sps:$4 sm:$0xff]  }
 0x509   :  { %5830 = vmatprep.subr.bf16.mxu0 %v11349_v48  ;;  %v11418_v48 = vld [vmem:[%s14102_s5 + $0xa24] ss:$16 sps:$4 sm:$0xff]  }
 0x50b   :  { %5044 = vmatmul.mubr.bf16.gmra.mrb[60].mxu0 %v11735_v53  ;;  %v11416_v53 = vld [vmem:[%s14102_s5 + $0xa20] ss:$16 sps:$4 sm:$0xff]  }
 0x50c   :  { %5831 = vmatpush1.bf16.msra.mxu0 %v11347_v54  ;;  %9538 = vmatprep.mubr.msk.bf16.mxu0 %vm81_vm1, %v12657_v17  ;;  %v11736_v17 = vld [vmem:[#allocation3 + $0x50] sm:$0xff]  ;;  %v13482_v54 = vld [vmem:[#allocation3 + $0xc0] sm:$0xff] }
 0x50d   :  { %5832 = vmatprep.subr.bf16.mxu0 %v11352_v0  ;;  %v13485_v0 = vld [vmem:[#allocation3 + $0xe8] sm:$0xff] }
 0x510   :  { %5833 = vmatpush1.bf16.msra.mxu0 %v11350_v6  ;;  %v11421_v6 = vld [vmem:[%s14102_s5 + $0xa44] ss:$16 sps:$4 sm:$0xff]  }
 0x511   :  { %5834 = vmatprep.subr.bf16.mxu0 %v11355_v18  ;;  %v11419_v18 = vld [vmem:[%s14102_s5 + $0xa40] ss:$16 sps:$4 sm:$0xff]  }
 0x513   :  { %5054 = vmatmul.mubr.bf16.gmra.mrb[64].mxu0 %v11736_v17  ;;  %v11422_v17 = vld [vmem:[%s14102_s5 + $0xa60] ss:$16 sps:$4 sm:$0xff]  }
 0x514   :  { %5835 = vmatpush1.bf16.msra.mxu0 %v11353_v10  ;;  %9539 = vmatprep.mubr.msk.bf16.mxu0 %vm81_vm1, %v12682_v63  ;;  %v11737_v63 = vld [vmem:[#allocation3 + $0x70] sm:$0xff] }
 0x515   :  { %5836 = vmatprep.subr.bf16.mxu0 %v11358_v25  ;;  %v11424_v10 = vld [vmem:[%s14102_s5 + $0xa64] ss:$16 sps:$4 sm:$0xff]  }
 0x516   :  { %v13500_v25 = vld [vmem:[#allocation3 + $0xe0] sm:$0xff] }
 0x518   :  { %5837 = vmatpush1.bf16.msra.mxu0 %v11356_v5  ;;  %v11427_v5 = vld [vmem:[%s14102_s5 + $0x70c] ss:$16 sps:$4 sm:$0xff]  }
 0x519   :  { %5838 = vmatprep.subr.bf16.mxu0 %v11361_v29  ;;  %v13511_v29 = vld [vmem:[#allocation3 + $0x58] sm:$0xff] }
 0x51b   :  { %5064 = vmatmul.mubr.bf16.gmra.mrb[68].mxu0 %v11737_v63  ;;  %v13521_v63 = vld [vmem:[#allocation3 + $0x50] sm:$0xff] }
 0x51c   :  { %5839 = vmatpush1.bf16.msra.mxu0 %v11359_v30  ;;  %9540 = vmatprep.mubr.msk.bf16.mxu0 %vm81_vm1, %v12707_v16  ;;  %v11368_v16 = vld [vmem:[%s14102_s5 + $0x820] ss:$16 sps:$4 sm:$0xff]   ;;  %v11425_v30 = vld [vmem:[%s14102_s5 + $0x708] ss:$16 sps:$4 sm:$0xff]  }
 0x51d   :  { %5840 = vmatprep.subr.bf16.mxu0 %v11364_v33  ;;  %v11430_v33 = vld [vmem:[%s14102_s5 + $0x72c] ss:$16 sps:$4 sm:$0xff]  }
 0x520   :  { %5841 = vmatpush1.bf16.msra.mxu0 %v11362_v23  ;;  %v13524_v23 = vld [vmem:[#allocation3 + $0x78] sm:$0xff] }
 0x521   :  { %5842 = vmatprep.subr.bf16.mxu0 %v11367_v37  ;;  %v11428_v37 = vld [vmem:[%s14102_s5 + $0x728] ss:$16 sps:$4 sm:$0xff]  }
 0x523   :  { %5074 = vmatmul.mubr.bf16.gmra.mrb[72].mxu0 %v12675_v44  ;;  %v11376_v44 = vld [vmem:[%s14102_s5 + $0x864] ss:$16 sps:$4 sm:$0xff]  }
 0x524   :  { %5843 = vmatpush1.bf16.msra.mxu0 %v11365_v39  ;;  %9541 = vmatprep.mubr.msk.bf16.mxu0 %vm81_vm1, %v12732_v21  ;;  %v11374_v21 = vld [vmem:[%s14102_s5 + $0x860] ss:$16 sps:$4 sm:$0xff]   ;;  %v11433_v39 = vld [vmem:[%s14102_s5 + $0x74c] ss:$16 sps:$4 sm:$0xff]  }
 0x525   :  { %5844 = vmatprep.subr.bf16.mxu0 %v11370_v40  ;;  %v11431_v40 = vld [vmem:[%s14102_s5 + $0x748] ss:$16 sps:$4 sm:$0xff]  }
 0x528   :  { %5845 = vmatpush1.bf16.msra.mxu0 %v11368_v16  ;;  %v11436_v16 = vld [vmem:[%s14102_s5 + $0x76c] ss:$16 sps:$4 sm:$0xff]  }
 0x529   :  { %5846 = vmatprep.subr.bf16.mxu0 %v11373_v22  ;;  %v13540_v22 = vld [vmem:[#allocation3 + $0x70] sm:$0xff] }
 0x52b   :  { %5084 = vmatmul.mubr.bf16.gmra.mrb[76].mxu0 %v12700_v11  ;;  %v11382_v11 = vld [vmem:[%s14102_s5 + $0x8a4] ss:$16 sps:$4 sm:$0xff]  }
 0x52c   :  { %5847 = vmatpush1.bf16.msra.mxu0 %v11371_v24  ;;  %9542 = vmatprep.mubr.msk.bf16.mxu0 %vm81_vm1, %v12756_v46  ;;  %v13383_v46 = vld [vmem:[#allocation3 + $0x48] sm:$0xff]  ;;  %v13543_v24 = vld [vmem:[#allocation3 + $0x98] sm:$0xff] }
 0x52d   :  { %5848 = vmatprep.subr.bf16.mxu0 %v11376_v44  ;;  %v11434_v44 = vld [vmem:[%s14102_s5 + $0x768] ss:$16 sps:$4 sm:$0xff]  }
 0x530   :  { %5849 = vmatpush1.bf16.msra.mxu0 %v11374_v21  ;;  %v11439_v21 = vld [vmem:[%s14102_s5 + $0x78c] ss:$16 sps:$4 sm:$0xff]  }
 0x531   :  { %5850 = vmatprep.subr.bf16.mxu0 %v11379_v41  ;;  %v11437_v41 = vld [vmem:[%s14102_s5 + $0x788] ss:$16 sps:$4 sm:$0xff]  }
 0x533   :  { %5094 = vmatmul.mubr.bf16.gmra.mrb[80].mxu0 %v12725_v45  ;;  %v11388_v45 = vld [vmem:[%s14102_s5 + $0x8e4] ss:$16 sps:$4 sm:$0xff]  }
 0x534   :  { %5851 = vmatpush1.bf16.msra.mxu0 %v11377_v42  ;;  %5858 = vmatprep.mubr.bf16.mxu0 %v13383_v46  ;;  %v11442_v42 = vld [vmem:[%s14102_s5 + $0x7ac] ss:$16 sps:$4 sm:$0xff]  }
 0x535   :  { %5852 = vmatprep.subr.bf16.mxu0 %v11382_v11  ;;  %v13559_v11 = vld [vmem:[#allocation3 + $0x90] sm:$0xff] }
 0x538   :  { %5853 = vmatpush1.bf16.msra.mxu0 %v11380_v36  ;;  %v13562_v36 = vld [vmem:[#allocation3 + $0xb8] sm:$0xff] }
 0x539   :  { %5854 = vmatprep.subr.bf16.mxu0 %v11385_v62  ;;  %v11440_v62 = vld [vmem:[%s14102_s5 + $0x7a8] ss:$16 sps:$4 sm:$0xff]  }
 0x53c   :  { %5855 = vmatpush1.bf16.msra.mxu0 %v11383_v47  ;;  %v11445_v47 = vld [vmem:[%s14102_s5 + $0x7cc] ss:$16 sps:$4 sm:$0xff]  }
 0x53d   :  { %5856 = vmatprep.subr.bf16.mxu0 %v11388_v45  ;;  %v11443_v45 = vld [vmem:[%s14102_s5 + $0x7c8] ss:$16 sps:$4 sm:$0xff]  }
 0x540   :  { %5857 = vmatpush1.bf16.msra.mxu0 %v11386_v1  ;;  %v11448_v1 = vld [vmem:[%s14102_s5 + $0x7ec] ss:$16 sps:$4 sm:$0xff]  }
 0x541   :  { %5929 = vmatprep.subr.bf16.mxu0 %v11391_v50  ;;  %v13578_v50 = vld [vmem:[#allocation3 + $0xb0] sm:$0xff] }
 0x543   :  { %5859 = vmatmul.mubr.bf16.vlgmr.msra.gmra.mrb[28].mxu0 %v13410_v43 }
 0x544   :  { %5868 = vmatprep.mubr.bf16.mxu0 %v13413_v49  ;;  %5930 = vmatpush1.bf16.msra.mxu0 %v11389_v61  ;;  %v13581_v61 = vld [vmem:[#allocation3 + $0xd8] sm:$0xff] }
 0x545   :  { %5931 = vmatprep.subr.bf16.mxu0 %v11394_v20  ;;  %v11446_v20 = vld [vmem:[%s14102_s5 + $0x7e8] ss:$16 sps:$4 sm:$0xff]  }
 0x548   :  { %5932 = vmatpush1.bf16.msra.mxu0 %v11392_v19  ;;  %v11451_v19 = vld [vmem:[%s14102_s5 + $0x80c] ss:$16 sps:$4 sm:$0xff]  }
 0x549   :  { %5933 = vmatprep.subr.bf16.mxu0 %v11397_v52  ;;  %v11449_v52 = vld [vmem:[%s14102_s5 + $0x808] ss:$16 sps:$4 sm:$0xff]  }
 0x54b   :  { %5869 = vmatmul.mubr.bf16.gmra.mrb[32].mxu0 %v13428_v55 }
 0x54c   :  { %5878 = vmatprep.mubr.bf16.mxu0 %v13431_v57  ;;  %5934 = vmatpush1.bf16.msra.mxu0 %v11395_v4  ;;  %v11454_v4 = vld [vmem:[%s14102_s5 + $0x82c] ss:$16 sps:$4 sm:$0xff]  }
 0x54d   :  { %5935 = vmatprep.subr.bf16.mxu0 %v11400_v7  ;;  %v13597_v7 = vld [vmem:[#allocation3 + $0xd0] sm:$0xff] }
 0x550   :  { %5936 = vmatpush1.bf16.msra.mxu0 %v11398_v38  ;;  %v13600_v38 = vld [vmem:[#allocation3 + $0xf8] sm:$0xff] }
 0x551   :  { %5937 = vmatprep.subr.bf16.mxu0 %v11403_v58  ;;  %v11452_v58 = vld [vmem:[%s14102_s5 + $0x828] ss:$16 sps:$4 sm:$0xff]  }
 0x553   :  { %5879 = vmatmul.mubr.bf16.gmra.mrb[36].mxu0 %v13446_v60 }
 0x554   :  { %5888 = vmatprep.mubr.bf16.mxu0 %v13449_v2  ;;  %5938 = vmatpush1.bf16.msra.mxu0 %v11401_v26  ;;  %v11457_v26 = vld [vmem:[%s14102_s5 + $0x84c] ss:$16 sps:$4 sm:$0xff]  }
 0x555   :  { %5939 = vmatprep.subr.bf16.mxu0 %v11406_v59  ;;  %v11455_v59 = vld [vmem:[%s14102_s5 + $0x848] ss:$16 sps:$4 sm:$0xff]  }
 0x558   :  { %5940 = vmatpush1.bf16.msra.mxu0 %v11404_v35  ;;  %v11460_v35 = vld [vmem:[%s14102_s5 + $0x86c] ss:$16 sps:$4 sm:$0xff]  }
 0x559   :  { %5941 = vmatprep.subr.bf16.mxu0 %v11409_v51  ;;  %v13616_v51 = vld [vmem:[#allocation3 + $0x118] sm:$0xff] }
 0x55b   :  { %5889 = vmatmul.mubr.bf16.gmra.mrb[40].mxu0 %v13464_v13 }
 0x55c   :  { %5898 = vmatprep.mubr.bf16.mxu0 %v13467_v12  ;;  %5942 = vmatpush1.bf16.msra.mxu0 %v11407_v8  ;;  %v13618_v8 = vld [vmem:[#allocation3 + $0xf0] sm:$0xff] }
 0x55d   :  { %5943 = vmatprep.subr.bf16.mxu0 %v11412_v28  ;;  %v11509_v28 = vld [vmem:[#allocation6 + $0x120] sm:$0xff]  }
 0x55e   :  { %10003 = vmatprep.subr.bf16.mxu1 %v11509_v28  ;;  %v11523_v28 = vld [vmem:[#allocation6 + $0x158] sm:$0xff]  }
 0x560   :  { %5944 = vmatpush1.bf16.msra.mxu0 %v11410_v14  ;;  %v11510_v14 = vld [vmem:[#allocation6 + $0xe0] sm:$0xff]  }
 0x561   :  { %5945 = vmatprep.subr.bf16.mxu0 %v11415_v3  ;;  %v11511_v3 = vld [vmem:[#allocation6 + $0x128] sm:$0xff]   ;;  %10004 = vmatpush3.bf16.msra.mxu1 %v11510_v14 }
 0x562   :  { %10005 = vmatprep.subr.bf16.mxu1 %v11511_v3  ;;  %v11505_v14 = vld [vmem:[%s14102_s5 + $0xa4c] ss:$16 sps:$4 sm:$0xff]  }
 0x563   :  { %5899 = vmatmul.mubr.bf16.gmra.mrb[44].mxu0 %v13482_v54  ;;  %v11524_v3 = vld [vmem:[#allocation6 + $0x118] sm:$0xff]  }
 0x564   :  { %5908 = vmatprep.mubr.bf16.mxu0 %v13485_v0  ;;  %5946 = vmatpush1.bf16.msra.mxu0 %v11413_v15  ;;  %v11458_v15 = vld [vmem:[%s14102_s5 + $0x868] ss:$16 sps:$4 sm:$0xff]  }
 0x565   :  { %5947 = vmatprep.subr.bf16.mxu0 %v11418_v48  ;;  %v11463_v48 = vld [vmem:[%s14102_s5 + $0x88c] ss:$16 sps:$4 sm:$0xff]  }
 0x568   :  { %5948 = vmatpush1.bf16.msra.mxu0 %v11416_v53  ;;  %v11512_v53 = vld [vmem:[#allocation6 + $0xe8] sm:$0xff]  }
 0x569   :  { %5949 = vmatprep.subr.bf16.mxu0 %v11421_v6  ;;  %v11513_v6 = vld [vmem:[#allocation6 + $0x130] sm:$0xff]   ;;  %10006 = vmatpush3.bf16.msra.mxu1 %v11512_v53  ;;  %v11538_v53 = vld [vmem:[#allocation6 + $0x5c8] sm:$0xff]  }
 0x56a   :  { %10007 = vmatprep.subr.bf16.mxu1 %v11513_v6 }
 0x56b   :  { %5909 = vmatmul.mubr.bf16.gmra.mrb[48].mxu0 %v13500_v25 }
 0x56c   :  { %5918 = vmatprep.mubr.bf16.mxu0 %v12988_v9  ;;  %5950 = vmatpush1.bf16.msra.mxu0 %v11419_v18  ;;  %v11461_v18 = vld [vmem:[%s14102_s5 + $0x888] ss:$16 sps:$4 sm:$0xff]  }
 0x56d   :  { %5951 = vmatprep.subr.bf16.mxu0 %v11424_v10  ;;  %v11466_v10 = vld [vmem:[%s14102_s5 + $0x8ac] ss:$16 sps:$4 sm:$0xff]  }
 0x570   :  { %5952 = vmatpush1.bf16.msra.mxu0 %v11422_v17  ;;  %v11514_v17 = vld [vmem:[#allocation6 + $0xf0] sm:$0xff]  }
 0x571   :  { %6032 = vmatprep.subr.bf16.mxu0 %v11427_v5  ;;  %v11515_v5 = vld [vmem:[#allocation6 + $0x138] sm:$0xff]   ;;  %10008 = vmatpush3.bf16.msra.mxu1 %v11514_v17 }
 0x572   :  { %10009 = vmatprep.subr.bf16.mxu1 %v11515_v5 }
 0x573   :  { %5919 = vmatmul.mubr.bf16.gmra.mrb[52].mxu0 %v12988_v9 }
 0x574   :  { %9767 = vmatprep.mubr.msk.bf16.mxu0 %vm81_vm1, %v13511_v29 }
 0x57b   :  { %5962 = vmatmul.mubr.bf16.vlgmr.msra.gmra.mrb[28].mxu0 %v13521_v63 }
 0x57c   :  { %6033 = vmatpush1.bf16.msra.mxu0 %v11425_v30  ;;  %9768 = vmatprep.mubr.msk.bf16.mxu0 %vm81_vm1, %v13524_v23  ;;  %v11464_v30 = vld [vmem:[%s14102_s5 + $0x8a8] ss:$16 sps:$4 sm:$0xff]  }
 0x57d   :  { %6034 = vmatprep.subr.bf16.mxu0 %v11430_v33  ;;  %v11469_v33 = vld [vmem:[%s14102_s5 + $0x8cc] ss:$16 sps:$4 sm:$0xff]  }
 0x580   :  { %6035 = vmatpush1.bf16.msra.mxu0 %v11428_v37  ;;  %v11470_v37 = vld [vmem:[%s14102_s5 + $0x8e8] ss:$16 sps:$4 sm:$0xff]  }
 0x581   :  { %6036 = vmatprep.subr.bf16.mxu0 %v11433_v39  ;;  %v11475_v39 = vld [vmem:[%s14102_s5 + $0x90c] ss:$16 sps:$4 sm:$0xff]  }
 0x583   :  { %5972 = vmatmul.mubr.bf16.gmra.mrb[32].mxu0 %v13540_v22 }
 0x584   :  { %6037 = vmatpush1.bf16.msra.mxu0 %v11431_v40  ;;  %9769 = vmatprep.mubr.msk.bf16.mxu0 %vm81_vm1, %v13543_v24  ;;  %v11473_v40 = vld [vmem:[%s14102_s5 + $0x908] ss:$16 sps:$4 sm:$0xff]  }
 0x585   :  { %6038 = vmatprep.subr.bf16.mxu0 %v11436_v16  ;;  %v11478_v16 = vld [vmem:[%s14102_s5 + $0x92c] ss:$16 sps:$4 sm:$0xff]  }
 0x588   :  { %6039 = vmatpush1.bf16.msra.mxu0 %v11434_v44  ;;  %v11476_v44 = vld [vmem:[%s14102_s5 + $0x928] ss:$16 sps:$4 sm:$0xff]  }
 0x589   :  { %6040 = vmatprep.subr.bf16.mxu0 %v11439_v21  ;;  %v11481_v21 = vld [vmem:[%s14102_s5 + $0x94c] ss:$16 sps:$4 sm:$0xff]  }
 0x58b   :  { %5982 = vmatmul.mubr.bf16.gmra.mrb[36].mxu0 %v13559_v11 }
 0x58c   :  { %6041 = vmatpush1.bf16.msra.mxu0 %v11437_v41  ;;  %9770 = vmatprep.mubr.msk.bf16.mxu0 %vm81_vm1, %v13562_v36  ;;  %v11479_v41 = vld [vmem:[%s14102_s5 + $0x948] ss:$16 sps:$4 sm:$0xff]  }
 0x58d   :  { %6042 = vmatprep.subr.bf16.mxu0 %v11442_v42  ;;  %v11487_v42 = vld [vmem:[%s14102_s5 + $0x98c] ss:$16 sps:$4 sm:$0xff]  }
 0x590   :  { %6043 = vmatpush1.bf16.msra.mxu0 %v11440_v62  ;;  %v11485_v62 = vld [vmem:[%s14102_s5 + $0x988] ss:$16 sps:$4 sm:$0xff]  }
 0x591   :  { %6044 = vmatprep.subr.bf16.mxu0 %v11445_v47  ;;  %v11493_v47 = vld [vmem:[%s14102_s5 + $0x9cc] ss:$16 sps:$4 sm:$0xff]  }
 0x593   :  { %5992 = vmatmul.mubr.bf16.gmra.mrb[40].mxu0 %v13578_v50 }
 0x594   :  { %6045 = vmatpush1.bf16.msra.mxu0 %v11443_v45  ;;  %9771 = vmatprep.mubr.msk.bf16.mxu0 %vm81_vm1, %v13581_v61  ;;  %v11516_v45 = vld [vmem:[#allocation6 + $0xf8] sm:$0xff]  }
 0x595   :  { %6046 = vmatprep.subr.bf16.mxu0 %v11448_v1  ;;  %10010 = vmatpush3.bf16.msra.mxu1 %v11516_v45  ;;  %v11491_v1 = vld [vmem:[%s14102_s5 + $0x9c8] ss:$16 sps:$4 sm:$0xff]  }
 0x598   :  { %6047 = vmatpush1.bf16.msra.mxu0 %v11446_v20  ;;  %v11518_v20 = vld [vmem:[#allocation6 + $0x100] sm:$0xff]  }
 0x599   :  { %6048 = vmatprep.subr.bf16.mxu0 %v11451_v19  ;;  %v11494_v19 = vld [vmem:[%s14102_s5 + $0x9e8] ss:$16 sps:$4 sm:$0xff]  }
 0x59b   :  { %6002 = vmatmul.mubr.bf16.gmra.mrb[44].mxu0 %v13597_v7 }
 0x59c   :  { %6049 = vmatpush1.bf16.msra.mxu0 %v11449_v52  ;;  %9772 = vmatprep.mubr.msk.bf16.mxu0 %vm81_vm1, %v13600_v38  ;;  %v11519_v52 = vld [vmem:[#allocation6 + $0x148] sm:$0xff]  }
 0x59d   :  { %6050 = vmatprep.subr.bf16.mxu0 %v11454_v4  ;;  %v11499_v4 = vld [vmem:[%s14102_s5 + $0xa0c] ss:$16 sps:$4 sm:$0xff]  }
 0x5a0   :  { %6051 = vmatpush1.bf16.msra.mxu0 %v11452_v58  ;;  %v11520_v58 = vld [vmem:[#allocation6 + $0x108] sm:$0xff]  }
 0x5a1   :  { %6052 = vmatprep.subr.bf16.mxu0 %v11457_v26  ;;  %v11502_v26 = vld [vmem:[%s14102_s5 + $0xa2c] ss:$16 sps:$4 sm:$0xff]  }
 0x5a3   :  { %6012 = vmatmul.mubr.bf16.gmra.mrb[48].mxu0 %v13618_v8 }
 0x5a4   :  { %6053 = vmatpush1.bf16.msra.mxu0 %v11455_v59  ;;  %9773 = vmatprep.mubr.msk.bf16.mxu0 %vm81_vm1, %v13616_v51  ;;  %v11522_v59 = vld [vmem:[#allocation6 + $0x110] sm:$0xff]  }
 0x5a5   :  { %6054 = vmatprep.subr.bf16.mxu0 %v11460_v35  ;;  %v11500_v35 = vld [vmem:[%s14102_s5 + $0xa28] ss:$16 sps:$4 sm:$0xff]  }
 0x5a8   :  { %6055 = vmatpush1.bf16.msra.mxu0 %v11458_v15  ;;  %v11508_v15 = vld [vmem:[%s14102_s5 + $0xa6c] ss:$16 sps:$4 sm:$0xff]  }
 0x5a9   :  { %6056 = vmatprep.subr.bf16.mxu0 %v11463_v48  ;;  %v11506_v48 = vld [vmem:[%s14102_s5 + $0xa68] ss:$16 sps:$4 sm:$0xff]  }
 0x5ab   :  { %6022 = vmatmul.mubr.bf16.gmra.mrb[52].mxu0 %v12988_v9  ;;  %v11467_v9 = vld [vmem:[%s14102_s5 + $0x8c8] ss:$16 sps:$4 sm:$0xff]  }
 0x5ac   :  { %6057 = vmatpush1.bf16.msra.mxu0 %v11461_v18  ;;  %6064 = vmatprep.mubr.bf16.mxu0 %v13383_v46  ;;  %v11472_v46 = vld [vmem:[%s14102_s5 + $0x8ec] ss:$16 sps:$4 sm:$0xff]  }
 0x5ad   :  { %6058 = vmatprep.subr.bf16.mxu0 %v11466_v10 }
 0x5b0   :  { %6059 = vmatpush1.bf16.msra.mxu0 %v11464_v30 }
 0x5b1   :  { %6060 = vmatprep.subr.bf16.mxu0 %v11469_v33 }
 0x5b4   :  { %6061 = vmatpush1.bf16.msra.mxu0 %v11467_v9 }
 0x5b5   :  { %6062 = vmatprep.subr.bf16.mxu0 %v11472_v46 }
 0x5b8   :  { %6063 = vmatpush1.bf16.msra.mxu0 %v11470_v37  ;;  %v11541_v37 = vld [vmem:[#allocation6 + $0x5d0] sm:$0xff]  }
 0x5b9   :  { %6135 = vmatprep.subr.bf16.mxu0 %v11475_v39 }
 0x5bb   :  { %6065 = vmatmul.mubr.bf16.vlgmr.msra.gmra.mrb[56].mxu0 %v13410_v43  ;;  %v11484_v43 = vld [vmem:[%s14102_s5 + $0x96c] ss:$16 sps:$4 sm:$0xff]  }
 0x5bc   :  { %6074 = vmatprep.mubr.bf16.mxu0 %v13413_v49  ;;  %6136 = vmatpush1.bf16.msra.mxu0 %v11473_v40  ;;  %v11482_v49 = vld [vmem:[%s14102_s5 + $0x968] ss:$16 sps:$4 sm:$0xff]  }
 0x5bd   :  { %6137 = vmatprep.subr.bf16.mxu0 %v11478_v16 }
 0x5c0   :  { %6138 = vmatpush1.bf16.msra.mxu0 %v11476_v44 }
 0x5c1   :  { %6139 = vmatprep.subr.bf16.mxu0 %v11481_v21 }
 0x5c3   :  { %6075 = vmatmul.mubr.bf16.gmra.mrb[60].mxu0 %v13428_v55  ;;  %v11490_v55 = vld [vmem:[%s14102_s5 + $0x9ac] ss:$16 sps:$4 sm:$0xff]  }
 0x5c4   :  { %6084 = vmatprep.mubr.bf16.mxu0 %v13431_v57  ;;  %6140 = vmatpush1.bf16.msra.mxu0 %v11479_v41  ;;  %v11488_v57 = vld [vmem:[%s14102_s5 + $0x9a8] ss:$16 sps:$4 sm:$0xff]  }
 0x5c5   :  { %6141 = vmatprep.subr.bf16.mxu0 %v11484_v43  ;;  %v11544_v43 = vld [vmem:[#allocation6 + $0x5d8] sm:$0xff]  }
 0x5c8   :  { %6142 = vmatpush1.bf16.msra.mxu0 %v11482_v49 }
 0x5c9   :  { %6143 = vmatprep.subr.bf16.mxu0 %v11487_v42 }
 0x5cb   :  { %6085 = vmatmul.mubr.bf16.gmra.mrb[64].mxu0 %v13446_v60  ;;  %v11517_v60 = vld [vmem:[#allocation6 + $0x140] sm:$0xff]  }
 0x5cc   :  { %6094 = vmatprep.mubr.bf16.mxu0 %v13449_v2  ;;  %6144 = vmatpush1.bf16.msra.mxu0 %v11485_v62  ;;  %v11496_v2 = vld [vmem:[%s14102_s5 + $0x9ec] ss:$16 sps:$4 sm:$0xff]   ;;  %v11525_v62 = vld [vmem:[#allocation6 + $0x160] sm:$0xff]  }
 0x5cd   :  { %6145 = vmatprep.subr.bf16.mxu0 %v11490_v55  ;;  %10011 = vmatprep.subr.bf16.mxu1 %v11517_v60 }
 0x5ce   :  { %10012 = vmatpush3.bf16.msra.mxu1 %v11518_v20 }
 0x5cf   :  { %10013 = vmatprep.subr.bf16.mxu1 %v11519_v52 }
 0x5d0   :  { %6146 = vmatpush1.bf16.msra.mxu0 %v11488_v57 }
 0x5d1   :  { %6147 = vmatprep.subr.bf16.mxu0 %v11493_v47 }
 0x5d2   :  { %10014 = vmatpush3.bf16.msra.mxu1 %v11520_v58 }
 0x5d3   :  { %6095 = vmatmul.mubr.bf16.gmra.mrb[68].mxu0 %v13464_v13  ;;  %v11497_v13 = vld [vmem:[%s14102_s5 + $0xa08] ss:$16 sps:$4 sm:$0xff]  }
 0x5d4   :  { %6104 = vmatprep.mubr.bf16.mxu0 %v13467_v12  ;;  %6148 = vmatpush1.bf16.msra.mxu0 %v11491_v1  ;;  %v11521_v12 = vld [vmem:[#allocation6 + $0x150] sm:$0xff]  }
 0x5d5   :  { %6149 = vmatprep.subr.bf16.mxu0 %v11496_v2  ;;  %10015 = vmatprep.subr.bf16.mxu1 %v11521_v12  ;;  %v11547_v2 = vld [vmem:[#allocation6 + $0x5e0] sm:$0xff]  }
 0x5d6   :  { %10016 = vmatpush3.bf16.msra.mxu1 %v11522_v59 }
 0x5d7   :  { %10017 = vmatprep.subr.bf16.mxu1 %v11523_v28  ;;  %v11527_v28 = vld [vmem:[#allocation6 + $0x170] sm:$0xff]  }
 0x5d8   :  { %6150 = vmatpush1.bf16.msra.mxu0 %v11494_v19  ;;  %v11526_v19 = vld [vmem:[#allocation6 + $0x168] sm:$0xff]  }
 0x5d9   :  { %6151 = vmatprep.subr.bf16.mxu0 %v11499_v4 }
 0x5da   :  { %10018 = vmatpush3.bf16.msra.mxu1 %v11524_v3 }
 0x5db   :  { %6105 = vmatmul.mubr.bf16.gmra.mrb[72].mxu0 %v13482_v54  ;;  %v11503_v54 = vld [vmem:[%s14102_s5 + $0xa48] ss:$16 sps:$4 sm:$0xff]  }
 0x5dc   :  { %6114 = vmatprep.mubr.bf16.mxu0 %v13485_v0  ;;  %6152 = vmatpush1.bf16.msra.mxu0 %v11497_v13  ;;  %v13728_v0 = vld [vmem:[#allocation2] sm:$0xff] }
 0x5dd   :  { %6153 = vmatprep.subr.bf16.mxu0 %v11502_v26  ;;  %6781 = vmatprep.subr.bf16.mxu1 %v13728_v0  ;;  %v11550_v26 = vld [vmem:[#allocation6 + $0x5e8] sm:$0xff]  }
 0x5e0   :  { %6154 = vmatpush1.bf16.msra.mxu0 %v11500_v35 }
 0x5e1   :  { %6155 = vmatprep.subr.bf16.mxu0 %v11505_v14 }
 0x5e3   :  { %6115 = vmatmul.mubr.bf16.gmra.mrb[76].mxu0 %v13500_v25  ;;  %v13765_v25 = vld [vmem:[%s14103_s6] sm:$0xf] }
 0x5e4   :  { %6124 = vmatprep.mubr.bf16.mxu0 %v13728_v0  ;;  %6156 = vmatpush1.bf16.msra.mxu0 %v11503_v54 }
 0x5e5   :  { %6157 = vmatprep.subr.bf16.mxu0 %v11508_v15 }
 0x5e8   :  { %6158 = vmatpush1.bf16.msra.mxu0 %v11506_v48 }
 0x5e9   :  { %8592 = vmatprep.subr.bf16.mxu0 %v13728_v0 }
 0x5eb   :  { %6125 = vmatmul.mubr.bf16.gmra.mrb[80].mxu0 %v13728_v0 }
 0x5ec   :  { %9774 = vmatprep.mubr.msk.bf16.mxu0 %vm81_vm1, %v13511_v29  ;;  %v13769_v29 = vrot.slane %v13765_v25, %v12124_v32 }
 0x5f3   :  { %6168 = vmatmul.mubr.bf16.vlgmr.msra.gmra.mrb[56].mxu0 %v13521_v63  ;;  %v13773_v63 = vrot.slane %v13765_v25, %v12130_v34 }
 0x5f4   :  { %9775 = vmatprep.mubr.msk.bf16.mxu0 %vm81_vm1, %v13524_v23 }
 0x5fb   :  { %6178 = vmatmul.mubr.bf16.gmra.mrb[60].mxu0 %v13540_v22 }
 0x5fc   :  { %9776 = vmatprep.mubr.msk.bf16.mxu0 %vm81_vm1, %v13543_v24 }
 0x603   :  { %6188 = vmatmul.mubr.bf16.gmra.mrb[64].mxu0 %v13559_v11 }
 0x604   :  { %9777 = vmatprep.mubr.msk.bf16.mxu0 %vm81_vm1, %v13562_v36 }
 0x60b   :  { %6198 = vmatmul.mubr.bf16.gmra.mrb[68].mxu0 %v13578_v50  ;;  %v11536_v50 = vld [vmem:[#allocation6 + $0x5c0] sm:$0xff]  }
 0x60c   :  { %9778 = vmatprep.mubr.msk.bf16.mxu0 %vm81_vm1, %v13581_v61  ;;  %8593 = vmatpush1.bf16.msra.mxu0 %v11536_v50 }
 0x60d   :  { %8594 = vmatprep.subr.bf16.mxu0 %v13728_v0 }
 0x610   :  { %8595 = vmatpush1.bf16.msra.mxu0 %v11538_v53 }
 0x611   :  { %8596 = vmatprep.subr.bf16.mxu0 %v13728_v0 }
 0x613   :  { %6208 = vmatmul.mubr.bf16.gmra.mrb[72].mxu0 %v13597_v7 }
 0x614   :  { %9779 = vmatprep.mubr.msk.bf16.mxu0 %vm81_vm1, %v13600_v38  ;;  %8597 = vmatpush1.bf16.msra.mxu0 %v11541_v37  ;;  %v11530_v37 = vld [vmem:[#allocation6 + $0x188] sm:$0xff]  }
 0x615   :  { %8598 = vmatprep.subr.bf16.mxu0 %v13728_v0 }
 0x618   :  { %8599 = vmatpush1.bf16.msra.mxu0 %v11544_v43 }
 0x619   :  { %8600 = vmatprep.subr.bf16.mxu0 %v13728_v0 }
 0x61b   :  { %6218 = vmatmul.mubr.bf16.gmra.mrb[76].mxu0 %v13618_v8 }
 0x61c   :  { %9780 = vmatprep.mubr.msk.bf16.mxu0 %vm81_vm1, %v13616_v51  ;;  %8601 = vmatpush1.bf16.msra.mxu0 %v11547_v2 }
 0x61d   :  { %8602 = vmatprep.subr.bf16.mxu0 %v13728_v0 }
 0x620   :  { %8603 = vmatpush1.bf16.msra.mxu0 %v11550_v26  ;;  %v11566_v26 = vld [vmem:[#allocation6 + $0x618] sm:$0xff]  }
 0x621   :  { %8604 = vmatprep.subr.bf16.mxu0 %v13728_v0 }
 0x623   :  { %6228 = vmatmul.mubr.bf16.gmra.mrb[80].mxu0 %v13728_v0 }
 0x64e   :  { %v5963_v23 = vpop.f32.mrb[28].mxu0 }
 0x64f   :  { %v6316_v22 = vadd.f32 %v13769_v29, %v5963_v23  ;;  %v5965_v24 = vpop.f32.mrb[29].mxu0 }
 0x650   :  { %v6317_v11 = vadd.f32 %v13773_v63, %v5965_v24  ;;  %v5967_v36 = vpop.f32.mrb[30].mxu0 }
 0x651   :  { %v6320_v61 = vadd.f32 %v13769_v29, %v5967_v36  ;;  %v5969_v7 = vpop.f32.mrb[31].mxu0  ;;  %v6372_v32 = vmax.f32 %v6316_v22, 0.0  ;;  %v11553_v22 = vld [vmem:[#allocation6 + $0x5f0] sm:$0xff]  }
 0x652   :  { %v6321_v38 = vadd.f32 %v13773_v63, %v5969_v7  ;;  %v6373_v34 = vmax.f32 %v6317_v11, 0.0  ;;  %v11528_v11 = vld [vmem:[#allocation6 + $0x178] sm:$0xff]   ;;  %8605 = vmatpush1.bf16.msra.mxu0 %v11553_v22 }
 0x653   :  { %v6376_v51 = vmax.f32 %v6320_v61, 0.0  ;;  %8606 = vmatprep.subr.bf16.mxu0 %v13728_v0 }
 0x654   :  { %v6377_v8 = vmax.f32 %v6321_v38, 0.0 }
 0x655   :  { %v13780_v6 = vpack.c.bf16 %v6376_v51, %v6372_v32  ;;  %v11556_v32 = vld [vmem:[#allocation6 + $0x5f8] sm:$0xff]  }
 0x656   :  { %v13782_v18 = vpack.c.bf16 %v6377_v8, %v6373_v34  ;;  %v5973_v10 = vpop.f32.mrb[32].mxu0  ;;  %v11529_v8 = vld [vmem:[#allocation6 + $0x180] sm:$0xff]   ;;  %8607 = vmatpush1.bf16.msra.mxu0 %v11556_v32 }
 0x657   :  { %v6324_v17 = vadd.f32 %v13769_v29, %v5973_v10  ;;  %v5975_v5 = vpop.f32.mrb[33].mxu0  ;;  %8608 = vmatprep.subr.bf16.mxu0 %v13728_v0 }
 0x658   :  { %v6325_v30 = vadd.f32 %v13773_v63, %v5975_v5  ;;  %v5977_v33 = vpop.f32.mrb[34].mxu0 }
 0x659   :  { %v6328_v9 = vadd.f32 %v13769_v29, %v5977_v33  ;;  %v5979_v46 = vpop.f32.mrb[35].mxu0  ;;  %v6380_v40 = vmax.f32 %v6324_v17, 0.0 }
 0x65a   :  { %v6329_v39 = vadd.f32 %v13773_v63, %v5979_v46  ;;  %v6381_v44 = vmax.f32 %v6325_v30, 0.0 }
 0x65b   :  { %v6384_v16 = vmax.f32 %v6328_v9, 0.0  ;;  %v11559_v9 = vld [vmem:[#allocation6 + $0x600] sm:$0xff]  }
 0x65c   :  { %v6385_v21 = vmax.f32 %v6329_v39, 0.0  ;;  %8609 = vmatpush1.bf16.msra.mxu0 %v11559_v9 }
 0x65d   :  { %v6432_v41 = vpack.c.bf16 %v6384_v16, %v6380_v40  ;;  %8610 = vmatprep.subr.bf16.mxu0 %v13728_v0 }
 0x65e   :  { %v6433_v49 = vpack.c.bf16 %v6385_v21, %v6381_v44  ;;  %v5983_v42 = vpop.f32.mrb[36].mxu0 }
 0x65f   :  { %v6332_v55 = vadd.f32 %v13769_v29, %v5983_v42  ;;  %v5985_v57 = vpop.f32.mrb[37].mxu0  ;;  %v11531_v42 = vld [vmem:[#allocation6 + $0x190] sm:$0xff]  }
 0x660   :  { %v6333_v47 = vadd.f32 %v13773_v63, %v5985_v57  ;;  %v5987_v45 = vpop.f32.mrb[38].mxu0  ;;  %6772 = vmatprep.mubr.bf16.mxu1 %v6433_v49 }
 0x661   :  { %v6336_v1 = vadd.f32 %v13769_v29, %v5987_v45  ;;  %v5989_v60 = vpop.f32.mrb[39].mxu0  ;;  %6773 = vmatmul.mubr.bf16.vlgmr.msra.gmra.mrb[56].mxu1 %v6432_v41  ;;  %v6388_v52 = vmax.f32 %v6332_v55, 0.0  ;;  %v11562_v41 = vld [vmem:[#allocation6 + $0x608] sm:$0xff]  }
 0x662   :  { %v6337_v20 = vadd.f32 %v13773_v63, %v5989_v60  ;;  %6782 = vmatpush1.bf16.msra.mxu1 %v11525_v62  ;;  %v6389_v58 = vmax.f32 %v6333_v47, 0.0  ;;  %8611 = vmatpush1.bf16.msra.mxu0 %v11562_v41  ;;  %v11564_v60 = vld [vmem:[#allocation6 + $0x610] sm:$0xff]  }
 0x663   :  { %v6392_v4 = vmax.f32 %v6336_v1, 0.0  ;;  %6783 = vmatprep.subr.bf16.mxu1 %v13728_v0  ;;  %8612 = vmatprep.subr.bf16.mxu0 %v13728_v0 }
 0x664   :  { %v6393_v13 = vmax.f32 %v6337_v20, 0.0  ;;  %v11532_v20 = vld [vmem:[#allocation6 + $0x198] sm:$0xff]  }
 0x665   :  { %v13797_v12 = vpack.c.bf16 %v6392_v4, %v6388_v52 }
 0x666   :  { %v13799_v59 = vpack.c.bf16 %v6393_v13, %v6389_v58  ;;  %v5993_v35 = vpop.f32.mrb[40].mxu0  ;;  %6784 = vmatpush1.bf16.msra.mxu1 %v11526_v19  ;;  %8613 = vmatpush1.bf16.msra.mxu0 %v11564_v60 }
 0x667   :  { %v6340_v14 = vadd.f32 %v13769_v29, %v5993_v35  ;;  %v5995_v3 = vpop.f32.mrb[41].mxu0  ;;  %6785 = vmatprep.subr.bf16.mxu1 %v13728_v0  ;;  %8614 = vmatprep.subr.bf16.mxu0 %v13728_v0 }
 0x668   :  { %v6341_v54 = vadd.f32 %v13773_v63, %v5995_v3  ;;  %v5997_v15 = vpop.f32.mrb[42].mxu0 }
 0x669   :  { %v6344_v48 = vadd.f32 %v13769_v29, %v5997_v15  ;;  %v5999_v23 = vpop.f32.mrb[43].mxu0  ;;  %v6396_v36 = vmax.f32 %v6340_v14, 0.0  ;;  %v11533_v14 = vld [vmem:[#allocation6 + $0x1a0] sm:$0xff]  }
 0x66a   :  { %v6345_v24 = vadd.f32 %v13773_v63, %v5999_v23  ;;  %6786 = vmatpush1.bf16.msra.mxu1 %v11527_v28  ;;  %v6397_v61 = vmax.f32 %v6341_v54, 0.0  ;;  %8615 = vmatpush1.bf16.msra.mxu0 %v11566_v26 }
 0x66b   :  { %v6400_v50 = vmax.f32 %v6344_v48, 0.0  ;;  %6787 = vmatprep.subr.bf16.mxu1 %v13728_v0 }
 0x66c   :  { %v6401_v7 = vmax.f32 %v6345_v24, 0.0 }
 0x66d   :  { %v13809_v38 = vpack.c.bf16 %v6400_v50, %v6396_v36 }
 0x66e   :  { %v13811_v51 = vpack.c.bf16 %v6401_v7, %v6397_v61  ;;  %v6003_v34 = vpop.f32.mrb[44].mxu0  ;;  %6788 = vmatpush1.bf16.msra.mxu1 %v11528_v11  ;;  %v11534_v11 = vld [vmem:[#allocation6 + $0x1a8] sm:$0xff]  }
 0x66f   :  { %v6348_v53 = vadd.f32 %v13769_v29, %v6003_v34  ;;  %v6005_v10 = vpop.f32.mrb[45].mxu0  ;;  %6789 = vmatprep.subr.bf16.mxu1 %v13728_v0 }
 0x670   :  { %v6349_v17 = vadd.f32 %v13773_v63, %v6005_v10  ;;  %v6007_v5 = vpop.f32.mrb[46].mxu0  ;;  %v13857_v10 = vrot.slane %v13765_v25, %v2705_v56 }
 0x671   :  { %v6352_v30 = vadd.f32 %v13769_v29, %v6007_v5  ;;  %v6009_v33 = vpop.f32.mrb[47].mxu0  ;;  %v6404_v39 = vmax.f32 %v6348_v53, 0.0  ;;  %v13852_v53 = vrot.slane %v13765_v25, %v2701_v27 }
 0x672   :  { %v6353_v46 = vadd.f32 %v13773_v63, %v6009_v33  ;;  %6790 = vmatpush1.bf16.msra.mxu1 %v11529_v8  ;;  %v6405_v16 = vmax.f32 %v6349_v17, 0.0  ;;  %v11535_v8 = vld [vmem:[#allocation6 + $0x1b0] sm:$0xff]  }
 0x673   :  { %v6408_v40 = vmax.f32 %v6352_v30, 0.0  ;;  %6791 = vmatprep.subr.bf16.mxu1 %v13728_v0 }
 0x674   :  { %v6409_v44 = vmax.f32 %v6353_v46, 0.0 }
 0x675   :  { %v13821_v21 = vpack.c.bf16 %v6408_v40, %v6404_v39 }
 0x676   :  { %v13823_v43 = vpack.c.bf16 %v6409_v44, %v6405_v16  ;;  %v6013_v49 = vpop.f32.mrb[48].mxu0  ;;  %6792 = vmatpush1.bf16.msra.mxu1 %v11530_v37 }
 0x677   :  { %v6356_v62 = vadd.f32 %v13769_v29, %v6013_v49  ;;  %v6015_v55 = vpop.f32.mrb[49].mxu0  ;;  %6793 = vmatprep.subr.bf16.mxu1 %v13728_v0 }
 0x678   :  { %v6357_v57 = vadd.f32 %v13773_v63, %v6015_v55  ;;  %v6017_v47 = vpop.f32.mrb[50].mxu0 }
 0x679   :  { %v6360_v45 = vadd.f32 %v13769_v29, %v6017_v47  ;;  %v6019_v1 = vpop.f32.mrb[51].mxu0  ;;  %v6412_v19 = vmax.f32 %v6356_v62, 0.0 }
 0x67a   :  { %v6361_v2 = vadd.f32 %v13773_v63, %v6019_v1  ;;  %6794 = vmatpush1.bf16.msra.mxu1 %v11531_v42  ;;  %v6413_v4 = vmax.f32 %v6357_v57, 0.0 }
 0x67b   :  { %v6416_v52 = vmax.f32 %v6360_v45, 0.0  ;;  %6795 = vmatprep.subr.bf16.mxu1 %v13728_v0 }
 0x67c   :  { %v6417_v58 = vmax.f32 %v6361_v2, 0.0 }
 0x67d   :  { %v13833_v13 = vpack.c.bf16 %v6416_v52, %v6412_v19 }
 0x67e   :  { %v13835_v35 = vpack.c.bf16 %v6417_v58, %v6413_v4  ;;  %v6023_v28 = vpop.f32.mrb[52].mxu0  ;;  %6796 = vmatpush1.bf16.msra.mxu1 %v11532_v20  ;;  %v11540_v4 = vld [vmem:[#allocation6] sm:$0xff]  }
 0x67f   :  { %v6364_v3 = vadd.f32 %v13769_v29, %v6023_v28  ;;  %v6025_v54 = vpop.f32.mrb[53].mxu0  ;;  %6797 = vmatprep.subr.bf16.mxu1 %v13728_v0  ;;  %v11542_v28 = vld [vmem:[#allocation6 + $0x48] sm:$0xff]  }
 0x680   :  { %v6365_v15 = vadd.f32 %v13773_v63, %v6025_v54  ;;  %v6027_v48 = vpop.f32.mrb[54].mxu0 }
 0x681   :  { %v6368_v23 = vadd.f32 %v13769_v29, %v6027_v48  ;;  %v6029_v22 = vpop.f32.mrb[55].mxu0  ;;  %v6420_v36 = vmax.f32 %v6364_v3, 0.0  ;;  %v11537_v29 = vld [vmem:[#allocation6 + $0x1b8] sm:$0xff]  }
 0x682   :  { %v6369_v24 = vadd.f32 %v13773_v63, %v6029_v22  ;;  %6798 = vmatpush1.bf16.msra.mxu1 %v11533_v14  ;;  %v6421_v61 = vmax.f32 %v6365_v15, 0.0  ;;  %v11539_v63 = vld [vmem:[#allocation6 + $0x40] sm:$0xff]  }
 0x683   :  { %v6424_v50 = vmax.f32 %v6368_v23, 0.0  ;;  %6799 = vmatprep.subr.bf16.mxu1 %v13728_v0  ;;  %v11543_v23 = vld [vmem:[#allocation6 + $0x8] sm:$0xff]  }
 0x684   :  { %v6425_v7 = vmax.f32 %v6369_v24, 0.0 }
 0x685   :  { %v13843_v32 = vpack.c.bf16 %v6424_v50, %v6420_v36 }
 0x686   :  { %v13845_v34 = vpack.c.bf16 %v6425_v7, %v6421_v61  ;;  %6800 = vmatpush1.bf16.msra.mxu1 %v11534_v11  ;;  %v11545_v11 = vld [vmem:[#allocation6 + $0x50] sm:$0xff]  }
 0x687   :  { %6801 = vmatprep.subr.bf16.mxu1 %v13728_v0 }
 0x68a   :  { %6802 = vmatpush1.bf16.msra.mxu1 %v11535_v8 }
 0x68b   :  { %6803 = vmatprep.subr.bf16.mxu1 %v13728_v0 }
 0x68e   :  { %6804 = vmatpush1.bf16.msra.mxu1 %v11537_v29  ;;  %v11546_v29 = vld [vmem:[#allocation6 + $0x10] sm:$0xff]  }
 0x68f   :  { %10025 = vmatprep.subr.bf16.mxu1 %v11539_v63 }
 0x6c6   :  { %v6169_v17 = vpop.f32.mrb[56].mxu0 }
 0x6c7   :  { %v6318_v5 = vadd.f32 %v13852_v53, %v6169_v17  ;;  %v6171_v30 = vpop.f32.mrb[57].mxu0 }
 0x6c8   :  { %v6319_v33 = vadd.f32 %v13857_v10, %v6171_v30  ;;  %v6173_v9 = vpop.f32.mrb[58].mxu0 }
 0x6c9   :  { %v6322_v46 = vadd.f32 %v13852_v53, %v6173_v9  ;;  %v6175_v37 = vpop.f32.mrb[59].mxu0  ;;  %v6374_v40 = vmax.f32 %v6318_v5, 0.0  ;;  %v11548_v5 = vld [vmem:[#allocation6 + $0x58] sm:$0xff]  }
 0x6ca   :  { %v6323_v39 = vadd.f32 %v13857_v10, %v6175_v37  ;;  %v6375_v16 = vmax.f32 %v6319_v33, 0.0  ;;  %v11549_v37 = vld [vmem:[#allocation6 + $0x18] sm:$0xff]  }
 0x6cb   :  { %v6378_v27 = vmax.f32 %v6322_v46, 0.0 }
 0x6cc   :  { %v6379_v44 = vmax.f32 %v6323_v39, 0.0 }
 0x6cd   :  { %v13863_v31 = vpack.c.bf16 %v6378_v27, %v6374_v40  ;;  %v11551_v27 = vld [vmem:[#allocation6 + $0x60] sm:$0xff]  }
 0x6ce   :  { %v13865_v56 = vpack.c.bf16 %v6379_v44, %v6375_v16  ;;  %v6179_v25 = vpop.f32.mrb[60].mxu0 }
 0x6cf   :  { %v6326_v41 = vadd.f32 %v13852_v53, %v6179_v25  ;;  %v6181_v49 = vpop.f32.mrb[61].mxu0 }
 0x6d0   :  { %v6327_v42 = vadd.f32 %v13857_v10, %v6181_v49  ;;  %v6183_v62 = vpop.f32.mrb[62].mxu0 }
 0x6d1   :  { %v6330_v55 = vadd.f32 %v13852_v53, %v6183_v62  ;;  %v6185_v57 = vpop.f32.mrb[63].mxu0  ;;  %v6382_v45 = vmax.f32 %v6326_v41, 0.0 }
 0x6d2   :  { %v6331_v47 = vadd.f32 %v13857_v10, %v6185_v57  ;;  %v6383_v60 = vmax.f32 %v6327_v42, 0.0  ;;  %v11552_v42 = vld [vmem:[#allocation6 + $0x20] sm:$0xff]   ;;  %v11554_v57 = vld [vmem:[#allocation6 + $0x68] sm:$0xff]  }
 0x6d3   :  { %v6386_v1 = vmax.f32 %v6330_v55, 0.0 }
 0x6d4   :  { %v6387_v2 = vmax.f32 %v6331_v47, 0.0 }
 0x6d5   :  { %v6434_v20 = vpack.c.bf16 %v6386_v1, %v6382_v45 }
 0x6d6   :  { %v6435_v19 = vpack.c.bf16 %v6387_v2, %v6383_v60  ;;  %v6189_v52 = vpop.f32.mrb[64].mxu0 }
 0x6d7   :  { %v6334_v58 = vadd.f32 %v13852_v53, %v6189_v52  ;;  %v6191_v26 = vpop.f32.mrb[65].mxu0 }
 0x6d8   :  { %v6335_v14 = vadd.f32 %v13857_v10, %v6191_v26  ;;  %v6193_v3 = vpop.f32.mrb[66].mxu0  ;;  %9809 = vmatprep.mubr.msk.bf16.mxu1 %vm81_vm1, %v6435_v19 }
 0x6d9   :  { %v6338_v54 = vadd.f32 %v13852_v53, %v6193_v3  ;;  %v6195_v15 = vpop.f32.mrb[67].mxu0  ;;  %6814 = vmatmul.mubr.bf16.vlgmr.msra.gmra.mrb[60].mxu1 %v6434_v20  ;;  %v6390_v22 = vmax.f32 %v6334_v58, 0.0  ;;  %v11555_v20 = vld [vmem:[#allocation6 + $0x28] sm:$0xff]  }
 0x6da   :  { %v6339_v48 = vadd.f32 %v13857_v10, %v6195_v15  ;;  %10026 = vmatpush3.bf16.msra.mxu1 %v11540_v4  ;;  %7025 = vmatprep.mubr.bf16.mxu1 %v13782_v18  ;;  %v6391_v36 = vmax.f32 %v6335_v14, 0.0  ;;  %v11557_v4 = vld [vmem:[#allocation6 + $0x70] sm:$0xff]  }
 0x6db   :  { %v6394_v24 = vmax.f32 %v6338_v54, 0.0  ;;  %10027 = vmatprep.subr.bf16.mxu1 %v11542_v28  ;;  %v11558_v54 = vld [vmem:[#allocation6 + $0x30] sm:$0xff]  }
 0x6dc   :  { %v6395_v50 = vmax.f32 %v6339_v48, 0.0 }
 0x6dd   :  { %v13877_v61 = vpack.c.bf16 %v6394_v24, %v6390_v22 }
 0x6de   :  { %v13879_v7 = vpack.c.bf16 %v6395_v50, %v6391_v36  ;;  %10028 = vmatpush3.bf16.msra.mxu1 %v11543_v23  ;;  %v6199_v8 = vpop.f32.mrb[68].mxu0  ;;  %v11560_v23 = vld [vmem:[#allocation6 + $0x78] sm:$0xff]  }
 0x6df   :  { %v6342_v63 = vadd.f32 %v13852_v53, %v6199_v8  ;;  %v6201_v17 = vpop.f32.mrb[69].mxu0  ;;  %10029 = vmatprep.subr.bf16.mxu1 %v11545_v11  ;;  %v11561_v8 = vld [vmem:[#allocation6 + $0x38] sm:$0xff]  }
 0x6e0   :  { %v6343_v18 = vadd.f32 %v13857_v10, %v6201_v17  ;;  %v6203_v30 = vpop.f32.mrb[70].mxu0 }
 0x6e1   :  { %v6346_v33 = vadd.f32 %v13852_v53, %v6203_v30  ;;  %v6205_v9 = vpop.f32.mrb[71].mxu0  ;;  %v6398_v39 = vmax.f32 %v6342_v63, 0.0 }
 0x6e2   :  { %v6347_v46 = vadd.f32 %v13857_v10, %v6205_v9  ;;  %10030 = vmatpush3.bf16.msra.mxu1 %v11546_v29  ;;  %v6399_v16 = vmax.f32 %v6343_v18, 0.0  ;;  %v11563_v9 = vld [vmem:[#allocation6 + $0x80] sm:$0xff]  }
 0x6e3   :  { %v6402_v40 = vmax.f32 %v6346_v33, 0.0  ;;  %10031 = vmatprep.subr.bf16.mxu1 %v11548_v5 }
 0x6e4   :  { %v6403_v44 = vmax.f32 %v6347_v46, 0.0 }
 0x6e5   :  { %v13885_v25 = vpack.c.bf16 %v6402_v40, %v6398_v39 }
 0x6e6   :  { %v13887_v41 = vpack.c.bf16 %v6403_v44, %v6399_v16  ;;  %10032 = vmatpush3.bf16.msra.mxu1 %v11549_v37  ;;  %v6209_v49 = vpop.f32.mrb[72].mxu0 }
 0x6e7   :  { %v6350_v62 = vadd.f32 %v13852_v53, %v6209_v49  ;;  %v6211_v55 = vpop.f32.mrb[73].mxu0  ;;  %10033 = vmatprep.subr.bf16.mxu1 %v11551_v27  ;;  %v11565_v49 = vld [vmem:[#allocation6 + $0x88] sm:$0xff]  }
 0x6e8   :  { %v6351_v47 = vadd.f32 %v13857_v10, %v6211_v55  ;;  %v6213_v45 = vpop.f32.mrb[74].mxu0 }
 0x6e9   :  { %v6354_v1 = vadd.f32 %v13852_v53, %v6213_v45  ;;  %v6215_v60 = vpop.f32.mrb[75].mxu0  ;;  %v6406_v19 = vmax.f32 %v6350_v62, 0.0 }
 0x6ea   :  { %v6355_v2 = vadd.f32 %v13857_v10, %v6215_v60  ;;  %10034 = vmatpush3.bf16.msra.mxu1 %v11552_v42  ;;  %v6407_v58 = vmax.f32 %v6351_v47, 0.0  ;;  %v11572_v60 = vld [vmem:[#allocation6 + $0xb8] sm:$0xff]  }
 0x6eb   :  { %v6410_v52 = vmax.f32 %v6354_v1, 0.0  ;;  %10035 = vmatprep.subr.bf16.mxu1 %v11554_v57  ;;  %v11571_v1 = vld [vmem:[#allocation6 + $0xb0] sm:$0xff]  }
 0x6ec   :  { %v6411_v26 = vmax.f32 %v6355_v2, 0.0  ;;  %v11573_v2 = vld [vmem:[#allocation6 + $0xc0] sm:$0xff]  }
 0x6ed   :  { %v13893_v28 = vpack.c.bf16 %v6410_v52, %v6406_v19  ;;  %v11575_v19 = vld [vmem:[#allocation6 + $0xd0] sm:$0xff]   ;;  %v11576_v52 = vld [vmem:[#allocation6 + $0xd8] sm:$0xff]  }
 0x6ee   :  { %v13895_v14 = vpack.c.bf16 %v6411_v26, %v6407_v58  ;;  %10036 = vmatpush3.bf16.msra.mxu1 %v11555_v20  ;;  %v6219_v3 = vpop.f32.mrb[76].mxu0  ;;  %v11574_v20 = vld [vmem:[#allocation6 + $0xc8] sm:$0xff]   ;;  %v11578_v58 = vld [vmem:[#allocation6 + $0x1c0] sm:$0xff]  }
 0x6ef   :  { %v6358_v15 = vadd.f32 %v13852_v53, %v6219_v3  ;;  %v6221_v48 = vpop.f32.mrb[77].mxu0  ;;  %10037 = vmatprep.subr.bf16.mxu1 %v11557_v4  ;;  %v11577_v4 = vld [vmem:[#allocation6 + $0x200] sm:$0xff]   ;;  %v11579_v26 = vld [vmem:[#allocation6 + $0x208] sm:$0xff]  }
 0x6f0   :  { %v6359_v22 = vadd.f32 %v13857_v10, %v6221_v48  ;;  %v6223_v24 = vpop.f32.mrb[78].mxu0  ;;  %v11580_v3 = vld [vmem:[#allocation6 + $0x1c8] sm:$0xff]   ;;  %v11583_v48 = vld [vmem:[#allocation6 + $0x218] sm:$0xff]  }
 0x6f1   :  { %v6362_v11 = vadd.f32 %v13852_v53, %v6223_v24  ;;  %v6225_v36 = vpop.f32.mrb[79].mxu0  ;;  %v6414_v29 = vmax.f32 %v6358_v15, 0.0  ;;  %v11582_v15 = vld [vmem:[#allocation6 + $0x1d0] sm:$0xff]  }
 0x6f2   :  { %v6363_v50 = vadd.f32 %v13857_v10, %v6225_v36  ;;  %10038 = vmatpush3.bf16.msra.mxu1 %v11558_v54  ;;  %v6415_v17 = vmax.f32 %v6359_v22, 0.0  ;;  %v11581_v54 = vld [vmem:[#allocation6 + $0x210] sm:$0xff]   ;;  %v11585_v22 = vld [vmem:[#allocation6 + $0x220] sm:$0xff]  }
 0x6f3   :  { %v6418_v63 = vmax.f32 %v6362_v11, 0.0  ;;  %10039 = vmatprep.subr.bf16.mxu1 %v11560_v23  ;;  %v11584_v23 = vld [vmem:[#allocation6 + $0x1d8] sm:$0xff]  }
 0x6f4   :  { %v6419_v5 = vmax.f32 %v6363_v50, 0.0  ;;  %v11586_v50 = vld [vmem:[#allocation6 + $0x1e0] sm:$0xff]  }
 0x6f5   :  { %v13901_v18 = vpack.c.bf16 %v6418_v63, %v6414_v29  ;;  %v11588_v63 = vld [vmem:[#allocation6 + $0x1e8] sm:$0xff]  }
 0x6f6   :  { %v13903_v30 = vpack.c.bf16 %v6419_v5, %v6415_v17  ;;  %10040 = vmatpush3.bf16.msra.mxu1 %v11561_v8  ;;  %v6229_v33 = vpop.f32.mrb[80].mxu0  ;;  %v11589_v17 = vld [vmem:[#allocation6 + $0x230] sm:$0xff]  }
 0x6f7   :  { %v6366_v46 = vadd.f32 %v13852_v53, %v6229_v33  ;;  %v6231_v37 = vpop.f32.mrb[81].mxu0  ;;  %7034 = vmatprep.subr.bf16.mxu1 %v13728_v0  ;;  %v11590_v5 = vld [vmem:[#allocation6 + $0x1f0] sm:$0xff]   ;;  %v11591_v33 = vld [vmem:[#allocation6 + $0x238] sm:$0xff]  }
 0x6f8   :  { %v6367_v39 = vadd.f32 %v13857_v10, %v6231_v37  ;;  %v6233_v40 = vpop.f32.mrb[82].mxu0  ;;  %v11594_v37 = vld [vmem:[#allocation6 + $0x248] sm:$0xff]  }
 0x6f9   :  { %v6370_v27 = vadd.f32 %v13852_v53, %v6233_v40  ;;  %7026 = vmatmul.mubr.bf16.vlgmr.msra.gmra.mrb[64].mxu1 %v13780_v6  ;;  %v6235_v16 = vpop.f32.mrb[83].mxu0  ;;  %v6422_v42 = vmax.f32 %v6366_v46, 0.0  ;;  %v11567_v53 = vld [vmem:[#allocation6 + $0x90] sm:$0xff]   ;;  %v11568_v6 = vld [vmem:[#allocation6 + $0x98] sm:$0xff]   ;;  %v11593_v46 = vld [vmem:[#allocation6 + $0x240] sm:$0xff]  }
 0x6fa   :  { %v6371_v44 = vadd.f32 %v13857_v10, %v6235_v16  ;;  %7035 = vmatpush1.bf16.msra.mxu1 %v11563_v9  ;;  %9838 = vmatprep.mubr.msk.bf16.mxu1 %vm81_vm1, %v13865_v56  ;;  %v6423_v55 = vmax.f32 %v6367_v39, 0.0  ;;  %v11569_v10 = vld [vmem:[#allocation6 + $0xa0] sm:$0xff]   ;;  %v11570_v56 = vld [vmem:[#allocation6 + $0xa8] sm:$0xff]   ;;  %v11592_v9 = vld [vmem:[#allocation6 + $0x1f8] sm:$0xff]  }
 0x6fb   :  { %v6426_v62 = vmax.f32 %v6370_v27, 0.0  ;;  %7036 = vmatprep.subr.bf16.mxu1 %v13728_v0  ;;  %v11595_v39 = vld [vmem:[#allocation6 + $0x250] sm:$0xff]   ;;  %v11596_v40 = vld [vmem:[#allocation6 + $0x258] sm:$0xff]   ;;  %v11597_v27 = vld [vmem:[#allocation6 + $0x260] sm:$0xff]  }
 0x6fc   :  { %v6427_v57 = vmax.f32 %v6371_v44, 0.0  ;;  %v11600_v16 = vld [vmem:[#allocation6 + $0x278] sm:$0xff]   ;;  %v11601_v44 = vld [vmem:[#allocation6 + $0x280] sm:$0xff]  }
 0x6fd   :  { %v6454_v47 = vpack.c.bf16 %v6426_v62, %v6422_v42  ;;  %v11603_v42 = vld [vmem:[#allocation6 + $0x290] sm:$0xff]   ;;  %v11604_v62 = vld [vmem:[#allocation6 + $0x298] sm:$0xff]  }
 0x6fe   :  { %v6455_v45 = vpack.c.bf16 %v6427_v57, %v6423_v55  ;;  %7037 = vmatpush1.bf16.msra.mxu1 %v11565_v49  ;;  %v11602_v49 = vld [vmem:[#allocation6 + $0x288] sm:$0xff]   ;;  %v11605_v55 = vld [vmem:[#allocation6 + $0x2e0] sm:$0xff]  }
 0x6ff   :  { %7038 = vmatprep.subr.bf16.mxu1 %v13728_v0  ;;  %v11606_v57 = vld [vmem:[#allocation6 + $0x2a0] sm:$0xff]  }
 0x700   :  { %9983 = vmatprep.mubr.msk.bf16.mxu0 %vm81_vm1, %v6455_v45  ;;  %v11608_v45 = vld [vmem:[#allocation6 + $0x2a8] sm:$0xff]  }
 0x701   :  { %8625 = vmatmul.mubr.bf16.vlgmr.msra.gmra.mrb[84].mxu0 %v6454_v47  ;;  %v11607_v47 = vld [vmem:[#allocation6 + $0x2e8] sm:$0xff]  }
 0x702   :  { %7039 = vmatpush1.bf16.msra.mxu1 %v11567_v53  ;;  %v11609_v53 = vld [vmem:[#allocation6 + $0x2f0] sm:$0xff]  }
 0x703   :  { %7040 = vmatprep.subr.bf16.mxu1 %v13728_v0 }
 0x706   :  { %7041 = vmatpush1.bf16.msra.mxu1 %v11568_v6  ;;  %v11610_v6 = vld [vmem:[#allocation6 + $0x2b0] sm:$0xff]  }
 0x707   :  { %7042 = vmatprep.subr.bf16.mxu1 %v13728_v0 }
 0x70a   :  { %7043 = vmatpush1.bf16.msra.mxu1 %v11569_v10  ;;  %v11611_v10 = vld [vmem:[#allocation6 + $0x2f8] sm:$0xff]  }
 0x70b   :  { %7044 = vmatprep.subr.bf16.mxu1 %v13728_v0 }
 0x70e   :  { %7045 = vmatpush1.bf16.msra.mxu1 %v11570_v56  ;;  %v11612_v56 = vld [vmem:[#allocation6 + $0x2b8] sm:$0xff]  }
 0x70f   :  { %7046 = vmatprep.subr.bf16.mxu1 %v13728_v0 }
 0x712   :  { %7047 = vmatpush1.bf16.msra.mxu1 %v11571_v1  ;;  %v11613_v1 = vld [vmem:[#allocation6 + $0x300] sm:$0xff]  }
 0x713   :  { %7048 = vmatprep.subr.bf16.mxu1 %v13728_v0 }
 0x716   :  { %7049 = vmatpush1.bf16.msra.mxu1 %v11572_v60  ;;  %v11614_v60 = vld [vmem:[#allocation6 + $0x2c0] sm:$0xff]  }
 0x717   :  { %7050 = vmatprep.subr.bf16.mxu1 %v13728_v0 }
 0x71a   :  { %7051 = vmatpush1.bf16.msra.mxu1 %v11573_v2  ;;  %v11615_v2 = vld [vmem:[#allocation6 + $0x308] sm:$0xff]  }
 0x71b   :  { %7052 = vmatprep.subr.bf16.mxu1 %v13728_v0 }
 0x71e   :  { %7053 = vmatpush1.bf16.msra.mxu1 %v11574_v20  ;;  %v11617_v20 = vld [vmem:[#allocation6 + $0x310] sm:$0xff]  }
 0x71f   :  { %7054 = vmatprep.subr.bf16.mxu1 %v13728_v0 }
 0x722   :  { %7055 = vmatpush1.bf16.msra.mxu1 %v11575_v19  ;;  %v11619_v19 = vld [vmem:[#allocation6 + $0x318] sm:$0xff]  }
 0x723   :  { %7056 = vmatprep.subr.bf16.mxu1 %v13728_v0 }
 0x726   :  { %7057 = vmatpush1.bf16.msra.mxu1 %v11576_v52  ;;  %v11620_v52 = vld [vmem:[#allocation6 + $0x2d8] sm:$0xff]  }
 0x727   :  { %10047 = vmatprep.subr.bf16.mxu1 %v11577_v4  ;;  %v11621_v4 = vld [vmem:[#allocation6 + $0x320] sm:$0xff]  }
 0x729   :  { %7067 = vmatmul.mubr.bf16.vlgmr.msra.gmra.mrb[68].mxu1 %v13863_v31 }
 0x72a   :  { %10048 = vmatpush3.bf16.msra.mxu1 %v11578_v58  ;;  %7335 = vmatprep.mubr.bf16.mxu1 %v13799_v59  ;;  %v11587_v59 = vld [vmem:[#allocation6 + $0x228] sm:$0xff]  }
 0x72b   :  { %10049 = vmatprep.subr.bf16.mxu1 %v11579_v26  ;;  %v11622_v58 = vld [vmem:[#allocation6 + $0x328] sm:$0xff]   ;;  %v11623_v26 = vld [vmem:[#allocation6 + $0x330] sm:$0xff]  }
 0x72e   :  { %10050 = vmatpush3.bf16.msra.mxu1 %v11580_v3  ;;  %v11624_v3 = vld [vmem:[#allocation6 + $0x338] sm:$0xff]  }
 0x72f   :  { %10051 = vmatprep.subr.bf16.mxu1 %v11581_v54  ;;  %v11625_v54 = vld [vmem:[#allocation6 + $0x340] sm:$0xff]  }
 0x732   :  { %10052 = vmatpush3.bf16.msra.mxu1 %v11582_v15 }
 0x733   :  { %10053 = vmatprep.subr.bf16.mxu1 %v11583_v48 }
 0x734   :  { %v10019_v24 = vpop.f32.mrb[56].mxu1 }
 0x735   :  { %v10020_v11 = vpop.f32.mrb[57].mxu1 }
 0x736   :  { %10054 = vmatpush3.bf16.msra.mxu1 %v11584_v23  ;;  %v13927_v36 = vadd.f32 %v10020_v11, %v10019_v24  ;;  %v10022_v31 = vpop.f32.mrb[58].mxu1 }
 0x737   :  { %v10023_v8 = vpop.f32.mrb[59].mxu1  ;;  %10055 = vmatprep.subr.bf16.mxu1 %v11585_v22  ;;  %v11627_v22 = vld [vmem:[#allocation6 + $0x350] sm:$0xff]  }
 0x738   :  { %v13929_v29 = vadd.f32 %v10023_v8, %v10022_v31  ;;  %v13959_v31 = vld [vmem:[#allocation2] sm:$0xff] }
 0x739   :  { %v11631_v8 = vld [vmem:[#allocation6 + $0x370] sm:$0xff]  }
 0x73a   :  { %10056 = vmatpush3.bf16.msra.mxu1 %v11586_v50  ;;  %v11628_v50 = vld [vmem:[#allocation6 + $0x358] sm:$0xff]  }
 0x73b   :  { %10057 = vmatprep.subr.bf16.mxu1 %v11587_v59  ;;  %v11632_v59 = vld [vmem:[#allocation6 + $0x378] sm:$0xff]  }
 0x73e   :  { %10058 = vmatpush3.bf16.msra.mxu1 %v11588_v63  ;;  %v11634_v63 = vld [vmem:[#allocation6 + $0x380] sm:$0xff]  }
 0x73f   :  { %10059 = vmatprep.subr.bf16.mxu1 %v11589_v17  ;;  %v11635_v17 = vld [vmem:[#allocation6 + $0x3c8] sm:$0xff]  }
 0x742   :  { %10060 = vmatpush3.bf16.msra.mxu1 %v11590_v5  ;;  %v11636_v5 = vld [vmem:[#allocation6 + $0x388] sm:$0xff]  }
 0x743   :  { %10061 = vmatprep.subr.bf16.mxu1 %v11591_v33  ;;  %v11637_v33 = vld [vmem:[#allocation6 + $0x3d0] sm:$0xff]  }
 0x746   :  { %10062 = vmatpush3.bf16.msra.mxu1 %v11592_v9 }
 0x747   :  { %7344 = vmatprep.subr.bf16.mxu1 %v13728_v0 }
 0x749   :  { %7336 = vmatmul.mubr.bf16.vlgmr.msra.gmra.mrb[72].mxu1 %v13797_v12  ;;  %v11598_v12 = vld [vmem:[#allocation6 + $0x268] sm:$0xff]  }
 0x74a   :  { %7345 = vmatpush1.bf16.msra.mxu1 %v11593_v46  ;;  %9867 = vmatprep.mubr.msk.bf16.mxu1 %vm81_vm1, %v13879_v7  ;;  %v11599_v7 = vld [vmem:[#allocation6 + $0x270] sm:$0xff]  }
 0x74b   :  { %7346 = vmatprep.subr.bf16.mxu1 %v13728_v0 }
 0x74e   :  { %7347 = vmatpush1.bf16.msra.mxu1 %v11594_v37 }
 0x74f   :  { %7348 = vmatprep.subr.bf16.mxu1 %v13728_v0 }
 0x752   :  { %7349 = vmatpush1.bf16.msra.mxu1 %v11595_v39 }
 0x753   :  { %7350 = vmatprep.subr.bf16.mxu1 %v13728_v0 }
 0x756   :  { %7351 = vmatpush1.bf16.msra.mxu1 %v11596_v40  ;;  %v11638_v40 = vld [vmem:[#allocation6 + $0x390] sm:$0xff]  }
 0x757   :  { %7352 = vmatprep.subr.bf16.mxu1 %v13728_v0 }
 0x75a   :  { %7353 = vmatpush1.bf16.msra.mxu1 %v11597_v27 }
 0x75b   :  { %7354 = vmatprep.subr.bf16.mxu1 %v13728_v0 }
 0x75e   :  { %7355 = vmatpush1.bf16.msra.mxu1 %v11598_v12  ;;  %v11639_v12 = vld [vmem:[#allocation6 + $0x3d8] sm:$0xff]  }
 0x75f   :  { %7356 = vmatprep.subr.bf16.mxu1 %v13728_v0 }
 0x762   :  { %7357 = vmatpush1.bf16.msra.mxu1 %v11599_v7 }
 0x763   :  { %7358 = vmatprep.subr.bf16.mxu1 %v13728_v0 }
 0x766   :  { %7359 = vmatpush1.bf16.msra.mxu1 %v11600_v16 }
 0x767   :  { %7360 = vmatprep.subr.bf16.mxu1 %v13728_v0 }
 0x76a   :  { %7361 = vmatpush1.bf16.msra.mxu1 %v11601_v44  ;;  %v11640_v44 = vld [vmem:[#allocation6 + $0x398] sm:$0xff]  }
 0x76b   :  { %7362 = vmatprep.subr.bf16.mxu1 %v13728_v0 }
 0x76e   :  { %7363 = vmatpush1.bf16.msra.mxu1 %v11602_v49  ;;  %v11641_v49 = vld [vmem:[#allocation6 + $0x3e0] sm:$0xff]  }
 0x76f   :  { %7364 = vmatprep.subr.bf16.mxu1 %v13728_v0 }
 0x772   :  { %7365 = vmatpush1.bf16.msra.mxu1 %v11603_v42 }
 0x773   :  { %7366 = vmatprep.subr.bf16.mxu1 %v13728_v0 }
 0x776   :  { %7367 = vmatpush1.bf16.msra.mxu1 %v11604_v62 }
 0x777   :  { %10069 = vmatprep.subr.bf16.mxu1 %v11605_v55  ;;  %v11642_v55 = vld [vmem:[#allocation6 + $0x3a0] sm:$0xff]  }
 0x779   :  { %7377 = vmatmul.mubr.bf16.vlgmr.msra.gmra.mrb[76].mxu1 %v13877_v61  ;;  %v11616_v61 = vld [vmem:[#allocation6 + $0x2c8] sm:$0xff]  }
 0x77a   :  { %10070 = vmatpush3.bf16.msra.mxu1 %v11606_v57  ;;  %7647 = vmatprep.mubr.bf16.mxu1 %v13811_v51  ;;  %v11618_v51 = vld [vmem:[#allocation6 + $0x2d0] sm:$0xff]  }
 0x77b   :  { %10071 = vmatprep.subr.bf16.mxu1 %v11607_v47  ;;  %v11643_v47 = vld [vmem:[#allocation6 + $0x3e8] sm:$0xff]  }
 0x77e   :  { %10072 = vmatpush3.bf16.msra.mxu1 %v11608_v45  ;;  %v11644_v45 = vld [vmem:[#allocation6 + $0x3a8] sm:$0xff]  }
 0x77f   :  { %10073 = vmatprep.subr.bf16.mxu1 %v11609_v53  ;;  %v11645_v53 = vld [vmem:[#allocation6 + $0x3f0] sm:$0xff]  }
 0x782   :  { %10074 = vmatpush3.bf16.msra.mxu1 %v11610_v6  ;;  %v11646_v6 = vld [vmem:[#allocation6 + $0x3b0] sm:$0xff]  }
 0x783   :  { %10075 = vmatprep.subr.bf16.mxu1 %v11611_v10  ;;  %v11647_v10 = vld [vmem:[#allocation6 + $0x3f8] sm:$0xff]  }
 0x786   :  { %10076 = vmatpush3.bf16.msra.mxu1 %v11612_v56  ;;  %v11648_v56 = vld [vmem:[#allocation6 + $0x3b8] sm:$0xff]  }
 0x787   :  { %10077 = vmatprep.subr.bf16.mxu1 %v11613_v1  ;;  %v11649_v1 = vld [vmem:[#allocation6 + $0x400] sm:$0xff]  }
 0x78a   :  { %10078 = vmatpush3.bf16.msra.mxu1 %v11614_v60  ;;  %v11650_v60 = vld [vmem:[#allocation6 + $0x408] sm:$0xff]  }
 0x78b   :  { %10079 = vmatprep.subr.bf16.mxu1 %v11615_v2  ;;  %v11651_v2 = vld [vmem:[#allocation6 + $0x410] sm:$0xff]  }
 0x78e   :  { %10080 = vmatpush3.bf16.msra.mxu1 %v11616_v61  ;;  %v11652_v61 = vld [vmem:[#allocation6 + $0x418] sm:$0xff]  }
 0x78f   :  { %10081 = vmatprep.subr.bf16.mxu1 %v11617_v20  ;;  %v11653_v20 = vld [vmem:[#allocation6 + $0x420] sm:$0xff]  }
 0x792   :  { %10082 = vmatpush3.bf16.msra.mxu1 %v11618_v51 }
 0x793   :  { %10083 = vmatprep.subr.bf16.mxu1 %v11619_v19 }
 0x796   :  { %10084 = vmatpush3.bf16.msra.mxu1 %v11620_v52 }
 0x797   :  { %7656 = vmatprep.subr.bf16.mxu1 %v13728_v0 }
 0x799   :  { %7648 = vmatmul.mubr.bf16.vlgmr.msra.gmra.mrb[80].mxu1 %v13809_v38  ;;  %v11626_v38 = vld [vmem:[#allocation6 + $0x348] sm:$0xff]  }
 0x79a   :  { %7657 = vmatpush1.bf16.msra.mxu1 %v11621_v4  ;;  %9896 = vmatprep.mubr.msk.bf16.mxu1 %vm81_vm1, %v13887_v41  ;;  %v11655_v4 = vld [vmem:[#allocation6 + $0x430] sm:$0xff]  }
 0x79b   :  { %7658 = vmatprep.subr.bf16.mxu1 %v13728_v0 }
 0x79e   :  { %7659 = vmatpush1.bf16.msra.mxu1 %v11622_v58 }
 0x79f   :  { %7660 = vmatprep.subr.bf16.mxu1 %v13728_v0 }
 0x7a2   :  { %7661 = vmatpush1.bf16.msra.mxu1 %v11623_v26 }
 0x7a3   :  { %7662 = vmatprep.subr.bf16.mxu1 %v13728_v0 }
 0x7a6   :  { %7663 = vmatpush1.bf16.msra.mxu1 %v11624_v3  ;;  %v11656_v3 = vld [vmem:[#allocation6 + $0x438] sm:$0xff]  }
 0x7a7   :  { %7664 = vmatprep.subr.bf16.mxu1 %v13728_v0 }
 0x7aa   :  { %7665 = vmatpush1.bf16.msra.mxu1 %v11625_v54  ;;  %v11657_v54 = vld [vmem:[#allocation6 + $0x440] sm:$0xff]  }
 0x7ab   :  { %7666 = vmatprep.subr.bf16.mxu1 %v13728_v0  ;;  %v11629_v0 = vld [vmem:[#allocation6 + $0x360] sm:$0xff]  }
 0x7ac   :  { %v6815_v41 = vpop.f32.mrb[60].mxu1 }
 0x7ad   :  { %v6816_v15 = vadd.f32 %v13927_v36, %v6815_v41  ;;  %v6817_v48 = vpop.f32.mrb[61].mxu1  ;;  %v11630_v36 = vld [vmem:[#allocation6 + $0x368] sm:$0xff]   ;;  %v11659_v41 = vld [vmem:[#allocation6 + $0x450] sm:$0xff]  }
 0x7ae   :  { %7667 = vmatpush1.bf16.msra.mxu1 %v11626_v38  ;;  %v6818_v23 = vpop.f32.mrb[62].mxu1  ;;  %v11658_v38 = vld [vmem:[#allocation6 + $0x448] sm:$0xff]   ;;  %v11661_v48 = vld [vmem:[#allocation6 + $0x4a0] sm:$0xff]  }
 0x7af   :  { %v6819_v24 = vadd.f32 %v13929_v29, %v6818_v23  ;;  %v6820_v11 = vpop.f32.mrb[63].mxu1  ;;  %7668 = vmatprep.subr.bf16.mxu1 %v13959_v31  ;;  %v11633_v29 = vld [vmem:[#allocation6 + $0x3c0] sm:$0xff]  }
 0x7b0   :  { %v11662_v23 = vld [vmem:[#allocation6 + $0x460] sm:$0xff]   ;;  %v11665_v11 = vld [vmem:[#allocation6 + $0x4b0] sm:$0xff]  }
 0x7b2   :  { %7669 = vmatpush1.bf16.msra.mxu1 %v11627_v22  ;;  %v11663_v22 = vld [vmem:[#allocation6 + $0x4a8] sm:$0xff]  }
 0x7b3   :  { %7670 = vmatprep.subr.bf16.mxu1 %v13959_v31 }
 0x7b6   :  { %7671 = vmatpush1.bf16.msra.mxu1 %v11628_v50 }
 0x7b7   :  { %7672 = vmatprep.subr.bf16.mxu1 %v13959_v31 }
 0x7ba   :  { %7673 = vmatpush1.bf16.msra.mxu1 %v11629_v0 }
 0x7bb   :  { %7674 = vmatprep.subr.bf16.mxu1 %v13959_v31 }
 0x7be   :  { %7675 = vmatpush1.bf16.msra.mxu1 %v11630_v36 }
 0x7bf   :  { %7676 = vmatprep.subr.bf16.mxu1 %v13959_v31 }
 0x7c2   :  { %7677 = vmatpush1.bf16.msra.mxu1 %v11631_v8 }
 0x7c3   :  { %7678 = vmatprep.subr.bf16.mxu1 %v13959_v31 }
 0x7c6   :  { %7679 = vmatpush1.bf16.msra.mxu1 %v11632_v59  ;;  %v11666_v59 = vld [vmem:[#allocation6 + $0x470] sm:$0xff]  }
 0x7c7   :  { %10091 = vmatprep.subr.bf16.mxu1 %v11633_v29 }
 0x7c9   :  { %7689 = vmatmul.mubr.bf16.vlgmr.msra.gmra.mrb[84].mxu1 %v13885_v25 }
 0x7ca   :  { %10092 = vmatpush3.bf16.msra.mxu1 %v11634_v63  ;;  %7959 = vmatprep.mubr.bf16.mxu1 %v13823_v43  ;;  %v11667_v63 = vld [vmem:[#allocation6 + $0x4b8] sm:$0xff]  }
 0x7cb   :  { %10093 = vmatprep.subr.bf16.mxu1 %v11635_v17 }
 0x7cc   :  { %v10041_v9 = vpop.f32.mrb[64].mxu1 }
 0x7cd   :  { %v10042_v46 = vpop.f32.mrb[65].mxu1 }
 0x7ce   :  { %v10043_v37 = vadd.f32 %v10042_v46, %v10041_v9  ;;  %v10044_v39 = vpop.f32.mrb[66].mxu1  ;;  %10094 = vmatpush3.bf16.msra.mxu1 %v11636_v5  ;;  %v11668_v5 = vld [vmem:[#allocation6 + $0x478] sm:$0xff]   ;;  %v11672_v9 = vld [vmem:[#allocation6 + $0x488] sm:$0xff]   ;;  %v11673_v46 = vld [vmem:[#allocation6 + $0x4d0] sm:$0xff]  }
 0x7cf   :  { %v10045_v27 = vpop.f32.mrb[67].mxu1  ;;  %10095 = vmatprep.subr.bf16.mxu1 %v11637_v33  ;;  %v11670_v33 = vld [vmem:[#allocation6 + $0x480] sm:$0xff]  }
 0x7d0   :  { %v10046_v7 = vadd.f32 %v10045_v27, %v10044_v39  ;;  %v7028_v16 = vadd.f32 %v10043_v37, %v6816_v15  ;;  %v11660_v15 = vld [vmem:[#allocation6 + $0x458] sm:$0xff]   ;;  %v11674_v37 = vld [vmem:[#allocation6 + $0x490] sm:$0xff]   ;;  %v11677_v27 = vld [vmem:[#allocation6 + $0x4e0] sm:$0xff]  }
 0x7d1   :  { %v11675_v39 = vld [vmem:[#allocation6 + $0x4d8] sm:$0xff]  }
 0x7d2   :  { %10096 = vmatpush3.bf16.msra.mxu1 %v11638_v40  ;;  %v7031_v25 = vadd.f32 %v10046_v7, %v6819_v24  ;;  %v11664_v24 = vld [vmem:[#allocation6 + $0x468] sm:$0xff]   ;;  %v11676_v40 = vld [vmem:[#allocation6 + $0x498] sm:$0xff]   ;;  %v11679_v7 = vld [vmem:[#allocation6 + $0x4f0] sm:$0xff]  }
 0x7d3   :  { %10097 = vmatprep.subr.bf16.mxu1 %v11639_v12  ;;  %v11678_v12 = vld [vmem:[#allocation6 + $0x4e8] sm:$0xff]  }
 0x7d4   :  { %v13969_v43 = vpop.f32.mrb[84].mxu0 }
 0x7d5   :  { %v8628_v42 = vpop.f32.mrb[85].mxu0 }
 0x7d6   :  { %10098 = vmatpush3.bf16.msra.mxu1 %v11640_v44  ;;  %v13971_v62 = vpop.f32.mrb[86].mxu0  ;;  %v11681_v44 = vld [vmem:[#allocation6 + $0x500] sm:$0xff]  }
 0x7d7   :  { %v8631_v57 = vpop.f32.mrb[87].mxu0  ;;  %10099 = vmatprep.subr.bf16.mxu1 %v11641_v49 }
 0x7da   :  { %10100 = vmatpush3.bf16.msra.mxu1 %v11642_v55  ;;  %v11683_v55 = vld [vmem:[#allocation6 + $0x510] sm:$0xff]  }
 0x7db   :  { %10101 = vmatprep.subr.bf16.mxu1 %v11643_v47 }
 0x7de   :  { %10102 = vmatpush3.bf16.msra.mxu1 %v11644_v45 }
 0x7df   :  { %10103 = vmatprep.subr.bf16.mxu1 %v11645_v53 }
 0x7e2   :  { %10104 = vmatpush3.bf16.msra.mxu1 %v11646_v6  ;;  %v11684_v6 = vld [vmem:[#allocation6 + $0x518] sm:$0xff]  }
 0x7e3   :  { %10105 = vmatprep.subr.bf16.mxu1 %v11647_v10  ;;  %v11685_v10 = vld [vmem:[#allocation6 + $0x520] sm:$0xff]  }
 0x7e6   :  { %10106 = vmatpush3.bf16.msra.mxu1 %v11648_v56  ;;  %v11686_v56 = vld [vmem:[#allocation6 + $0x528] sm:$0xff]  }
 0x7e7   :  { %7968 = vmatprep.subr.bf16.mxu1 %v13959_v31 }
 0x7e9   :  { %7960 = vmatmul.mubr.bf16.vlgmr.msra.gmra.mrb[88].mxu1 %v13821_v21  ;;  %v11654_v21 = vld [vmem:[#allocation6 + $0x428] sm:$0xff]  }
 0x7ea   :  { %7969 = vmatpush1.bf16.msra.mxu1 %v11649_v1  ;;  %9925 = vmatprep.mubr.msk.bf16.mxu1 %vm81_vm1, %v13895_v14  ;;  %v11687_v1 = vld [vmem:[#allocation6 + $0x530] sm:$0xff]  }
 0x7eb   :  { %7970 = vmatprep.subr.bf16.mxu1 %v13959_v31 }
 0x7ee   :  { %7971 = vmatpush1.bf16.msra.mxu1 %v11650_v60  ;;  %v11688_v60 = vld [vmem:[#allocation6 + $0x538] sm:$0xff]  }
 0x7ef   :  { %7972 = vmatprep.subr.bf16.mxu1 %v13959_v31 }
 0x7f2   :  { %7973 = vmatpush1.bf16.msra.mxu1 %v11651_v2  ;;  %v11689_v2 = vld [vmem:[#allocation6 + $0x580] sm:$0xff]  }
 0x7f3   :  { %7974 = vmatprep.subr.bf16.mxu1 %v13959_v31 }
 0x7f6   :  { %7975 = vmatpush1.bf16.msra.mxu1 %v11652_v61  ;;  %v11690_v61 = vld [vmem:[#allocation6 + $0x540] sm:$0xff]  }
 0x7f7   :  { %7976 = vmatprep.subr.bf16.mxu1 %v13959_v31 }
 0x7fa   :  { %7977 = vmatpush1.bf16.msra.mxu1 %v11653_v20  ;;  %v11691_v20 = vld [vmem:[#allocation6 + $0x588] sm:$0xff]  }
 0x7fb   :  { %7978 = vmatprep.subr.bf16.mxu1 %v13959_v31 }
 0x7fc   :  { %v7068_v14 = vpop.f32.mrb[68].mxu1 }
 0x7fd   :  { %v13982_v51 = vadd.f32 %v7068_v14, %v7028_v16  ;;  %v7070_v19 = vpop.f32.mrb[69].mxu1  ;;  %v11680_v16 = vld [vmem:[#allocation6 + $0x4f8] sm:$0xff]   ;;  %v11693_v14 = vld [vmem:[#allocation6 + $0x590] sm:$0xff]  }
 0x7fe   :  { %v7071_v52 = vpop.f32.mrb[70].mxu1  ;;  %7979 = vmatpush1.bf16.msra.mxu1 %v11654_v21  ;;  %v11692_v21 = vld [vmem:[#allocation6 + $0x548] sm:$0xff]  }
 0x7ff   :  { %v13984_v58 = vadd.f32 %v7071_v52, %v7031_v25  ;;  %v7073_v26 = vpop.f32.mrb[71].mxu1  ;;  %7980 = vmatprep.subr.bf16.mxu1 %v13959_v31 }
 0x800   :  { %v11695_v26 = vld [vmem:[#allocation6 + $0x598] sm:$0xff]  }
 0x802   :  { %7981 = vmatpush1.bf16.msra.mxu1 %v11655_v4 }
 0x803   :  { %7982 = vmatprep.subr.bf16.mxu1 %v13959_v31 }
 0x806   :  { %7983 = vmatpush1.bf16.msra.mxu1 %v11656_v3 }
 0x807   :  { %7984 = vmatprep.subr.bf16.mxu1 %v13959_v31 }
 0x80a   :  { %7985 = vmatpush1.bf16.msra.mxu1 %v11657_v54  ;;  %v11696_v54 = vld [vmem:[#allocation6 + $0x558] sm:$0xff]  }
 0x80b   :  { %7986 = vmatprep.subr.bf16.mxu1 %v13959_v31 }
 0x80e   :  { %7987 = vmatpush1.bf16.msra.mxu1 %v11658_v38  ;;  %v11698_v38 = vld [vmem:[#allocation6 + $0x560] sm:$0xff]  }
 0x80f   :  { %7988 = vmatprep.subr.bf16.mxu1 %v13959_v31 }
 0x812   :  { %7989 = vmatpush1.bf16.msra.mxu1 %v11659_v41  ;;  %v11700_v41 = vld [vmem:[#allocation6 + $0x568] sm:$0xff]  }
 0x813   :  { %7990 = vmatprep.subr.bf16.mxu1 %v13959_v31 }
 0x816   :  { %7991 = vmatpush1.bf16.msra.mxu1 %v11660_v15  ;;  %v11701_v15 = vld [vmem:[#allocation6 + $0x5b0] sm:$0xff]  }
 0x817   :  { %10113 = vmatprep.subr.bf16.mxu1 %v11661_v48  ;;  %v11702_v48 = vld [vmem:[#allocation6 + $0x570] sm:$0xff]  }
 0x819   :  { %8001 = vmatmul.mubr.bf16.vlgmr.msra.gmra.mrb[92].mxu1 %v13893_v28  ;;  %v11669_v28 = vld [vmem:[#allocation6 + $0x4c0] sm:$0xff]  }
 0x81a   :  { %10114 = vmatpush3.bf16.msra.mxu1 %v11662_v23  ;;  %8271 = vmatprep.mubr.bf16.mxu1 %v13835_v35  ;;  %v11671_v35 = vld [vmem:[#allocation6 + $0x4c8] sm:$0xff]   ;;  %v11703_v23 = vld [vmem:[#allocation6 + $0x5b8] sm:$0xff]  }
 0x81b   :  { %10115 = vmatprep.subr.bf16.mxu1 %v11663_v22  ;;  %v11704_v22 = vld [vmem:[#allocation6 + $0x578] sm:$0xff]  }
 0x81c   :  { %v10063_v50 = vpop.f32.mrb[72].mxu1 }
 0x81d   :  { %v10064_v0 = vpop.f32.mrb[73].mxu1 }
 0x81e   :  { %v10065_v36 = vadd.f32 %v10064_v0, %v10063_v50  ;;  %v10066_v8 = vpop.f32.mrb[74].mxu1  ;;  %10116 = vmatpush3.bf16.msra.mxu1 %v11664_v24 }
 0x81f   :  { %v10067_v29 = vpop.f32.mrb[75].mxu1  ;;  %10117 = vmatprep.subr.bf16.mxu1 %v11665_v11 }
 0x820   :  { %v10068_v17 = vadd.f32 %v10067_v29, %v10066_v8 }
 0x822   :  { %10118 = vmatpush3.bf16.msra.mxu1 %v11666_v59 }
 0x823   :  { %10119 = vmatprep.subr.bf16.mxu1 %v11667_v63 }
 0x826   :  { %10120 = vmatpush3.bf16.msra.mxu1 %v11668_v5 }
 0x827   :  { %10121 = vmatprep.subr.bf16.mxu1 %v11669_v28 }
 0x82a   :  { %10122 = vmatpush3.bf16.msra.mxu1 %v11670_v33 }
 0x82b   :  { %10123 = vmatprep.subr.bf16.mxu1 %v11671_v35 }
 0x82e   :  { %10124 = vmatpush3.bf16.msra.mxu1 %v11672_v9  ;;  %v11795_v9 = vmov 0.0  }
 0x82f   :  { %10125 = vmatprep.subr.bf16.mxu1 %v11673_v46  ;;  %v11706_v46 = vld [vmem:[%s14106_s9 + $0x8] sm:$0xff]  }
 0x832   :  { %10126 = vmatpush3.bf16.msra.mxu1 %v11674_v37  ;;  %v11707_v37 = vld [vmem:[%s14106_s9 + $0x10] sm:$0xff]  }
 0x833   :  { %10127 = vmatprep.subr.bf16.mxu1 %v11675_v39  ;;  %v11708_v39 = vld [vmem:[%s14106_s9 + $0x18] sm:$0xff]  }
 0x836   :  { %10128 = vmatpush3.bf16.msra.mxu1 %v11676_v40  ;;  %v11709_v40 = vld [vmem:[%s14106_s9 + $0x20] sm:$0xff]  }
 0x837   :  { %8280 = vmatprep.subr.bf16.mxu1 %v13959_v31 }
 0x839   :  { %8272 = vmatmul.mubr.bf16.vlgmr.msra.gmra.mrb[96].mxu1 %v13833_v13  ;;  %v11682_v13 = vld [vmem:[#allocation6 + $0x508] sm:$0xff]  }
 0x83a   :  { %8281 = vmatpush1.bf16.msra.mxu1 %v11677_v27  ;;  %9954 = vmatprep.mubr.msk.bf16.mxu1 %vm81_vm1, %v13903_v30  ;;  %v11710_v27 = vld [vmem:[%s14106_s9 + $0x28] sm:$0xff]  }
 0x83b   :  { %8282 = vmatprep.subr.bf16.mxu1 %v13959_v31 }
 0x83e   :  { %8283 = vmatpush1.bf16.msra.mxu1 %v11678_v12  ;;  %v11711_v12 = vld [vmem:[%s14106_s9 + $0x30] sm:$0xff]  }
 0x83f   :  { %8284 = vmatprep.subr.bf16.mxu1 %v13959_v31 }
 0x842   :  { %8285 = vmatpush1.bf16.msra.mxu1 %v11679_v7  ;;  %v11712_v7 = vld [vmem:[%s14106_s9 + $0x38] ss:$0 sps:$4 sm:$0xff]  }
 0x843   :  { %8286 = vmatprep.subr.bf16.mxu1 %v13959_v31 }
 0x846   :  { %8287 = vmatpush1.bf16.msra.mxu1 %v11680_v16  ;;  %v8720_v16 = vsel %vm8718_vm2, %v11712_v7, 0 }
 0x847   :  { %8288 = vmatprep.subr.bf16.mxu1 %v13959_v31 }
 0x84a   :  { %8289 = vmatpush1.bf16.msra.mxu1 %v11681_v44 }
 0x84b   :  { %8290 = vmatprep.subr.bf16.mxu1 %v13959_v31 }
 0x84c   :  { %v7378_v30 = vpop.f32.mrb[76].mxu1 }
 0x84d   :  { %v7379_v25 = vadd.f32 %v10065_v36, %v7378_v30  ;;  %v7380_v49 = vpop.f32.mrb[77].mxu1 }
 0x84e   :  { %v7381_v42 = vpop.f32.mrb[78].mxu1  ;;  %8291 = vmatpush1.bf16.msra.mxu1 %v11682_v13 }
 0x84f   :  { %v14004_v57 = vadd.f32 %v7379_v25, %v13982_v51  ;;  %v7382_v47 = vadd.f32 %v10068_v17, %v7381_v42  ;;  %v7383_v45 = vpop.f32.mrb[79].mxu1  ;;  %8292 = vmatprep.subr.bf16.mxu1 %v13959_v31 }
 0x851   :  { %v14008_v53 = vadd.f32 %v7382_v47, %v13984_v58  ;;  %v11694_v58 = vld [vmem:[#allocation6 + $0x550] sm:$0xff]  }
 0x852   :  { %8293 = vmatpush1.bf16.msra.mxu1 %v11683_v55 }
 0x853   :  { %8294 = vmatprep.subr.bf16.mxu1 %v13959_v31 }
 0x856   :  { %8295 = vmatpush1.bf16.msra.mxu1 %v11684_v6 }
 0x857   :  { %8296 = vmatprep.subr.bf16.mxu1 %v13959_v31 }
 0x85a   :  { %8297 = vmatpush1.bf16.msra.mxu1 %v11685_v10 }
 0x85b   :  { %8298 = vmatprep.subr.bf16.mxu1 %v13959_v31 }
 0x85e   :  { %8299 = vmatpush1.bf16.msra.mxu1 %v11686_v56 }
 0x85f   :  { %8300 = vmatprep.subr.bf16.mxu1 %v13959_v31 }
 0x862   :  { %8301 = vmatpush1.bf16.msra.mxu1 %v11687_v1 }
 0x863   :  { %8302 = vmatprep.subr.bf16.mxu1 %v13959_v31 }
 0x866   :  { %8303 = vmatpush1.bf16.msra.mxu1 %v11688_v60 }
 0x867   :  { %10135 = vmatprep.subr.bf16.mxu1 %v11689_v2 }
 0x869   :  { %8313 = vmatmul.mubr.bf16.vlgmr.msra.gmra.mrb[100].mxu1 %v13901_v18  ;;  %v11697_v18 = vld [vmem:[#allocation6 + $0x5a0] sm:$0xff]  }
 0x86a   :  { %10136 = vmatpush3.bf16.msra.mxu1 %v11690_v61  ;;  %8583 = vmatprep.mubr.bf16.mxu1 %v13845_v34  ;;  %v11699_v34 = vld [vmem:[#allocation6 + $0x5a8] sm:$0xff]  }
 0x86b   :  { %10137 = vmatprep.subr.bf16.mxu1 %v11691_v20 }
 0x86c   :  { %v10085_v51 = vpop.f32.mrb[80].mxu1 }
 0x86d   :  { %v10086_v19 = vpop.f32.mrb[81].mxu1 }
 0x86e   :  { %v10087_v52 = vadd.f32 %v10086_v19, %v10085_v51  ;;  %v10088_v4 = vpop.f32.mrb[82].mxu1  ;;  %10138 = vmatpush3.bf16.msra.mxu1 %v11692_v21 }
 0x86f   :  { %v10089_v31 = vpop.f32.mrb[83].mxu1  ;;  %10139 = vmatprep.subr.bf16.mxu1 %v11693_v14 }
 0x870   :  { %v10090_v3 = vadd.f32 %v10089_v31, %v10088_v4 }
 0x872   :  { %10140 = vmatpush3.bf16.msra.mxu1 %v11694_v58 }
 0x873   :  { %10141 = vmatprep.subr.bf16.mxu1 %v11695_v26 }
 0x876   :  { %10142 = vmatpush3.bf16.msra.mxu1 %v11696_v54  ;;  %v9984_v54 = vld [vmem:[%s14105_s8] ss:$0 sm:$0xff] }
 0x877   :  { %10143 = vmatprep.subr.bf16.mxu1 %v11697_v18 }
 0x87a   :  { %10144 = vmatpush3.bf16.msra.mxu1 %v11698_v38 }
 0x87b   :  { %10145 = vmatprep.subr.bf16.mxu1 %v11699_v34 }
 0x87e   :  { %10146 = vmatpush3.bf16.msra.mxu1 %v11700_v41 }
 0x87f   :  { %10147 = vmatprep.subr.bf16.mxu1 %v11701_v15 }
 0x882   :  { %10148 = vmatpush3.bf16.msra.mxu1 %v11702_v48 }
 0x883   :  { %10149 = vmatprep.subr.bf16.mxu1 %v11703_v23 }
 0x886   :  { %10150 = vmatpush3.bf16.msra.mxu1 %v11704_v22  ;;  %v11713_v22 = vld [vmem:[%s14108_s11] sm:$0xff]  }
 0x887   :  { %10173 = vmatprep.subr.bf16.mxu1 %v11795_v9 }
 0x889   :  { %8584 = vmatmul.mubr.bf16.vlgmr.msra.gmra.mrb[104].mxu1 %v13843_v32  ;;  %v11705_v32 = vld [vmem:[%s14106_s9] sm:$0xff]  }
 0x88a   :  { %10174 = vmatpush3.bf16.msra.mxu1 %v11705_v32  ;;  %10189 = vmatprep.mubr.msk.bf16.mxu1 %vm11796_vm3, %v11795_v9 }
 0x88b   :  { %10175 = vmatprep.subr.bf16.mxu1 %v11795_v9 }
 0x88e   :  { %10176 = vmatpush3.bf16.msra.mxu1 %v11706_v46 }
 0x88f   :  { %10177 = vmatprep.subr.bf16.mxu1 %v11795_v9 }
 0x892   :  { %10178 = vmatpush3.bf16.msra.mxu1 %v11707_v37 }
 0x893   :  { %10179 = vmatprep.subr.bf16.mxu1 %v11795_v9 }
 0x896   :  { %10180 = vmatpush3.bf16.msra.mxu1 %v11708_v39 }
 0x897   :  { %10181 = vmatprep.subr.bf16.mxu1 %v11795_v9 }
 0x89a   :  { %10182 = vmatpush3.bf16.msra.mxu1 %v11709_v40 }
 0x89b   :  { %10183 = vmatprep.subr.bf16.mxu1 %v11795_v9 }
 0x89c   :  { %v7690_v24 = vpop.f32.mrb[84].mxu1 }
 0x89d   :  { %v7691_v11 = vadd.f32 %v10087_v52, %v7690_v24  ;;  %v7692_v50 = vpop.f32.mrb[85].mxu1 }
 0x89e   :  { %v7693_v0 = vpop.f32.mrb[86].mxu1  ;;  %10184 = vmatpush3.bf16.msra.mxu1 %v11710_v27  ;;  %v11717_v50 = vld [vmem:[%s14108_s11 + $0x20] sm:$0xff]  }
 0x89f   :  { %v7697_v36 = vadd.f32 %v7691_v11, %v14004_v57  ;;  %v7694_v8 = vadd.f32 %v10090_v3, %v7693_v0  ;;  %v7695_v59 = vpop.f32.mrb[87].mxu1  ;;  %10185 = vmatprep.subr.bf16.mxu1 %v11795_v9  ;;  %v11716_v11 = vld [vmem:[%s14108_s11 + $0x18] sm:$0xff]   ;;  %v11718_v0 = vld [vmem:[%s14108_s11 + $0x28] ss:$0 sps:$4 sm:$0x33]  }
 0x8a1   :  { %v7698_v29 = vadd.f32 %v7694_v8, %v14008_v53  ;;  %v9985_v8 = vld [vmem:[%s14107_s10] ss:$0 sm:$0xff] }
 0x8a2   :  { %10186 = vmatpush3.bf16.msra.mxu1 %v11711_v12 }
 0x8a3   :  { %10187 = vmatprep.subr.bf16.mxu1 %v11795_v9 }
 0x8a6   :  { %10188 = vmatpush3.bf16.msra.mxu1 %v8720_v16 }
 0x8a7   :  { %10193 = vmatprep.subr.bf16.mxu1 %v11795_v9 }
 0x8bc   :  { %v10107_v63 = vpop.f32.mrb[88].mxu1 }
 0x8bd   :  { %v10108_v17 = vpop.f32.mrb[89].mxu1 }
 0x8be   :  { %v10109_v5 = vadd.f32 %v10108_v17, %v10107_v63  ;;  %v10110_v28 = vpop.f32.mrb[90].mxu1 }
 0x8bf   :  { %v10111_v33 = vpop.f32.mrb[91].mxu1 }
 0x8c0   :  { %v10112_v35 = vadd.f32 %v10111_v33, %v10110_v28 }
 0x8ec   :  { %v8002_v44 = vpop.f32.mrb[92].mxu1 }
 0x8ed   :  { %v8003_v13 = vadd.f32 %v10109_v5, %v8002_v44  ;;  %v8004_v30 = vpop.f32.mrb[93].mxu1 }
 0x8ee   :  { %v8005_v25 = vpop.f32.mrb[94].mxu1 }
 0x8ef   :  { %v8009_v49 = vadd.f32 %v8003_v13, %v7697_v36  ;;  %v8006_v42 = vadd.f32 %v10112_v35, %v8005_v25  ;;  %v8007_v55 = vpop.f32.mrb[95].mxu1  ;;  %v8823_v36 = vsel %vm8821_vm5, %v11718_v0, 0 }
 0x8f1   :  { %v8010_v57 = vadd.f32 %v8006_v42, %v7698_v29 }
 0x90c   :  { %v10129_v47 = vpop.f32.mrb[96].mxu1 }
 0x90d   :  { %v10130_v45 = vpop.f32.mrb[97].mxu1 }
 0x90e   :  { %v10131_v53 = vadd.f32 %v10130_v45, %v10129_v47  ;;  %v10132_v6 = vpop.f32.mrb[98].mxu1 }
 0x90f   :  { %v10133_v10 = vpop.f32.mrb[99].mxu1 }
 0x910   :  { %v10134_v56 = vadd.f32 %v10133_v10, %v10132_v6 }
 0x93c   :  { %v8314_v1 = vpop.f32.mrb[100].mxu1 }
 0x93d   :  { %v8315_v60 = vadd.f32 %v10131_v53, %v8314_v1  ;;  %v8316_v2 = vpop.f32.mrb[101].mxu1 }
 0x93e   :  { %v8317_v61 = vpop.f32.mrb[102].mxu1 }
 0x93f   :  { %v8321_v20 = vadd.f32 %v8315_v60, %v8009_v49  ;;  %v8318_v21 = vadd.f32 %v10134_v56, %v8317_v61  ;;  %v8319_v14 = vpop.f32.mrb[103].mxu1 }
 0x941   :  { %v8322_v51 = vadd.f32 %v8318_v21, %v8010_v57 }
 0x95c   :  { %v10151_v19 = vpop.f32.mrb[104].mxu1 }
 0x95d   :  { %v10152_v52 = vpop.f32.mrb[105].mxu1 }
 0x95e   :  { %v10153_v4 = vadd.f32 %v10152_v52, %v10151_v19  ;;  %v10154_v58 = vpop.f32.mrb[106].mxu1 }
 0x95f   :  { %v10155_v31 = vpop.f32.mrb[107].mxu1 }
 0x960   :  { %v8627_v26 = vadd.f32 %v10153_v4, %v13969_v43  ;;  %v10156_v3 = vadd.f32 %v10155_v31, %v10154_v58  ;;  %v11714_v43 = vld [vmem:[%s14108_s11 + $0x8] sm:$0xff]  }
 0x962   :  { %v8633_v18 = vadd.f32 %v8627_v26, %v8321_v20  ;;  %v8630_v38 = vadd.f32 %v10156_v3, %v13971_v62  ;;  %v11715_v62 = vld [vmem:[%s14108_s11 + $0x10] sm:$0xff]  }
 0x964   :  { %v8642_v34 = vadd.f32 %v9984_v54, %v8633_v18  ;;  %v8634_v41 = vadd.f32 %v8630_v38, %v8322_v51 }
 0x966   :  { %v8643_v15 = vadd.f32 %v9984_v54, %v8634_v41  ;;  %v8644_v48 = vmax.f32 %v8642_v34, 0.0 }
 0x968   :  { %v8645_v23 = vmax.f32 %v8643_v15, 0.0 }
 0x96a   :  { %v8646_v24 = vpack.c.bf16 %v8645_v23, %v8644_v48 }
 0x96c   :  { %10190 = vmatmul.mubr.msk.bf16.vlgmr.msra.gmra.mrb[108].mxu1 %vm8714_vm4, %v8646_v24 }
 0x96d   :  { %10194 = vmatpush3.bf16.msra.mxu1 %v11713_v22  ;;  %10205 = vmatprep.mubr.msk.bf16.mxu1 %vm11796_vm3, %v11795_v9 }
 0x96e   :  { %10195 = vmatprep.subr.bf16.mxu1 %v11795_v9 }
 0x971   :  { %10196 = vmatpush3.bf16.msra.mxu1 %v11714_v43 }
 0x972   :  { %10197 = vmatprep.subr.bf16.mxu1 %v11795_v9 }
 0x975   :  { %10198 = vmatpush3.bf16.msra.mxu1 %v11715_v62 }
 0x976   :  { %10199 = vmatprep.subr.bf16.mxu1 %v11795_v9 }
 0x979   :  { %10200 = vmatpush3.bf16.msra.mxu1 %v11716_v11 }
 0x97a   :  { %10201 = vmatprep.subr.bf16.mxu1 %v11795_v9 }
 0x97d   :  { %10202 = vmatpush3.bf16.msra.mxu1 %v11717_v50 }
 0x97e   :  { %10203 = vmatprep.subr.bf16.mxu1 %v11795_v9  ;;  %v9995_v9 = vld [vmem:[%s14109_s12] ss:$0 sm:$0xff] }
 0x981   :  { %10204 = vmatpush3.bf16.msra.mxu1 %v8823_v36 }
 0xa3f   :  { %v8756_v59 = vpop.f32.mrb[108].mxu1 }
 0xa40   :  { %v8757_v29 = vadd.f32 %v9985_v8, %v8756_v59  ;;  %v10191_v63 = vpop.f32.mrb[109].mxu1 }
 0xa41   :  { %v8759_v17 = vpop.f32.mrb[110].mxu1 }
 0xa42   :  { %v8760_v5 = vadd.f32 %v9985_v8, %v8759_v17  ;;  %v10192_v28 = vpop.f32.mrb[111].mxu1  ;;  %v8763_v33 = vmax.f32 %v8757_v29, 0.0 }
 0xa44   :  { %v8764_v35 = vmax.f32 %v8760_v5, 0.0 }
 0xa46   :  { %v8765_v32 = vpack.c.bf16 %v8764_v35, %v8763_v33 }
 0xa48   :  { %10206 = vmatmul.mubr.msk.bf16.vlgmr.msra.gmra.mrb[112].mxu1 %vm8817_vm6, %v8765_v32 }
 0xb1b   :  { %v8859_v46 = vpop.f32.mrb[112].mxu1 }
 0xb1c   :  { %v8860_v37 = vadd.f32 %v9995_v9, %v8859_v46  ;;  %v10207_v39 = vpop.f32.mrb[113].mxu1 }
 0xb1d   :  { %v8862_v40 = vpop.f32.mrb[114].mxu1 }
 0xb1e   :  { %8866 = vst [vmem:[%s14110_s13] sm:$0xff] %v8860_v37  ;;  %v8863_v27 = vadd.f32 %v9995_v9, %v8862_v40  ;;  %v10208_v12 = vpop.f32.mrb[115].mxu1 }
 0xb20   :  { %8867 = vst [vmem:[%s14110_s13 + $0x8] sm:$0xff] %v8863_v27 }
 0xb21   :  { %8872 = vsyncpa [#allocation5], 1 }
 0xb22   :  { %8873 = vsyncpa [#allocation7], 1 }

</bundles_post_ra>
